<compile_context>
chip_gen: v5e
topology: v5e:2x2
jax: 0.10.0
libtpu: 0.0.40
codegen_flags: <defaults>
</compile_context>

<pallas_src>
import itertools
from functools import partial

import jax
import jax.numpy as jnp
import numpy as np
from jax import lax
from jax.experimental import pallas as pl
from jax.experimental.pallas import tpu as pltpu


def _dim_taps(K, stride, padding, parity):
    """Kernel taps contributing to outputs o = stride*j + parity.

    Returns [(k, off)] such that input index i = j + off feeds output o via
    kernel tap k (transposed conv: o = i*stride - padding + k).
    """
    taps = []
    for k in range(K):
        t = parity + padding - k
        if t % stride == 0:
            taps.append((k, t // stride))
    return taps


def _make_kernel(ncls, cout, n_lane_chunks):
    """Stacked conv matmul + tiled logsumexp/sigmoid/sub/clamp epilogue."""

    def kernel(b_ref, a_ref, sm_ref, o_ref, conv_ref):
        # b_ref   : (ncls*Cout, KRp)  stacked per-class weights (+ bias column)
        # a_ref   : (KRp, Vt)         shared gathered-input slab (+ ones row)
        # sm_ref  : (1,)  SMEM        min over channels of the subtraction bias
        # o_ref   : (ncls, Vt)        fused per-voxel result (full (8,128) tiles)
        # conv_ref: (ncls*Cout, Vt)   VMEM scratch holding the conv result
        vt = a_ref.shape[1]
        chunk = vt // n_lane_chunks

        # One stacked matmul (M = ncls*Cout = 128), streamed to VMEM in
        # 128-lane column chunks to bound vreg pressure.
        bt = b_ref[...]                                    # hoisted, reused by all chunks
        for t in range(n_lane_chunks):
            conv_ref[:, t * chunk:(t + 1) * chunk] = jnp.dot(
                bt, a_ref[:, t * chunk:(t + 1) * chunk],
                preferred_element_type=jnp.float32)

        sm = sm_ref[0]
        rows = []
        for c in range(ncls):                              # tiled epilogue: (Cout, Vt) slice per class
            cv = conv_ref[c * cout:(c + 1) * cout, :]
            m = jnp.max(cv, axis=0, keepdims=True)
            lse = m + jnp.log(jnp.sum(jnp.exp(cv - m), axis=0, keepdims=True))
            # x * sigmoid(x + 3) / 6, exactly as written in the PyTorch module
            h = lse * jax.nn.sigmoid(lse + 3.0) * (1.0 / 6.0)
            # max_c clip(h - b_c, -1, 1) == clip(h - min_c b_c, -1, 1)  (clip monotone)
            rows.append(jnp.clip(h - sm, -1.0, 1.0))
        o_ref[...] = jnp.concatenate(rows, axis=0)         # one full-tile (ncls, Vt) store

    return kernel


@partial(jax.jit, static_argnames=("stride", "padding"))
def conv_transpose_fused(x, w_pt, conv_bias, sub_bias, *, stride, padding):
    """x: (N, Cin, D, H, W); w_pt: torch ConvTranspose3d weight (Cin, Cout, K, K, K)."""
    N, Cin, D, H, W = x.shape
    _, Cout, K, _, _ = w_pt.shape
    Dout = (D - 1) * stride - 2 * padding + K
    Hout = (H - 1) * stride - 2 * padding + K
    Wout = (W - 1) * stride - 2 * padding + K

    # Per-parity half-grid sizes (all parity classes padded to the same size).
    Sd = -(-Dout // stride)
    Sh = -(-Hout // stride)
    Sw = -(-Wout // stride)
    V = N * Sd * Sh * Sw
    Vp = -(-V // 128) * 128

    ncls = stride ** 3
    CR = ncls * Cout

    # ---- static tap bookkeeping (pure Python, no traced ops) ---------------
    dim_taps = [_dim_taps(K, stride, padding, p) for p in range(stride)]
    off_list = sorted({off for taps in dim_taps for (_, off) in taps})
    off_pos = {o: i for i, o in enumerate(off_list)}
    nod = len(off_list)
    noff = nod ** 3
    KR = noff * Cin + 1                       # +1: conv bias folded as a ones row
    KRp = -(-KR // 8) * 8

    # tap_index[class, offset_triple] = flat kernel tap, or K^3 (-> zero) if unused
    tap_index = np.full((ncls, noff), K ** 3, dtype=np.int32)
    for ci, (pd, ph, pw) in enumerate(itertools.product(range(stride), repeat=3)):
        for (kd, od) in dim_taps[pd]:
            for (kh, oh) in dim_taps[ph]:
                for (kw, ow) in dim_taps[pw]:
                    oi = (off_pos[od] * nod + off_pos[oh]) * nod + off_pos[ow]
                    tap_index[ci, oi] = (kd * K + kh) * K + kw

    # ---- B: stacked per-class weights, (CR, KRp) ----------------------------
    w_flat = w_pt.astype(jnp.float32).reshape(Cin, Cout, K ** 3)
    w_ext = jnp.concatenate([w_flat, jnp.zeros((Cin, Cout, 1), jnp.float32)], axis=2)
    Bk = jnp.take(w_ext, jnp.asarray(tap_index.reshape(-1)), axis=2)
    Bk = Bk.reshape(Cin, Cout, ncls, noff).transpose(2, 1, 3, 0).reshape(CR, noff * Cin)
    bias_col = jnp.tile(conv_bias.astype(jnp.float32).reshape(1, Cout), (ncls, 1)).reshape(CR, 1)
    B = jnp.concatenate([Bk, bias_col], axis=1)
    B = jnp.pad(B, ((0, 0), (0, KRp - KR)))

    # ---- A: one shared gathered-input slab, (KRp, Vp) -----------------------
    off_min, off_max = off_list[0], off_list[-1]
    pf = max(0, -off_min)
    pbd = max(0, (Sd - 1 + off_max) - (D - 1))
    pbh = max(0, (Sh - 1 + off_max) - (H - 1))
    pbw = max(0, (Sw - 1 + off_max) - (W - 1))
    xp = jnp.pad(x.astype(jnp.float32), ((0, 0), (0, 0), (pf, pbd), (pf, pbh), (pf, pbw)))
    xcl = xp.transpose(1, 0, 2, 3, 4)                          # (Cin, N, Dp, Hp, Wp)
    slabs = []
    for od, oh, ow in itertools.product(off_list, repeat=3):   # 8 distinct offset slabs, built once
        sl = xcl[:, :, od + pf:od + pf + Sd, oh + pf:oh + pf + Sh, ow + pf:ow + pf + Sw]
        slabs.append(sl.reshape(Cin, V))
    A = jnp.concatenate(slabs, axis=0)                          # (noff*Cin, V)
    A = jnp.pad(A, ((0, 0), (0, Vp - V)))
    A = jnp.concatenate([A, jnp.ones((1, Vp), jnp.float32),
                         jnp.zeros((KRp - KR, Vp), jnp.float32)], axis=0)   # (KRp, Vp)

    sub_min = jnp.min(sub_bias).reshape(1).astype(jnp.float32)

    # 2 fat column-tile steps (feeds both v7x TensorCores; negligible overhead
    # on the single-TC v5e/v6e).  Each step moves the whole B plus half of A.
    n_tiles = 2 if (Vp >= 256 and (Vp // 128) % 2 == 0) else 1
    Vt = Vp // n_tiles
    n_lane_chunks = Vt // 128

    kernel = _make_kernel(ncls, Cout, n_lane_chunks)

    out = pl.pallas_call(
        kernel,
        out_shape=jax.ShapeDtypeStruct((ncls, Vp), jnp.float32),
        grid_spec=pltpu.PrefetchScalarGridSpec(
            num_scalar_prefetch=0,
            grid=(n_tiles,),
            in_specs=[
                pl.BlockSpec((CR, KRp), lambda i: (0, 0)),           # stacked weights
                pl.BlockSpec((KRp, Vt), lambda i: (0, i)),           # shared input slab (col tile)
                pl.BlockSpec(memory_space=pltpu.MemorySpace.SMEM),   # min(sub bias) scalar
            ],
            out_specs=pl.BlockSpec((ncls, Vt), lambda i: (0, i)),
            scratch_shapes=[pltpu.VMEM((CR, Vt), jnp.float32)],
        ),
        compiler_params=pltpu.CompilerParams(
            dimension_semantics=("parallel",)),
    )(B, A, sub_min)

    # Re-interleave the stride^3 parity classes into the full output grid.
    y = out[:, :V].reshape(stride, stride, stride, N, Sd, Sh, Sw)
    y = y.transpose(3, 4, 0, 5, 1, 6, 2)          # (N, jd, pd, jh, ph, jw, pw)
    y = y.reshape(N, stride * Sd, stride * Sh, stride * Sw)
    y = y[:, :Dout, :Hout, :Wout]
    return y[:, None, :, :, :]                    # (N, 1, Dout, Hout, Wout)


def reference(x, w_pt, conv_bias, sub_bias, *, stride, padding):
    """Pure-JAX reference with identical semantics to the PyTorch module."""
    Cin, Cout, K, _, _ = w_pt.shape
    w_conv = jnp.flip(w_pt, axis=(2, 3, 4)).transpose(1, 0, 2, 3, 4)  # (Cout, Cin, K, K, K)
    y = lax.conv_general_dilated(
        x, w_conv, window_strides=(1, 1, 1),
        padding=[(K - 1 - padding, K - 1 - padding)] * 3,
        lhs_dilation=(stride, stride, stride),
        dimension_numbers=("NCDHW", "OIDHW", "NCDHW"))
    y = y + conv_bias.reshape(1, Cout, 1, 1, 1)
    lse = jax.scipy.special.logsumexp(y, axis=1, keepdims=True)
    h = lse * jax.nn.sigmoid(lse + 3.0) / 6.0
    s = h - sub_bias                                           # (N,1,...) - (Cout,1,1,1)
    c = jnp.clip(s, -1.0, 1.0)
    return jnp.max(c, axis=1, keepdims=True)


if __name__ == "__main__":
    N, Cin, Cout, K, stride, padding = 2, 3, 16, 3, 2, 1
    D = H = W = 8

    key = jax.random.PRNGKey(0)
    k1, k2, k3, k4 = jax.random.split(key, 4)
    x = jax.random.normal(k1, (N, Cin, D, H, W), jnp.float32)
    w_pt = jax.random.normal(k2, (Cin, Cout, K, K, K), jnp.float32) * 0.1   # ConvTranspose3d.weight
    conv_bias = jax.random.normal(k3, (Cout,), jnp.float32) * 0.1           # ConvTranspose3d.bias
    sub_bias = jax.random.normal(k4, (Cout, 1, 1, 1), jnp.float32)          # self.bias

    out = conv_transpose_fused(x, w_pt, conv_bias, sub_bias, stride=stride, padding=padding)
    out = jax.block_until_ready(out)

    ref = jax.block_until_ready(
        reference(x, w_pt, conv_bias, sub_bias, stride=stride, padding=padding))

    assert out.shape == ref.shape, (out.shape, ref.shape)
    np.testing.assert_allclose(np.asarray(out), np.asarray(ref), atol=1e-4, rtol=1e-4)
    print("KERNEL_OK")
</pallas_src>

<mosaic_0001>
module attributes {stable_mosaic.version = 11 : i64} {
  func.func @kernel(%arg0: i32, %arg1: memref<128x32xf32, #tpu.memory_space<vmem>>, %arg2: memref<32x512xf32, #tpu.memory_space<vmem>>, %arg3: memref<1xf32, #tpu.memory_space<smem>>, %arg4: memref<8x512xf32, #tpu.memory_space<vmem>>, %arg5: memref<128x512xf32, #tpu.memory_space<vmem>>) attributes {dimension_semantics = [#tpu.dimension_semantics<parallel>], iteration_bounds = array<i64: 2>, scalar_prefetch = 0 : i64, scratch_operands = 1 : i64, tpu.core_type = #tpu.core_type<tc>, window_params = [{pipeline_mode = #tpu.pipeline_mode<synchronous>, transform_indices = @transform_0, window_bounds = array<i64: 128, 32>}, {transform_indices = @transform_1, window_bounds = array<i64: 32, 512>}, {transform_indices = @transform_2, window_bounds = array<i64: 1>}, {transform_indices = @transform_3, window_bounds = array<i64: 8, 512>}]} {
    %c0 = arith.constant 0 : index
    %c0_0 = arith.constant 0 : index
    %0 = vector.load %arg1[%c0, %c0_0] : memref<128x32xf32, #tpu.memory_space<vmem>>, vector<128x32xf32>
    %c0_1 = arith.constant 0 : index
    %c0_2 = arith.constant 0 : index
    %1 = vector.load %arg2[%c0_1, %c0_2] : memref<32x512xf32, #tpu.memory_space<vmem>>, vector<32x128xf32>
    %cst = arith.constant dense<0.000000e+00> : vector<128x128xf32>
    %2 = tpu.matmul %0, %1, %cst {dimension_numbers = #tpu.dot_dimension_numbers<[1], [0], [0], [1], [0, 0, 1, 1], [], []>} : vector<128x32xf32>, vector<32x128xf32>, vector<128x128xf32> -> vector<128x128xf32>
    %c0_3 = arith.constant 0 : index
    %c0_4 = arith.constant 0 : index
    %3 = vector.load %arg5[%c0_3, %c0_4] : memref<128x512xf32, #tpu.memory_space<vmem>>, vector<128x128xf32>
    tpu.vector_store %arg5[%c0_3, %c0_4], %2 {strides = array<i32>} : memref<128x512xf32, #tpu.memory_space<vmem>>, vector<128x128xf32>,
    %c0_5 = arith.constant 0 : index
    %c128 = arith.constant 128 : index
    %4 = vector.load %arg2[%c0_5, %c128] : memref<32x512xf32, #tpu.memory_space<vmem>>, vector<32x128xf32>
    %cst_6 = arith.constant dense<0.000000e+00> : vector<128x128xf32>
    %5 = tpu.matmul %0, %4, %cst_6 {dimension_numbers = #tpu.dot_dimension_numbers<[1], [0], [0], [1], [0, 0, 1, 1], [], []>} : vector<128x32xf32>, vector<32x128xf32>, vector<128x128xf32> -> vector<128x128xf32>
    %c0_7 = arith.constant 0 : index
    %c128_8 = arith.constant 128 : index
    %6 = vector.load %arg5[%c0_7, %c128_8] : memref<128x512xf32, #tpu.memory_space<vmem>>, vector<128x128xf32>
    tpu.vector_store %arg5[%c0_7, %c128_8], %5 {strides = array<i32>} : memref<128x512xf32, #tpu.memory_space<vmem>>, vector<128x128xf32>,
    %c0_9 = arith.constant 0 : index
    %c256 = arith.constant 256 : index
    %7 = vector.load %arg2[%c0_9, %c256] : memref<32x512xf32, #tpu.memory_space<vmem>>, vector<32x128xf32>
    %cst_10 = arith.constant dense<0.000000e+00> : vector<128x128xf32>
    %8 = tpu.matmul %0, %7, %cst_10 {dimension_numbers = #tpu.dot_dimension_numbers<[1], [0], [0], [1], [0, 0, 1, 1], [], []>} : vector<128x32xf32>, vector<32x128xf32>, vector<128x128xf32> -> vector<128x128xf32>
    %c0_11 = arith.constant 0 : index
    %c256_12 = arith.constant 256 : index
    %9 = vector.load %arg5[%c0_11, %c256_12] : memref<128x512xf32, #tpu.memory_space<vmem>>, vector<128x128xf32>
    tpu.vector_store %arg5[%c0_11, %c256_12], %8 {strides = array<i32>} : memref<128x512xf32, #tpu.memory_space<vmem>>, vector<128x128xf32>,
    %c0_13 = arith.constant 0 : index
    %c384 = arith.constant 384 : index
    %10 = vector.load %arg2[%c0_13, %c384] : memref<32x512xf32, #tpu.memory_space<vmem>>, vector<32x128xf32>
    %cst_14 = arith.constant dense<0.000000e+00> : vector<128x128xf32>
    %11 = tpu.matmul %0, %10, %cst_14 {dimension_numbers = #tpu.dot_dimension_numbers<[1], [0], [0], [1], [0, 0, 1, 1], [], []>} : vector<128x32xf32>, vector<32x128xf32>, vector<128x128xf32> -> vector<128x128xf32>
    %c0_15 = arith.constant 0 : index
    %c384_16 = arith.constant 384 : index
    %12 = vector.load %arg5[%c0_15, %c384_16] : memref<128x512xf32, #tpu.memory_space<vmem>>, vector<128x128xf32>
    tpu.vector_store %arg5[%c0_15, %c384_16], %11 {strides = array<i32>} : memref<128x512xf32, #tpu.memory_space<vmem>>, vector<128x128xf32>,
    %c0_17 = arith.constant 0 : index
    %13 = memref.load %arg3[%c0_17] : memref<1xf32, #tpu.memory_space<smem>>
    %c0_18 = arith.constant 0 : index
    %c0_19 = arith.constant 0 : index
    %14 = vector.load %arg5[%c0_18, %c0_19] : memref<128x512xf32, #tpu.memory_space<vmem>>, vector<16x512xf32>
    %cst_20 = arith.constant dense<0xFF800000> : vector<512xf32>
    %15 = vector.multi_reduction <maximumf>, %14, %cst_20 [0] : vector<16x512xf32> to vector<512xf32>
    %16 = vector.shape_cast %15 : vector<512xf32> to vector<1x512xf32>
    %17 = vector.broadcast %16 : vector<1x512xf32> to vector<16x512xf32>
    %18 = arith.subf %14, %17 : vector<16x512xf32>
    %19 = math.exp %18 : vector<16x512xf32>
    %cst_21 = arith.constant dense<0.000000e+00> : vector<512xf32>
    %20 = vector.multi_reduction <add>, %19, %cst_21 [0] : vector<16x512xf32> to vector<512xf32>
    %21 = vector.shape_cast %20 : vector<512xf32> to vector<1x512xf32>
    %22 = math.log %21 : vector<1x512xf32>
    %23 = arith.addf %16, %22 : vector<1x512xf32>
    %cst_22 = arith.constant 3.000000e+00 : f32
    %24 = vector.broadcast %cst_22 : f32 to vector<1x512xf32>
    %25 = arith.addf %23, %24 : vector<1x512xf32>
    %26 = arith.negf %25 : vector<1x512xf32>
    %27 = math.exp %26 : vector<1x512xf32>
    %cst_23 = arith.constant 1.000000e+00 : f32
    %28 = vector.broadcast %cst_23 : f32 to vector<1x512xf32>
    %29 = arith.addf %28, %27 : vector<1x512xf32>
    %30 = arith.divf %28, %29 : vector<1x512xf32>
    %31 = arith.mulf %23, %30 : vector<1x512xf32>
    %cst_24 = arith.constant 0.166666672 : f32
    %32 = vector.broadcast %cst_24 : f32 to vector<1x512xf32>
    %33 = arith.mulf %31, %32 : vector<1x512xf32>
    %34 = vector.broadcast %13 : f32 to vector<1x512xf32>
    %35 = arith.subf %33, %34 : vector<1x512xf32>
    %cst_25 = arith.constant -1.000000e+00 : f32
    %cst_26 = arith.constant 1.000000e+00 : f32
    %36 = vector.broadcast %cst_25 : f32 to vector<1x512xf32>
    %37 = arith.maximumf %36, %35 : vector<1x512xf32>
    %38 = vector.broadcast %cst_26 : f32 to vector<1x512xf32>
    %39 = arith.minimumf %38, %37 : vector<1x512xf32>
    %c16 = arith.constant 16 : index
    %c0_27 = arith.constant 0 : index
    %40 = vector.load %arg5[%c16, %c0_27] : memref<128x512xf32, #tpu.memory_space<vmem>>, vector<16x512xf32>
    %cst_28 = arith.constant dense<0xFF800000> : vector<512xf32>
    %41 = vector.multi_reduction <maximumf>, %40, %cst_28 [0] : vector<16x512xf32> to vector<512xf32>
    %42 = vector.shape_cast %41 : vector<512xf32> to vector<1x512xf32>
    %43 = vector.broadcast %42 : vector<1x512xf32> to vector<16x512xf32>
    %44 = arith.subf %40, %43 : vector<16x512xf32>
    %45 = math.exp %44 : vector<16x512xf32>
    %cst_29 = arith.constant dense<0.000000e+00> : vector<512xf32>
    %46 = vector.multi_reduction <add>, %45, %cst_29 [0] : vector<16x512xf32> to vector<512xf32>
    %47 = vector.shape_cast %46 : vector<512xf32> to vector<1x512xf32>
    %48 = math.log %47 : vector<1x512xf32>
    %49 = arith.addf %42, %48 : vector<1x512xf32>
    %cst_30 = arith.constant 3.000000e+00 : f32
    %50 = vector.broadcast %cst_30 : f32 to vector<1x512xf32>
    %51 = arith.addf %49, %50 : vector<1x512xf32>
    %52 = arith.negf %51 : vector<1x512xf32>
    %53 = math.exp %52 : vector<1x512xf32>
    %cst_31 = arith.constant 1.000000e+00 : f32
    %54 = vector.broadcast %cst_31 : f32 to vector<1x512xf32>
    %55 = arith.addf %54, %53 : vector<1x512xf32>
    %56 = arith.divf %54, %55 : vector<1x512xf32>
    %57 = arith.mulf %49, %56 : vector<1x512xf32>
    %cst_32 = arith.constant 0.166666672 : f32
    %58 = vector.broadcast %cst_32 : f32 to vector<1x512xf32>
    %59 = arith.mulf %57, %58 : vector<1x512xf32>
    %60 = vector.broadcast %13 : f32 to vector<1x512xf32>
    %61 = arith.subf %59, %60 : vector<1x512xf32>
    %cst_33 = arith.constant -1.000000e+00 : f32
    %cst_34 = arith.constant 1.000000e+00 : f32
    %62 = vector.broadcast %cst_33 : f32 to vector<1x512xf32>
    %63 = arith.maximumf %62, %61 : vector<1x512xf32>
    %64 = vector.broadcast %cst_34 : f32 to vector<1x512xf32>
    %65 = arith.minimumf %64, %63 : vector<1x512xf32>
    %c32 = arith.constant 32 : index
    %c0_35 = arith.constant 0 : index
    %66 = vector.load %arg5[%c32, %c0_35] : memref<128x512xf32, #tpu.memory_space<vmem>>, vector<16x512xf32>
    %cst_36 = arith.constant dense<0xFF800000> : vector<512xf32>
    %67 = vector.multi_reduction <maximumf>, %66, %cst_36 [0] : vector<16x512xf32> to vector<512xf32>
    %68 = vector.shape_cast %67 : vector<512xf32> to vector<1x512xf32>
    %69 = vector.broadcast %68 : vector<1x512xf32> to vector<16x512xf32>
    %70 = arith.subf %66, %69 : vector<16x512xf32>
    %71 = math.exp %70 : vector<16x512xf32>
    %cst_37 = arith.constant dense<0.000000e+00> : vector<512xf32>
    %72 = vector.multi_reduction <add>, %71, %cst_37 [0] : vector<16x512xf32> to vector<512xf32>
    %73 = vector.shape_cast %72 : vector<512xf32> to vector<1x512xf32>
    %74 = math.log %73 : vector<1x512xf32>
    %75 = arith.addf %68, %74 : vector<1x512xf32>
    %cst_38 = arith.constant 3.000000e+00 : f32
    %76 = vector.broadcast %cst_38 : f32 to vector<1x512xf32>
    %77 = arith.addf %75, %76 : vector<1x512xf32>
    %78 = arith.negf %77 : vector<1x512xf32>
    %79 = math.exp %78 : vector<1x512xf32>
    %cst_39 = arith.constant 1.000000e+00 : f32
    %80 = vector.broadcast %cst_39 : f32 to vector<1x512xf32>
    %81 = arith.addf %80, %79 : vector<1x512xf32>
    %82 = arith.divf %80, %81 : vector<1x512xf32>
    %83 = arith.mulf %75, %82 : vector<1x512xf32>
    %cst_40 = arith.constant 0.166666672 : f32
    %84 = vector.broadcast %cst_40 : f32 to vector<1x512xf32>
    %85 = arith.mulf %83, %84 : vector<1x512xf32>
    %86 = vector.broadcast %13 : f32 to vector<1x512xf32>
    %87 = arith.subf %85, %86 : vector<1x512xf32>
    %cst_41 = arith.constant -1.000000e+00 : f32
    %cst_42 = arith.constant 1.000000e+00 : f32
    %88 = vector.broadcast %cst_41 : f32 to vector<1x512xf32>
    %89 = arith.maximumf %88, %87 : vector<1x512xf32>
    %90 = vector.broadcast %cst_42 : f32 to vector<1x512xf32>
    %91 = arith.minimumf %90, %89 : vector<1x512xf32>
    %c48 = arith.constant 48 : index
    %c0_43 = arith.constant 0 : index
    %92 = vector.load %arg5[%c48, %c0_43] : memref<128x512xf32, #tpu.memory_space<vmem>>, vector<16x512xf32>
    %cst_44 = arith.constant dense<0xFF800000> : vector<512xf32>
    %93 = vector.multi_reduction <maximumf>, %92, %cst_44 [0] : vector<16x512xf32> to vector<512xf32>
    %94 = vector.shape_cast %93 : vector<512xf32> to vector<1x512xf32>
    %95 = vector.broadcast %94 : vector<1x512xf32> to vector<16x512xf32>
    %96 = arith.subf %92, %95 : vector<16x512xf32>
    %97 = math.exp %96 : vector<16x512xf32>
    %cst_45 = arith.constant dense<0.000000e+00> : vector<512xf32>
    %98 = vector.multi_reduction <add>, %97, %cst_45 [0] : vector<16x512xf32> to vector<512xf32>
    %99 = vector.shape_cast %98 : vector<512xf32> to vector<1x512xf32>
    %100 = math.log %99 : vector<1x512xf32>
    %101 = arith.addf %94, %100 : vector<1x512xf32>
    %cst_46 = arith.constant 3.000000e+00 : f32
    %102 = vector.broadcast %cst_46 : f32 to vector<1x512xf32>
    %103 = arith.addf %101, %102 : vector<1x512xf32>
    %104 = arith.negf %103 : vector<1x512xf32>
    %105 = math.exp %104 : vector<1x512xf32>
    %cst_47 = arith.constant 1.000000e+00 : f32
    %106 = vector.broadcast %cst_47 : f32 to vector<1x512xf32>
    %107 = arith.addf %106, %105 : vector<1x512xf32>
    %108 = arith.divf %106, %107 : vector<1x512xf32>
    %109 = arith.mulf %101, %108 : vector<1x512xf32>
    %cst_48 = arith.constant 0.166666672 : f32
    %110 = vector.broadcast %cst_48 : f32 to vector<1x512xf32>
    %111 = arith.mulf %109, %110 : vector<1x512xf32>
    %112 = vector.broadcast %13 : f32 to vector<1x512xf32>
    %113 = arith.subf %111, %112 : vector<1x512xf32>
    %cst_49 = arith.constant -1.000000e+00 : f32
    %cst_50 = arith.constant 1.000000e+00 : f32
    %114 = vector.broadcast %cst_49 : f32 to vector<1x512xf32>
    %115 = arith.maximumf %114, %113 : vector<1x512xf32>
    %116 = vector.broadcast %cst_50 : f32 to vector<1x512xf32>
    %117 = arith.minimumf %116, %115 : vector<1x512xf32>
    %c64 = arith.constant 64 : index
    %c0_51 = arith.constant 0 : index
    %118 = vector.load %arg5[%c64, %c0_51] : memref<128x512xf32, #tpu.memory_space<vmem>>, vector<16x512xf32>
    %cst_52 = arith.constant dense<0xFF800000> : vector<512xf32>
    %119 = vector.multi_reduction <maximumf>, %118, %cst_52 [0] : vector<16x512xf32> to vector<512xf32>
    %120 = vector.shape_cast %119 : vector<512xf32> to vector<1x512xf32>
    %121 = vector.broadcast %120 : vector<1x512xf32> to vector<16x512xf32>
    %122 = arith.subf %118, %121 : vector<16x512xf32>
    %123 = math.exp %122 : vector<16x512xf32>
    %cst_53 = arith.constant dense<0.000000e+00> : vector<512xf32>
    %124 = vector.multi_reduction <add>, %123, %cst_53 [0] : vector<16x512xf32> to vector<512xf32>
    %125 = vector.shape_cast %124 : vector<512xf32> to vector<1x512xf32>
    %126 = math.log %125 : vector<1x512xf32>
    %127 = arith.addf %120, %126 : vector<1x512xf32>
    %cst_54 = arith.constant 3.000000e+00 : f32
    %128 = vector.broadcast %cst_54 : f32 to vector<1x512xf32>
    %129 = arith.addf %127, %128 : vector<1x512xf32>
    %130 = arith.negf %129 : vector<1x512xf32>
    %131 = math.exp %130 : vector<1x512xf32>
    %cst_55 = arith.constant 1.000000e+00 : f32
    %132 = vector.broadcast %cst_55 : f32 to vector<1x512xf32>
    %133 = arith.addf %132, %131 : vector<1x512xf32>
    %134 = arith.divf %132, %133 : vector<1x512xf32>
    %135 = arith.mulf %127, %134 : vector<1x512xf32>
    %cst_56 = arith.constant 0.166666672 : f32
    %136 = vector.broadcast %cst_56 : f32 to vector<1x512xf32>
    %137 = arith.mulf %135, %136 : vector<1x512xf32>
    %138 = vector.broadcast %13 : f32 to vector<1x512xf32>
    %139 = arith.subf %137, %138 : vector<1x512xf32>
    %cst_57 = arith.constant -1.000000e+00 : f32
    %cst_58 = arith.constant 1.000000e+00 : f32
    %140 = vector.broadcast %cst_57 : f32 to vector<1x512xf32>
    %141 = arith.maximumf %140, %139 : vector<1x512xf32>
    %142 = vector.broadcast %cst_58 : f32 to vector<1x512xf32>
    %143 = arith.minimumf %142, %141 : vector<1x512xf32>
    %c80 = arith.constant 80 : index
    %c0_59 = arith.constant 0 : index
    %144 = vector.load %arg5[%c80, %c0_59] : memref<128x512xf32, #tpu.memory_space<vmem>>, vector<16x512xf32>
    %cst_60 = arith.constant dense<0xFF800000> : vector<512xf32>
    %145 = vector.multi_reduction <maximumf>, %144, %cst_60 [0] : vector<16x512xf32> to vector<512xf32>
    %146 = vector.shape_cast %145 : vector<512xf32> to vector<1x512xf32>
    %147 = vector.broadcast %146 : vector<1x512xf32> to vector<16x512xf32>
    %148 = arith.subf %144, %147 : vector<16x512xf32>
    %149 = math.exp %148 : vector<16x512xf32>
    %cst_61 = arith.constant dense<0.000000e+00> : vector<512xf32>
    %150 = vector.multi_reduction <add>, %149, %cst_61 [0] : vector<16x512xf32> to vector<512xf32>
    %151 = vector.shape_cast %150 : vector<512xf32> to vector<1x512xf32>
    %152 = math.log %151 : vector<1x512xf32>
    %153 = arith.addf %146, %152 : vector<1x512xf32>
    %cst_62 = arith.constant 3.000000e+00 : f32
    %154 = vector.broadcast %cst_62 : f32 to vector<1x512xf32>
    %155 = arith.addf %153, %154 : vector<1x512xf32>
    %156 = arith.negf %155 : vector<1x512xf32>
    %157 = math.exp %156 : vector<1x512xf32>
    %cst_63 = arith.constant 1.000000e+00 : f32
    %158 = vector.broadcast %cst_63 : f32 to vector<1x512xf32>
    %159 = arith.addf %158, %157 : vector<1x512xf32>
    %160 = arith.divf %158, %159 : vector<1x512xf32>
    %161 = arith.mulf %153, %160 : vector<1x512xf32>
    %cst_64 = arith.constant 0.166666672 : f32
    %162 = vector.broadcast %cst_64 : f32 to vector<1x512xf32>
    %163 = arith.mulf %161, %162 : vector<1x512xf32>
    %164 = vector.broadcast %13 : f32 to vector<1x512xf32>
    %165 = arith.subf %163, %164 : vector<1x512xf32>
    %cst_65 = arith.constant -1.000000e+00 : f32
    %cst_66 = arith.constant 1.000000e+00 : f32
    %166 = vector.broadcast %cst_65 : f32 to vector<1x512xf32>
    %167 = arith.maximumf %166, %165 : vector<1x512xf32>
    %168 = vector.broadcast %cst_66 : f32 to vector<1x512xf32>
    %169 = arith.minimumf %168, %167 : vector<1x512xf32>
    %c96 = arith.constant 96 : index
    %c0_67 = arith.constant 0 : index
    %170 = vector.load %arg5[%c96, %c0_67] : memref<128x512xf32, #tpu.memory_space<vmem>>, vector<16x512xf32>
    %cst_68 = arith.constant dense<0xFF800000> : vector<512xf32>
    %171 = vector.multi_reduction <maximumf>, %170, %cst_68 [0] : vector<16x512xf32> to vector<512xf32>
    %172 = vector.shape_cast %171 : vector<512xf32> to vector<1x512xf32>
    %173 = vector.broadcast %172 : vector<1x512xf32> to vector<16x512xf32>
    %174 = arith.subf %170, %173 : vector<16x512xf32>
    %175 = math.exp %174 : vector<16x512xf32>
    %cst_69 = arith.constant dense<0.000000e+00> : vector<512xf32>
    %176 = vector.multi_reduction <add>, %175, %cst_69 [0] : vector<16x512xf32> to vector<512xf32>
    %177 = vector.shape_cast %176 : vector<512xf32> to vector<1x512xf32>
    %178 = math.log %177 : vector<1x512xf32>
    %179 = arith.addf %172, %178 : vector<1x512xf32>
    %cst_70 = arith.constant 3.000000e+00 : f32
    %180 = vector.broadcast %cst_70 : f32 to vector<1x512xf32>
    %181 = arith.addf %179, %180 : vector<1x512xf32>
    %182 = arith.negf %181 : vector<1x512xf32>
    %183 = math.exp %182 : vector<1x512xf32>
    %cst_71 = arith.constant 1.000000e+00 : f32
    %184 = vector.broadcast %cst_71 : f32 to vector<1x512xf32>
    %185 = arith.addf %184, %183 : vector<1x512xf32>
    %186 = arith.divf %184, %185 : vector<1x512xf32>
    %187 = arith.mulf %179, %186 : vector<1x512xf32>
    %cst_72 = arith.constant 0.166666672 : f32
    %188 = vector.broadcast %cst_72 : f32 to vector<1x512xf32>
    %189 = arith.mulf %187, %188 : vector<1x512xf32>
    %190 = vector.broadcast %13 : f32 to vector<1x512xf32>
    %191 = arith.subf %189, %190 : vector<1x512xf32>
    %cst_73 = arith.constant -1.000000e+00 : f32
    %cst_74 = arith.constant 1.000000e+00 : f32
    %192 = vector.broadcast %cst_73 : f32 to vector<1x512xf32>
    %193 = arith.maximumf %192, %191 : vector<1x512xf32>
    %194 = vector.broadcast %cst_74 : f32 to vector<1x512xf32>
    %195 = arith.minimumf %194, %193 : vector<1x512xf32>
    %c112 = arith.constant 112 : index
    %c0_75 = arith.constant 0 : index
    %196 = vector.load %arg5[%c112, %c0_75] : memref<128x512xf32, #tpu.memory_space<vmem>>, vector<16x512xf32>
    %cst_76 = arith.constant dense<0xFF800000> : vector<512xf32>
    %197 = vector.multi_reduction <maximumf>, %196, %cst_76 [0] : vector<16x512xf32> to vector<512xf32>
    %198 = vector.shape_cast %197 : vector<512xf32> to vector<1x512xf32>
    %199 = vector.broadcast %198 : vector<1x512xf32> to vector<16x512xf32>
    %200 = arith.subf %196, %199 : vector<16x512xf32>
    %201 = math.exp %200 : vector<16x512xf32>
    %cst_77 = arith.constant dense<0.000000e+00> : vector<512xf32>
    %202 = vector.multi_reduction <add>, %201, %cst_77 [0] : vector<16x512xf32> to vector<512xf32>
    %203 = vector.shape_cast %202 : vector<512xf32> to vector<1x512xf32>
    %204 = math.log %203 : vector<1x512xf32>
    %205 = arith.addf %198, %204 : vector<1x512xf32>
    %cst_78 = arith.constant 3.000000e+00 : f32
    %206 = vector.broadcast %cst_78 : f32 to vector<1x512xf32>
    %207 = arith.addf %205, %206 : vector<1x512xf32>
    %208 = arith.negf %207 : vector<1x512xf32>
    %209 = math.exp %208 : vector<1x512xf32>
    %cst_79 = arith.constant 1.000000e+00 : f32
    %210 = vector.broadcast %cst_79 : f32 to vector<1x512xf32>
    %211 = arith.addf %210, %209 : vector<1x512xf32>
    %212 = arith.divf %210, %211 : vector<1x512xf32>
    %213 = arith.mulf %205, %212 : vector<1x512xf32>
    %cst_80 = arith.constant 0.166666672 : f32
    %214 = vector.broadcast %cst_80 : f32 to vector<1x512xf32>
    %215 = arith.mulf %213, %214 : vector<1x512xf32>
    %216 = vector.broadcast %13 : f32 to vector<1x512xf32>
    %217 = arith.subf %215, %216 : vector<1x512xf32>
    %cst_81 = arith.constant -1.000000e+00 : f32
    %cst_82 = arith.constant 1.000000e+00 : f32
    %218 = vector.broadcast %cst_81 : f32 to vector<1x512xf32>
    %219 = arith.maximumf %218, %217 : vector<1x512xf32>
    %220 = vector.broadcast %cst_82 : f32 to vector<1x512xf32>
    %221 = arith.minimumf %220, %219 : vector<1x512xf32>
    %222 = tpu.concatenate %39, %65, %91, %117, %143, %169, %195, %221 in 0 : vector<1x512xf32>, vector<1x512xf32>, vector<1x512xf32>, vector<1x512xf32>, vector<1x512xf32>, vector<1x512xf32>, vector<1x512xf32>, vector<1x512xf32> -> vector<8x512xf32>
    %c0_83 = arith.constant 0 : index
    %c0_84 = arith.constant 0 : index
    %223 = vector.load %arg4[%c0_83, %c0_84] : memref<8x512xf32, #tpu.memory_space<vmem>>, vector<8x512xf32>
    tpu.vector_store %arg4[%c0_83, %c0_84], %222 {strides = array<i32>} : memref<8x512xf32, #tpu.memory_space<vmem>>, vector<8x512xf32>,
    return
  }
  func.func @transform_0(%arg0: i32) -> (i32, i32) {
    %c0_i32 = arith.constant 0 : i32
    %c0_i32_0 = arith.constant 0 : i32
    %c0_i32_1 = arith.constant 0 : i32
    return %c0_i32, %c0_i32_0 : i32, i32
  }
  func.func @transform_1(%arg0: i32) -> (i32, i32) {
    %c0_i32 = arith.constant 0 : i32
    %c0_i32_0 = arith.constant 0 : i32
    return %c0_i32, %arg0 : i32, i32
  }
  func.func @transform_2(%arg0: i32) -> i32 {
    %c0_i32 = arith.constant 0 : i32
    %c0_i32_0 = arith.constant 0 : i32
    return %c0_i32 : i32
  }
  func.func @transform_3(%arg0: i32) -> (i32, i32) {
    %c0_i32 = arith.constant 0 : i32
    %c0_i32_0 = arith.constant 0 : i32
    return %c0_i32, %arg0 : i32, i32
  }
}

</mosaic_0001>

<bundles_post_ra>
// kernel: tile.7
= control target key start
LH: loop header
LB: loop body
LE: loop exit
PB: predicated region body
PF: predicated region fallthrough
CT: control target
= control target key end

     0   :  { %s67_s10 = smov 112   ;;  %s68_s11 = smov 80   ;;  %vm3_vm0 = vcmask 130048   ;;  %vm9_vm1 = vcmask 1048448   ;;  %vm15_vm2 = vcmask 917248   ;;  %vm21_vm3 = vcmask 786048   ;;  %s111_s0 = inlined_call_operand.vmem [shape: f32[8,1,1,16], index: 0, kind: input, shape index: {}]   ;;  %s112_s1 = inlined_call_operand.vmem [shape: f32[128,1], index: 1, kind: output, shape index: {}]  }
   0x1   :  { %v53_v0 = vld [vmem:[%s111_s0 + $0x7] sm:$0x1]   ;;  %v55_v1 = vld [vmem:[%s111_s0 + $0x5] sm:$0x1]   ;;  %v57_v2 = vld [vmem:[%s111_s0 + $0x3] sm:$0x1]  }
   0x2   :  { %7 = vrot.lane.b32.xlu0 %v53_v0, %s67_s10  ;;  %19 = vrot.lane.b32.xlu1 %v55_v1, %s68_s11  ;;  %s69_s14 = smov 48   ;;  %v54_v3 = vld [vmem:[%s111_s0 + $0x6] sm:$0x1]   ;;  %v56_v4 = vld [vmem:[%s111_s0 + $0x4] sm:$0x1]   ;;  %s70_s21 = smov 96  }
   0x3   :  { %31 = vrot.lane.b32.xlu2 %v57_v2, %s69_s14  ;;  %v58_v5 = vld [vmem:[%s111_s0 + $0x2] sm:$0x1]   ;;  %s71_s22 = smov 64   ;;  %s72_s23 = smov 32   ;;  %v59_v6 = vld [vmem:[%s111_s0 + $0x1] sm:$0x1]  }
   0x4   :  { %s73_s26 = smov 16   ;;  %v2_v7 = vld [vmem:[%s111_s0] sm:$0x1]   ;;  %vm27_vm4 = vcmask 654848   ;;  %vm33_vm5 = vcmask 523648   ;;  %vm39_vm6 = vcmask 392448  }
   0x5   :  { %4 = vst.msk [vmem:[#allocation0] sm:$0x1] %vm3_vm0, %v2_v7   ;;  %vm45_vm7 = vcmask 261248  }
   0xa   :  { %13 = vrot.lane.b32.xlu0 %v54_v3, %s70_s21  ;;  %25 = vrot.lane.b32.xlu1 %v56_v4, %s71_s22 }
   0xb   :  { %37 = vrot.lane.b32.xlu2 %v58_v5, %s72_s23 }
  0x12   :  { %43 = vrot.lane.b32.xlu0 %v59_v6, %s73_s26 }
  0x5d   :  { %v32_v8 = vpop.permute.xlu2 %31  }
  0x65   :  { %v38_v9 = vpop.permute.xlu2 %37  }
  0x74   :  { %v8_v10 = vpop.permute.xlu0 %7   ;;  %v20_v11 = vpop.permute.xlu1 %19  }
  0x75   :  { %10 = vst.msk [vmem:[#allocation0] sm:$0x1] %vm9_vm1, %v8_v10  }
  0x7c   :  { %v14_v12 = vpop.permute.xlu0 %13   ;;  %v26_v13 = vpop.permute.xlu1 %25  }
  0x7d   :  { %16 = vst.msk [vmem:[#allocation0] sm:$0x1] %vm15_vm2, %v14_v12  }
  0x7e   :  { %22 = vst.msk [vmem:[#allocation0] sm:$0x1] %vm21_vm3, %v20_v11  }
  0x7f   :  { %28 = vst.msk [vmem:[#allocation0] sm:$0x1] %vm27_vm4, %v26_v13  }
  0x80   :  { %34 = vst.msk [vmem:[#allocation0] sm:$0x1] %vm33_vm5, %v32_v8  }
  0x81   :  { %40 = vst.msk [vmem:[#allocation0] sm:$0x1] %vm39_vm6, %v38_v9  }
  0x84   :  { %v44_v14 = vpop.permute.xlu0 %43  }
  0x85   :  { %46 = vst.msk [vmem:[#allocation0] sm:$0x1] %vm45_vm7, %v44_v14  }
  0x8c   :  { %v49_v15 = vld [vmem:[#allocation0] sm:$0x1] }
  0x8d   :  { %52 = vst [vmem:[%s112_s1] sm:$0x1] %v49_v15 }

// kernel: tile.6
= control target key start
LH: loop header
LB: loop body
LE: loop exit
PB: predicated region body
PF: predicated region fallthrough
CT: control target
= control target key end

     0   :  { %2 = vsyncpa [#allocation1], 0  ;;  %s48_s8 = smov [#allocation0]   ;;  %s65_s0 = inlined_call_operand.hbm [shape: f32[16], index: 0, kind: input, shape index: {}]   ;;  %s66_s1 = inlined_call_operand.vmem [shape: f32[8,1,1,16], index: 1, kind: output, shape index: {}]  }
   0x1   :  { %s8_s0 = sshll.u32 %s65_s0, 4  ;;  %s10_s9 = sshll.u32 %s48_s8, 4  ;;  %s9_s0 = int_to_ptr.hbm [resolvable:$true] %s8_s0  ;;  %s11_s9 = int_to_ptr.vmem [resolvable:$true] %s10_s9 }
   0x2   :  { %13 = dma.hbm_to_vmem [thread:$0]  %s9_s0, 16, %s11_s9, [#allocation1]  }
   0x3   :  { %46 = dma.done.wait [#allocation1], 16  }
   0x4   :  { %47 = vsyncadd [#allocation1], 4294967280  ;;  %v18_v0 = vld [vmem:[#allocation0] ss:$0 sm:$0xff] }
   0x5   :  { %19 = vst [vmem:[%s66_s1] sm:$0xff] %v18_v0 }
   0x6   :  { %20 = vsyncpa [#allocation1], 1 }

// kernel: conv_transpose_fused.1
= control target key start
LH: loop header
LB: loop body
LE: loop exit
PB: predicated region body
PF: predicated region fallthrough
CT: control target
= control target key end

     0   :  { %s4223_s0 = inlined_call_operand.vmem [shape: f32[128,32], index: 0, kind: input, shape index: {}]   ;;  %s4224_s1 = inlined_call_operand.vmem [shape: f32[32,1024], index: 1, kind: input, shape index: {}]   ;;  %s4225_s2 = inlined_call_operand.<no memory space> [shape: f32[1], index: 2, kind: input, shape index: {}]   ;;  %s4226_s3 = inlined_call_operand.vmem [shape: f32[8,1024], index: 3, kind: output, shape index: {}]  }
   0x1   :  { %8 = sst [smem:[#allocation3]] %s4225_s2 }
   0x2   :  { %s2865_s14 = smov 0   ;;  %s2867_s15 = smov 0  }
   0x3   :  { %s2869_s16 = smov 0  }
   0x4 LB: > { %s2332_s2 = sadd.s32 4294967295, %s2840_s16   ;;  %s2882_s17 = sadd.s32 1, %s2840_s16   ;;  %s2840_s16 = sphi %s2869_s16, %s4283_s16   ;;  %s2836_s15 = sphi %s2867_s15, %s4282_s15   ;;  %s2832_s14 = sphi %s2865_s14, %s4281_s14  }
   0x5   : > { %s39_s18 = ssub.s32 %s2840_s16, %s2882_s17  ;;  %s42_s19 = sadd.s32 1, %s2836_s15 }
   0x6   : > { %p40_p0 = scmp.eq.s32.totalorder %s39_s18, 0  ;;  %p49_p1 = scmp.ne.s32.totalorder %s2836_s15, %s2832_s14 }
   0x7   : > { %p50_p2 = scmp.eq.s32.totalorder %s2840_s16, 0  ;;  %p2335_p4 = scmp.ge.s32.totalorder %s2840_s16, 2 }
   0x8   : > { %s2891_s20 = scalar_select %p40_p0, %s2836_s15, %s42_s19  }
   0x9   : > { %p51_p3 = por %p50_p2, %p49_p1  ;;  %128 = sbr.rel (%p2335_p4) target bundleno = 34 (0x22), region = 24 }
   0xe   : > { %131 = sbr.rel (!%p51_p3) target bundleno = 34 (0x22), region = 28  ;;  %s133_s21 = sand.u32 (%p51_p3), 1, %s2836_s15  }
   0xf   : > { %s2473_s22 = sshll.u32 (%p51_p3), %s2840_s16, 5  ;;  %s2336_s23 = sshll.u32 (%p51_p3), %s133_s21, 7 }
  0x10   : > { %s2899_s26 = scalar_lea.vmem (%p51_p3), %s4224_s1, %s2473_s22  ;;  %s135_s27 = scalar_lea.vmem (%p51_p3), [#allocation4], %s2336_s23 }
  0x11   : > { %v151_v0 = vld [vmem:[%s2899_s26] sm:$0xff] (%p51_p3)  ;;  %v153_v1 = vld [vmem:[%s2899_s26 + $0x8] sm:$0xff] (%p51_p3)  ;;  %v155_v2 = vld [vmem:[%s2899_s26 + $0x10] sm:$0xff] (%p51_p3) }
  0x12   : > { %152 = vst [vmem:[%s135_s27] sm:$0xff] (%p51_p3), %v151_v0  ;;  %v157_v3 = vld [vmem:[%s2899_s26 + $0x18] sm:$0xff] (%p51_p3)  ;;  %v159_v4 = vld [vmem:[%s2899_s26 + $0x40] sm:$0xff] (%p51_p3)  ;;  %v161_v5 = vld [vmem:[%s2899_s26 + $0x48] sm:$0xff] (%p51_p3) }
  0x13   : > { %154 = vst [vmem:[%s135_s27 + $0x8] sm:$0xff] %v153_v1  ;;  %v163_v6 = vld [vmem:[%s2899_s26 + $0x50] sm:$0xff]  ;;  %v165_v7 = vld [vmem:[%s2899_s26 + $0x58] sm:$0xff]  ;;  %v167_v8 = vld [vmem:[%s2899_s26 + $0x80] sm:$0xff] }
  0x14   : > { %156 = vst [vmem:[%s135_s27 + $0x10] sm:$0xff] %v155_v2  ;;  %v169_v9 = vld [vmem:[%s2899_s26 + $0x88] sm:$0xff]  ;;  %v171_v10 = vld [vmem:[%s2899_s26 + $0x90] sm:$0xff]  ;;  %v173_v11 = vld [vmem:[%s2899_s26 + $0x98] sm:$0xff] }
  0x15   : > { %158 = vst [vmem:[%s135_s27 + $0x18] sm:$0xff] %v157_v3  ;;  %v175_v12 = vld [vmem:[%s2899_s26 + $0xc0] sm:$0xff]  ;;  %v177_v13 = vld [vmem:[%s2899_s26 + $0xc8] sm:$0xff]  ;;  %v179_v14 = vld [vmem:[%s2899_s26 + $0xd0] sm:$0xff] }
  0x16   : > { %160 = vst [vmem:[%s135_s27 + $0x20] sm:$0xff] %v159_v4  ;;  %v181_v15 = vld [vmem:[%s2899_s26 + $0xd8] sm:$0xff] }
  0x17   : > { %162 = vst [vmem:[%s135_s27 + $0x28] sm:$0xff] %v161_v5 }
  0x18   : > { %164 = vst [vmem:[%s135_s27 + $0x30] sm:$0xff] %v163_v6 }
  0x19   : > { %166 = vst [vmem:[%s135_s27 + $0x38] sm:$0xff] %v165_v7 }
  0x1a   : > { %168 = vst [vmem:[%s135_s27 + $0x40] sm:$0xff] %v167_v8 }
  0x1b   : > { %170 = vst [vmem:[%s135_s27 + $0x48] sm:$0xff] %v169_v9 }
  0x1c   : > { %172 = vst [vmem:[%s135_s27 + $0x50] sm:$0xff] %v171_v10 }
  0x1d   : > { %174 = vst [vmem:[%s135_s27 + $0x58] sm:$0xff] %v173_v11 }
  0x1e   : > { %176 = vst [vmem:[%s135_s27 + $0x60] sm:$0xff] %v175_v12 }
  0x1f   : > { %178 = vst [vmem:[%s135_s27 + $0x68] sm:$0xff] %v177_v13 }
  0x20   : > { %180 = vst [vmem:[%s135_s27 + $0x70] sm:$0xff] %v179_v14 }
  0x21   : > { %182 = vst [vmem:[%s135_s27 + $0x78] sm:$0xff] %v181_v15 }
  0x22 PF: > { %p2339_p5 = scmp.ge.s32.totalorder %s2840_s16, 1  ;;  %p187_p6 = scmp.lt.s32.totalorder %s2840_s16, 3 }
  0x24   : > { %p188_p7 = pnand %p2339_p5, %p187_p6 }
  0x25   : > { %s194_s28 = sand.u32 (!%p188_p7), 1, %s2832_s14   ;;  %s3142_s13 = sld [smem:[#allocation3]] (!%p188_p7) }
  0x26   : > { %191 = sbr.rel (%p188_p7) target bundleno = 581 (0x245), region = 51  ;;  %s2340_s29 = sshll.u32 (!%p188_p7), %s194_s28, 7 }
  0x27   : > { %s196_s30 = scalar_lea.vmem (!%p188_p7), [#allocation4], %s2340_s29  ;;  %s4017_s14 = sshll.u32 (!%p188_p7), %s2332_s2, 2 }
  0x28   : > { %p219_p8 = scmp.lt.s32.totalorder (!%p188_p7), %s4017_s14, 7 }
  0x2b   : > { %v243_v16 = vld [vmem:[%s196_s30 + $0x60] sm:$0xff]  ;;  %v377_v17 = vld [vmem:[%s196_s30 + $0x68] sm:$0xff]  ;;  %v462_v18 = vld [vmem:[%s196_s30 + $0x70] sm:$0xff]  ;;  %vm244_vm0 = vcmask 261120   ;;  %s4285_s14 = smov (!%p219_p8, %s4017_s14), 7 }
  0x2c   : > { %305 = vmatpush.msra.mxu0 %v243_v16  ;;  %390 = vmatpush.msra.mxu1 %v377_v17  ;;  %v547_v19 = vld [vmem:[%s196_s30 + $0x78] sm:$0xff]  ;;  %v242_v20 = vld [vmem:[%s196_s30 + $0x40] sm:$0xff]  ;;  %v376_v21 = vld [vmem:[%s196_s30 + $0x48] sm:$0xff]  ;;  %s2342_s16 = sshll.u32 %s4285_s14, 3 }
  0x2d   : > { %475 = vmatpush.msra.mxu2 %v462_v18  ;;  %560 = vmatpush.msra.mxu3 %v547_v19  ;;  %v461_v22 = vld [vmem:[%s196_s30 + $0x50] sm:$0xff]  ;;  %v546_v23 = vld [vmem:[%s196_s30 + $0x58] sm:$0xff]  ;;  %v241_v24 = vld [vmem:[%s196_s30 + $0x20] sm:$0xff]  ;;  %s4103_s19 = scalar_lea.vmem %s4226_s3, %s2342_s16 }
  0x2e   : > { %306 = vmatpush.msra.mxu0 %v242_v20  ;;  %391 = vmatpush.msra.mxu1 %v376_v21  ;;  %v375_v25 = vld [vmem:[%s196_s30 + $0x28] sm:$0xff]  ;;  %v460_v26 = vld [vmem:[%s196_s30 + $0x30] sm:$0xff]  ;;  %v545_v27 = vld [vmem:[%s196_s30 + $0x38] sm:$0xff] }
  0x2f   : > { %476 = vmatpush.msra.mxu2 %v461_v22  ;;  %561 = vmatpush.msra.mxu3 %v546_v23  ;;  %v240_v28 = vld [vmem:[%s196_s30] sm:$0xff]  ;;  %v374_v29 = vld [vmem:[%s196_s30 + $0x8] sm:$0xff]  ;;  %v459_v30 = vld [vmem:[%s196_s30 + $0x10] sm:$0xff] }
  0x30   : > { %307 = vmatpush.msra.mxu0 %v241_v24  ;;  %392 = vmatpush.msra.mxu1 %v375_v25  ;;  %v544_v31 = vld [vmem:[%s196_s30 + $0x18] sm:$0xff]  ;;  %v224_v32 = vld [vmem:[%s4223_s0] sm:$0xff]  ;;  %v225_v33 = vld [vmem:[%s4223_s0 + $0x8] sm:$0xff] }
  0x31   : > { %477 = vmatpush.msra.mxu2 %v460_v26  ;;  %562 = vmatpush.msra.mxu3 %v545_v27  ;;  %v226_v34 = vld [vmem:[%s4223_s0 + $0x10] sm:$0xff]  ;;  %v227_v35 = vld [vmem:[%s4223_s0 + $0x18] sm:$0xff]  ;;  %v228_v36 = vld [vmem:[%s4223_s0 + $0x20] sm:$0xff] }
  0x32   : > { %308 = vmatpush.msra.mxu0 %v240_v28  ;;  %393 = vmatpush.msra.mxu1 %v374_v29  ;;  %v229_v37 = vld [vmem:[%s4223_s0 + $0x28] sm:$0xff]  ;;  %v230_v38 = vld [vmem:[%s4223_s0 + $0x30] sm:$0xff]  ;;  %v231_v39 = vld [vmem:[%s4223_s0 + $0x38] sm:$0xff] }
  0x33   : > { %478 = vmatpush.msra.mxu2 %v459_v30  ;;  %563 = vmatpush.msra.mxu3 %v544_v31  ;;  %v232_v40 = vld [vmem:[%s4223_s0 + $0x40] sm:$0xff]  ;;  %v233_v41 = vld [vmem:[%s4223_s0 + $0x48] sm:$0xff]  ;;  %v234_v42 = vld [vmem:[%s4223_s0 + $0x50] sm:$0xff] }
  0x34   : > { %2343 = vmatmul.msk.f32.vlgmr.msra.gmra.mxu0 %vm244_vm0, %v224_v32  ;;  %2359 = vmatmul.msk.f32.vlgmr.msra.gmra.mxu1 %vm244_vm0, %v224_v32  ;;  %v235_v43 = vld [vmem:[%s4223_s0 + $0x58] sm:$0xff]  ;;  %v236_v44 = vld [vmem:[%s4223_s0 + $0x60] sm:$0xff]  ;;  %v237_v45 = vld [vmem:[%s4223_s0 + $0x68] sm:$0xff] }
  0x35   : > { %2375 = vmatmul.msk.f32.vlgmr.msra.gmra.mxu2 %vm244_vm0, %v224_v32  ;;  %2391 = vmatmul.msk.f32.vlgmr.msra.gmra.mxu3 %vm244_vm0, %v224_v32  ;;  %v238_v46 = vld [vmem:[%s4223_s0 + $0x70] sm:$0xff]  ;;  %v239_v47 = vld [vmem:[%s4223_s0 + $0x78] sm:$0xff] }
  0x3c   : > { %2344 = vmatmul.msk.f32.gmra.mxu0 %vm244_vm0, %v225_v33  ;;  %2360 = vmatmul.msk.f32.gmra.mxu1 %vm244_vm0, %v225_v33 }
  0x3d   : > { %2376 = vmatmul.msk.f32.gmra.mxu2 %vm244_vm0, %v225_v33  ;;  %2392 = vmatmul.msk.f32.gmra.mxu3 %vm244_vm0, %v225_v33 }
  0x44   : > { %2345 = vmatmul.msk.f32.gmra.mxu0 %vm244_vm0, %v226_v34  ;;  %2361 = vmatmul.msk.f32.gmra.mxu1 %vm244_vm0, %v226_v34 }
  0x45   : > { %2377 = vmatmul.msk.f32.gmra.mxu2 %vm244_vm0, %v226_v34  ;;  %2393 = vmatmul.msk.f32.gmra.mxu3 %vm244_vm0, %v226_v34 }
  0x4c   : > { %2346 = vmatmul.msk.f32.gmra.mxu0 %vm244_vm0, %v227_v35  ;;  %2362 = vmatmul.msk.f32.gmra.mxu1 %vm244_vm0, %v227_v35 }
  0x4d   : > { %2378 = vmatmul.msk.f32.gmra.mxu2 %vm244_vm0, %v227_v35  ;;  %2394 = vmatmul.msk.f32.gmra.mxu3 %vm244_vm0, %v227_v35 }
  0x54   : > { %2347 = vmatmul.msk.f32.gmra.mxu0 %vm244_vm0, %v228_v36  ;;  %2363 = vmatmul.msk.f32.gmra.mxu1 %vm244_vm0, %v228_v36 }
  0x55   : > { %2379 = vmatmul.msk.f32.gmra.mxu2 %vm244_vm0, %v228_v36  ;;  %2395 = vmatmul.msk.f32.gmra.mxu3 %vm244_vm0, %v228_v36 }
  0x5c   : > { %2348 = vmatmul.msk.f32.gmra.mxu0 %vm244_vm0, %v229_v37  ;;  %2364 = vmatmul.msk.f32.gmra.mxu1 %vm244_vm0, %v229_v37 }
  0x5d   : > { %2380 = vmatmul.msk.f32.gmra.mxu2 %vm244_vm0, %v229_v37  ;;  %2396 = vmatmul.msk.f32.gmra.mxu3 %vm244_vm0, %v229_v37 }
  0x64   : > { %2349 = vmatmul.msk.f32.gmra.mxu0 %vm244_vm0, %v230_v38  ;;  %2365 = vmatmul.msk.f32.gmra.mxu1 %vm244_vm0, %v230_v38 }
  0x65   : > { %2381 = vmatmul.msk.f32.gmra.mxu2 %vm244_vm0, %v230_v38  ;;  %2397 = vmatmul.msk.f32.gmra.mxu3 %vm244_vm0, %v230_v38 }
  0x6c   : > { %2350 = vmatmul.msk.f32.gmra.mxu0 %vm244_vm0, %v231_v39  ;;  %2366 = vmatmul.msk.f32.gmra.mxu1 %vm244_vm0, %v231_v39 }
  0x6d   : > { %2382 = vmatmul.msk.f32.gmra.mxu2 %vm244_vm0, %v231_v39  ;;  %2398 = vmatmul.msk.f32.gmra.mxu3 %vm244_vm0, %v231_v39 }
  0x74   : > { %2351 = vmatmul.msk.f32.gmra.mxu0 %vm244_vm0, %v232_v40  ;;  %2367 = vmatmul.msk.f32.gmra.mxu1 %vm244_vm0, %v232_v40 }
  0x75   : > { %2383 = vmatmul.msk.f32.gmra.mxu2 %vm244_vm0, %v232_v40  ;;  %2399 = vmatmul.msk.f32.gmra.mxu3 %vm244_vm0, %v232_v40 }
  0x7c   : > { %2352 = vmatmul.msk.f32.gmra.mxu0 %vm244_vm0, %v233_v41  ;;  %2368 = vmatmul.msk.f32.gmra.mxu1 %vm244_vm0, %v233_v41 }
  0x7d   : > { %2384 = vmatmul.msk.f32.gmra.mxu2 %vm244_vm0, %v233_v41  ;;  %2400 = vmatmul.msk.f32.gmra.mxu3 %vm244_vm0, %v233_v41 }
  0x84   : > { %2353 = vmatmul.msk.f32.gmra.mxu0 %vm244_vm0, %v234_v42  ;;  %2369 = vmatmul.msk.f32.gmra.mxu1 %vm244_vm0, %v234_v42 }
  0x85   : > { %2385 = vmatmul.msk.f32.gmra.mxu2 %vm244_vm0, %v234_v42  ;;  %2401 = vmatmul.msk.f32.gmra.mxu3 %vm244_vm0, %v234_v42 }
  0x8c   : > { %2354 = vmatmul.msk.f32.gmra.mxu0 %vm244_vm0, %v235_v43  ;;  %2370 = vmatmul.msk.f32.gmra.mxu1 %vm244_vm0, %v235_v43 }
  0x8d   : > { %2386 = vmatmul.msk.f32.gmra.mxu2 %vm244_vm0, %v235_v43  ;;  %2402 = vmatmul.msk.f32.gmra.mxu3 %vm244_vm0, %v235_v43 }
  0x94   : > { %2355 = vmatmul.msk.f32.gmra.mxu0 %vm244_vm0, %v236_v44  ;;  %2371 = vmatmul.msk.f32.gmra.mxu1 %vm244_vm0, %v236_v44 }
  0x95   : > { %2387 = vmatmul.msk.f32.gmra.mxu2 %vm244_vm0, %v236_v44  ;;  %2403 = vmatmul.msk.f32.gmra.mxu3 %vm244_vm0, %v236_v44 }
  0x9c   : > { %2356 = vmatmul.msk.f32.gmra.mxu0 %vm244_vm0, %v237_v45  ;;  %2372 = vmatmul.msk.f32.gmra.mxu1 %vm244_vm0, %v237_v45 }
  0x9d   : > { %2388 = vmatmul.msk.f32.gmra.mxu2 %vm244_vm0, %v237_v45  ;;  %2404 = vmatmul.msk.f32.gmra.mxu3 %vm244_vm0, %v237_v45 }
  0xa4   : > { %2357 = vmatmul.msk.f32.gmra.mxu0 %vm244_vm0, %v238_v46  ;;  %2373 = vmatmul.msk.f32.gmra.mxu1 %vm244_vm0, %v238_v46 }
  0xa5   : > { %2389 = vmatmul.msk.f32.gmra.mxu2 %vm244_vm0, %v238_v46  ;;  %2405 = vmatmul.msk.f32.gmra.mxu3 %vm244_vm0, %v238_v46 }
  0xac   : > { %2358 = vmatmul.msk.f32.gmra.mxu0 %vm244_vm0, %v239_v47  ;;  %2374 = vmatmul.msk.f32.gmra.mxu1 %vm244_vm0, %v239_v47 }
  0xad   : > { %2390 = vmatmul.msk.f32.gmra.mxu2 %vm244_vm0, %v239_v47  ;;  %2406 = vmatmul.msk.f32.gmra.mxu3 %vm244_vm0, %v239_v47 }
  0xb1   : > { %v310_v48 = vpop.f32.mrf.mxu0  ;;  %v395_v49 = vpop.f32.mrf.mxu1 }
  0xb8   : > { %v3032_v50 = vpop.f32.mrf.mxu2  ;;  %v3034_v51 = vpop.f32.mrf.mxu3 }
  0xb9   : > { %v313_v52 = vpop.f32.mrf.mxu0  ;;  %v398_v53 = vpop.f32.mrf.mxu1 }
  0xba   : > { %v638_v54 = vmax.f32 %v310_v48, %v313_v52  ;;  %v645_v55 = vmax.f32 %v395_v49, %v398_v53 }
  0xbc   : > { %v639_v56 = vrot.slane %v638_v54, 4  ;;  %v646_v57 = vrot.slane %v645_v55, 4 }
  0xbe   : > { %v640_v58 = vmax.f32 %v638_v54, %v639_v56  ;;  %v647_v59 = vmax.f32 %v645_v55, %v646_v57 }
  0xc0   : > { %v641_v60 = vrot.slane %v640_v58, 2  ;;  %v648_v61 = vrot.slane %v647_v59, 2  ;;  %v483_v62 = vpop.f32.mrf.mxu2  ;;  %v568_v63 = vpop.f32.mrf.mxu3 }
  0xc1   : > { %v652_v0 = vmax.f32 %v3032_v50, %v483_v62  ;;  %v659_v1 = vmax.f32 %v3034_v51, %v568_v63  ;;  %v3038_v2 = vpop.f32.mrf.mxu0  ;;  %v3040_v3 = vpop.f32.mrf.mxu1 }
  0xc2   : > { %v642_v4 = vmax.f32 %v640_v58, %v641_v60  ;;  %v649_v5 = vmax.f32 %v647_v59, %v648_v61 }
  0xc3   : > { %v653_v6 = vrot.slane %v652_v0, 4  ;;  %v660_v7 = vrot.slane %v659_v1, 4 }
  0xc4   : > { %v643_v8 = vrot.slane %v642_v4, 1  ;;  %v650_v9 = vrot.slane %v649_v5, 1 }
  0xc5   : > { %v654_v10 = vmax.f32 %v652_v0, %v653_v6  ;;  %v661_v11 = vmax.f32 %v659_v1, %v660_v7 }
  0xc6   : > { %v3042_v12 = vmax.f32 %v642_v4, %v643_v8  ;;  %v3044_v13 = vmax.f32 %v649_v5, %v650_v9 }
  0xc7   : > { %v655_v14 = vrot.slane %v654_v10, 2  ;;  %v662_v15 = vrot.slane %v661_v11, 2 }
  0xc8   : > { %v666_v16 = vsub.f32 %v310_v48, %v3042_v12  ;;  %v670_v17 = vsub.f32 %v313_v52, %v3042_v12  ;;  %v667_v18 = vsub.f32 %v395_v49, %v3044_v13  ;;  %v671_v19 = vsub.f32 %v398_v53, %v3044_v13  ;;  %v3050_v20 = vpop.f32.mrf.mxu2  ;;  %v3052_v21 = vpop.f32.mrf.mxu3 }
  0xc9   : > { %v656_v22 = vmax.f32 %v654_v10, %v655_v14  ;;  %v663_v23 = vmax.f32 %v661_v11, %v662_v15  ;;  %v3054_v24 = vpop.f32.mrf.mxu0  ;;  %v3056_v25 = vpop.f32.mrf.mxu1 }
  0xca   : > { %v674_v26 = vmul.f32 1.442695, %v666_v16  ;;  %v682_v27 = vmul.f32 1.442695, %v670_v17  ;;  %v676_v28 = vmul.f32 1.442695, %v667_v18  ;;  %v839_v29 = vmax.f32 %v3038_v2, %v3054_v24 }
  0xcb   : > { %v684_v30 = vmul.f32 1.442695, %v671_v19  ;;  %v657_v31 = vrot.slane %v656_v22, 1  ;;  %v664_v32 = vrot.slane %v663_v23, 1  ;;  %v846_v33 = vmax.f32 %v3040_v3, %v3056_v25 }
  0xcc   : > { %2498 = vpow2.f32 %v674_v26  ;;  %v840_v34 = vrot.slane %v839_v29, 4 }
  0xcd   : > { %2500 = vpow2.f32 %v682_v27  ;;  %v3062_v35 = vmax.f32 %v656_v22, %v657_v31  ;;  %v3064_v36 = vmax.f32 %v663_v23, %v664_v32  ;;  %v847_v37 = vrot.slane %v846_v33, 4 }
  0xce   : > { %2502 = vpow2.f32 %v676_v28  ;;  %v841_v38 = vmax.f32 %v839_v29, %v840_v34 }
  0xcf   : > { %2504 = vpow2.f32 %v684_v30  ;;  %v668_v39 = vsub.f32 %v3032_v50, %v3062_v35  ;;  %v672_v40 = vsub.f32 %v483_v62, %v3062_v35  ;;  %v669_v41 = vsub.f32 %v3034_v51, %v3064_v36 }
  0xd0   : > { %v673_v42 = vsub.f32 %v568_v63, %v3064_v36  ;;  %v842_v43 = vrot.slane %v841_v38, 2  ;;  %v848_v44 = vmax.f32 %v846_v33, %v847_v37  ;;  %v3072_v45 = vpop.f32.mrf.mxu2  ;;  %v3074_v46 = vpop.f32.mrf.mxu3 }
  0xd1   : > { %v678_v47 = vmul.f32 1.442695, %v668_v39  ;;  %v686_v48 = vmul.f32 1.442695, %v672_v40  ;;  %v680_v49 = vmul.f32 1.442695, %v669_v41  ;;  %v853_v52 = vmax.f32 %v3050_v20, %v3072_v45  ;;  %v3080_v1 = vpop.f32.mrf.mxu0 }
  0xd2   : > { %v2499_v50 = vpop.eup %2498  ;;  %v688_v53 = vmul.f32 1.442695, %v673_v42  ;;  %v843_v54 = vmax.f32 %v841_v38, %v842_v43  ;;  %v849_v55 = vrot.slane %v848_v44, 2  ;;  %v860_v51 = vmax.f32 %v3052_v21, %v3074_v46 }
  0xd3   : > { %v2501_v56 = vpop.eup %2500  ;;  %2506 = vpow2.f32 %v678_v47  ;;  %v854_v57 = vrot.slane %v853_v52, 4 }
  0xd4   : > { %v2503_v58 = vpop.eup %2502  ;;  %v690_v59 = vadd.f32 %v2501_v56, %v2499_v50  ;;  %2508 = vpow2.f32 %v686_v48  ;;  %v844_v60 = vrot.slane %v843_v54, 1  ;;  %v850_v61 = vmax.f32 %v848_v44, %v849_v55 }
  0xd5   : > { %v2505_v62 = vpop.eup %2504  ;;  %2510 = vpow2.f32 %v680_v49  ;;  %v855_v63 = vmax.f32 %v853_v52, %v854_v57  ;;  %v861_v0 = vrot.slane %v860_v51, 4 }
  0xd6   : > { %v691_v4 = vrot.slane %v690_v59, 4  ;;  %v697_v5 = vadd.f32 %v2505_v62, %v2503_v58  ;;  %2512 = vpow2.f32 %v688_v53  ;;  %v3082_v6 = vmax.f32 %v843_v54, %v844_v60 }
  0xd7   : > { %v851_v7 = vrot.slane %v850_v61, 1  ;;  %v856_v8 = vrot.slane %v855_v63, 2  ;;  %v862_v9 = vmax.f32 %v860_v51, %v861_v0 }
  0xd8   : > { %v692_v10 = vadd.f32 %v691_v4, %v690_v59  ;;  %v698_v11 = vrot.slane %v697_v5, 4  ;;  %v867_v14 = vsub.f32 %v3038_v2, %v3082_v6  ;;  %v871_v15 = vsub.f32 %v3054_v24, %v3082_v6  ;;  %v3094_v24 = vpop.f32.mrf.mxu1 }
  0xd9   : > { %v2507_v16 = vpop.eup %2506  ;;  %v3088_v17 = vmax.f32 %v850_v61, %v851_v7  ;;  %v857_v18 = vmax.f32 %v855_v63, %v856_v8  ;;  %v863_v19 = vrot.slane %v862_v9, 2  ;;  %v3098_v49 = vpop.f32.mrf.mxu0 }
  0xda   : > { %v2509_v22 = vpop.eup %2508  ;;  %v693_v23 = vrot.slane %v692_v10, 2  ;;  %v699_v26 = vadd.f32 %v698_v11, %v697_v5  ;;  %v875_v27 = vmul.f32 1.442695, %v867_v14  ;;  %v883_v28 = vmul.f32 1.442695, %v871_v15 }
  0xdb   : > { %v2511_v29 = vpop.eup %2510  ;;  %v704_v30 = vadd.f32 %v2509_v22, %v2507_v16  ;;  %v868_v31 = vsub.f32 %v3040_v3, %v3088_v17  ;;  %v872_v2 = vsub.f32 %v3056_v25, %v3088_v17  ;;  %v858_v32 = vrot.slane %v857_v18, 1 }
  0xdc   : > { %v2513_v33 = vpop.eup %2512  ;;  %v694_v34 = vadd.f32 %v693_v23, %v692_v10  ;;  %v700_v37 = vrot.slane %v699_v26, 2  ;;  %2514 = vpow2.f32 %v875_v27  ;;  %v864_v38 = vmax.f32 %v862_v9, %v863_v19 }
  0xdd   : > { %v705_v39 = vrot.slane %v704_v30, 4  ;;  %v711_v40 = vadd.f32 %v2513_v33, %v2511_v29  ;;  %2516 = vpow2.f32 %v883_v28  ;;  %v877_v41 = vmul.f32 1.442695, %v868_v31 }
  0xde   : > { %v695_v42 = vrot.slane %v694_v34, 1  ;;  %v701_v43 = vadd.f32 %v700_v37, %v699_v26  ;;  %v885_v44 = vmul.f32 1.442695, %v872_v2  ;;  %v3096_v47 = vmax.f32 %v857_v18, %v858_v32  ;;  %v3116_v32 = vpop.f32.mrf.mxu2 }
  0xdf   : > { %v706_v3 = vadd.f32 %v705_v39, %v704_v30  ;;  %v712_v48 = vrot.slane %v711_v40, 4  ;;  %2518 = vpow2.f32 %v877_v41  ;;  %v865_v25 = vrot.slane %v864_v38, 1 }
  0xe0   : > { %v696_v52 = vadd.f32 %v695_v42, %v694_v34  ;;  %v702_v50 = vrot.slane %v701_v43, 1  ;;  %2520 = vpow2.f32 %v885_v44  ;;  %v869_v53 = vsub.f32 %v3050_v20, %v3096_v47  ;;  %v3112_v11 = vpop.f32.mrf.mxu1 }
  0xe1   : > { %v707_v54 = vrot.slane %v706_v3, 2  ;;  %v713_v55 = vadd.f32 %v712_v48, %v711_v40  ;;  %v873_v51 = vsub.f32 %v3072_v45, %v3096_v47  ;;  %v3104_v56 = vmax.f32 %v864_v38, %v865_v25 }
  0xe2   : > { %v2515_v57 = vpop.eup %2514  ;;  %2522 = vlog2.f32 %v696_v52  ;;  %v703_v58 = vadd.f32 %v702_v50, %v701_v43  ;;  %v879_v59 = vmul.f32 1.442695, %v869_v53  ;;  %v1039_v60 = vmax.f32 %v3080_v1, %v3098_v49 }
  0xe3   : > { %v2517_v61 = vpop.eup %2516  ;;  %v708_v62 = vadd.f32 %v707_v54, %v706_v3  ;;  %v714_v63 = vrot.slane %v713_v55, 2  ;;  %v887_v0 = vmul.f32 1.442695, %v873_v51  ;;  %v870_v20 = vsub.f32 %v3052_v21, %v3104_v56 }
  0xe4   : > { %2524 = vlog2.f32 %v703_v58  ;;  %v891_v4 = vadd.f32 %v2517_v61, %v2515_v57  ;;  %v874_v45 = vsub.f32 %v3074_v46, %v3104_v56  ;;  %v1040_v5 = vrot.slane %v1039_v60, 4 }
  0xe5   : > { %v2519_v7 = vpop.eup %2518  ;;  %v709_v8 = vrot.slane %v708_v62, 1  ;;  %v715_v9 = vadd.f32 %v714_v63, %v713_v55  ;;  %2526 = vpow2.f32 %v879_v59  ;;  %v881_v10 = vmul.f32 1.442695, %v870_v20 }
  0xe6   : > { %v2521_v14 = vpop.eup %2520  ;;  %v892_v15 = vrot.slane %v891_v4, 4  ;;  %2528 = vpow2.f32 %v887_v0  ;;  %v889_v16 = vmul.f32 1.442695, %v874_v45  ;;  %v1041_v18 = vmax.f32 %v1039_v60, %v1040_v5 }
  0xe7   : > { %v710_v19 = vadd.f32 %v709_v8, %v708_v62  ;;  %v716_v21 = vrot.slane %v715_v9, 1  ;;  %v898_v22 = vadd.f32 %v2521_v14, %v2519_v7  ;;  %2530 = vpow2.f32 %v881_v10 }
  0xe8   : > { %v2523_v23 = vpop.eup %2522  ;;  %v893_v26 = vadd.f32 %v892_v15, %v891_v4  ;;  %2532 = vpow2.f32 %v889_v16  ;;  %v1042_v46 = vrot.slane %v1041_v18, 2  ;;  %v1046_v27 = vmax.f32 %v3094_v24, %v3112_v11 }
  0xe9   : > { %v719_v28 = vmul.f32 0.6931472, %v2523_v23  ;;  %2534 = vlog2.f32 %v710_v19  ;;  %v717_v29 = vadd.f32 %v716_v21, %v715_v9  ;;  %v899_v30 = vrot.slane %v898_v22, 4  ;;  %v3139_v19 = vpop.f32.mrf.mxu2 }
  0xea   : > { %v2525_v31 = vpop.eup %2524  ;;  %v894_v2 = vrot.slane %v893_v26, 2  ;;  %v1043_v33 = vmax.f32 %v1041_v18, %v1042_v46  ;;  %v1047_v34 = vrot.slane %v1046_v27, 4 }
  0xeb   : > { %v2527_v37 = vpop.eup %2526  ;;  %v3119_v38 = vadd.f32 %v719_v28, %v3042_v12  ;;  %v721_v39 = vmul.f32 0.6931472, %v2525_v31  ;;  %2536 = vlog2.f32 %v717_v29  ;;  %v900_v40 = vadd.f32 %v899_v30, %v898_v22 }
  0xec   : > { %v2529_v41 = vpop.eup %2528  ;;  %v895_v42 = vadd.f32 %v894_v2, %v893_v26  ;;  %v1044_v43 = vrot.slane %v1043_v33, 1  ;;  %v1048_v44 = vmax.f32 %v1046_v27, %v1047_v34  ;;  %v3146_v28 = vmax.f32 %v3116_v32, %v3139_v19 }
  0xed   : > { %v2531_v3 = vpop.eup %2530  ;;  %v730_v48 = vadd.f32 3.0, %v3119_v38  ;;  %v3123_v25 = vadd.f32 %v721_v39, %v3044_v13  ;;  %v901_v52 = vrot.slane %v900_v40, 2  ;;  %v905_v54 = vadd.f32 %v2529_v41, %v2527_v37 }
  0xee   : > { %v2533_v50 = vpop.eup %2532  ;;  %v896_v53 = vrot.slane %v895_v42, 1  ;;  %v3125_v55 = vmax.f32 %v1043_v33, %v1044_v43  ;;  %v1049_v12 = vrot.slane %v1048_v44, 2 }
  0xef   : > { %v2535_v51 = vpop.eup %2534  ;;  %v2407_v57 = vmul.f32 -1.442695, %v730_v48  ;;  %v731_v58 = vadd.f32 3.0, %v3123_v25  ;;  %v902_v59 = vadd.f32 %v901_v52, %v900_v40  ;;  %v912_v60 = vadd.f32 %v2533_v50, %v2531_v3 }
  0xf0   : > { %v723_v61 = vmul.f32 0.6931472, %v2535_v51  ;;  %v897_v62 = vadd.f32 %v896_v53, %v895_v42  ;;  %v906_v63 = vrot.slane %v905_v54, 4  ;;  %v1067_v13 = vsub.f32 %v3080_v1, %v3125_v55 }
  0xf1   : > { %v2537_v0 = vpop.eup %2536  ;;  %2538 = vpow2.f32 %v2407_v57  ;;  %v2408_v20 = vmul.f32 -1.442695, %v731_v58  ;;  %v903_v4 = vrot.slane %v902_v59, 1  ;;  %v913_v45 = vrot.slane %v912_v60, 4 }
  0xf2   : > { %v3131_v5 = vadd.f32 %v723_v61, %v3062_v35  ;;  %v725_v7 = vmul.f32 0.6931472, %v2537_v0  ;;  %2540 = vlog2.f32 %v897_v62  ;;  %v907_v8 = vadd.f32 %v906_v63, %v905_v54 }
  0xf3   : > { %2542 = vpow2.f32 %v2408_v20  ;;  %v904_v9 = vadd.f32 %v903_v4, %v902_v59  ;;  %v914_v10 = vadd.f32 %v913_v45, %v912_v60  ;;  %v1071_v14 = vsub.f32 %v3098_v49, %v3125_v55 }
  0xf4   : > { %v732_v15 = vadd.f32 3.0, %v3131_v5  ;;  %v3137_v1 = vadd.f32 %v725_v7, %v3064_v36  ;;  %v908_v16 = vrot.slane %v907_v8, 2  ;;  %v1075_v18 = vmul.f32 1.442695, %v1067_v13 }
  0xf5   : > { %2544 = vlog2.f32 %v904_v9  ;;  %v915_v35 = vrot.slane %v914_v10, 2  ;;  %v1083_v21 = vmul.f32 1.442695, %v1071_v14  ;;  %v1050_v22 = vmax.f32 %v1048_v44, %v1049_v12 }
  0xf6   : > { %v2409_v23 = vmul.f32 -1.442695, %v732_v15  ;;  %v733_v26 = vadd.f32 3.0, %v3137_v1  ;;  %v909_v46 = vadd.f32 %v908_v16, %v907_v8  ;;  %2546 = vpow2.f32 %v1075_v18 }
  0xf7   : > { %v2539_v27 = vpop.eup %2538  ;;  %v916_v49 = vadd.f32 %v915_v35, %v914_v10  ;;  %2548 = vpow2.f32 %v1083_v21  ;;  %v1051_v36 = vrot.slane %v1050_v22, 1  ;;  %v3166_v57 = vstv %s3142_s13 }
  0xf8   : > { %v2541_v29 = vpop.eup %2540  ;;  %v3148_v30 = vadd.f32 1.0, %v2539_v27  ;;  %2550 = vpow2.f32 %v2409_v23  ;;  %v2410_v31 = vmul.f32 -1.442695, %v733_v26  ;;  %v910_v2 = vrot.slane %v909_v46, 1 }
  0xf9   : > { %v2543_v33 = vpop.eup %2542  ;;  %v920_v34 = vmul.f32 0.6931472, %v2541_v29  ;;  %v917_v37 = vrot.slane %v916_v49, 1  ;;  %v3156_v48 = vmax.f32 %v1050_v22, %v1051_v36  ;;  %v1054_v20 = vrot.slane %v3146_v28, 4 }
  0xfa   : > { %2552 = vrcp.f32 %v3148_v30  ;;  %v3151_v40 = vadd.f32 1.0, %v2543_v33  ;;  %v911_v42 = vadd.f32 %v910_v2, %v909_v46  ;;  %v759_v50 = vand.u32 2147483647, %v3148_v30 }
  0xfb   : > { %v2545_v39 = vpop.eup %2544  ;;  %2554 = vpow2.f32 %v2410_v31  ;;  %v3154_v41 = vadd.f32 %v920_v34, %v3082_v6  ;;  %v918_v3 = vadd.f32 %v917_v37, %v916_v49  ;;  %v761_v51 = vand.u32 2147483648, %v3148_v30  ;;  %v3257_v37 = vpop.f32.mrf.mxu0 }
  0xfc   : > { %v2547_v43 = vpop.eup %2546  ;;  %v922_v44 = vmul.f32 0.6931472, %v2545_v39  ;;  %2556 = vrcp.f32 %v3151_v40  ;;  %v774_v60 = vand.u32 2147483647, %v3151_v40  ;;  %v1068_v63 = vsub.f32 %v3094_v24, %v3156_v48 }
  0xfd   : > { %v2549_v52 = vpop.eup %2548  ;;  %v931_v54 = vadd.f32 3.0, %v3154_v41  ;;  %2558 = vlog2.f32 %v911_v42  ;;  %v776_v0 = vand.u32 2147483648, %v3151_v40  ;;  %vm755_vm1 = vweird.f32 %v3148_v30 }
  0xfe   : > { %v2551_v53 = vpop.eup %2550  ;;  %v3162_v12 = vadd.f32 %v922_v44, %v3088_v17  ;;  %v1091_v6 = vadd.f32 %v2549_v52, %v2547_v43  ;;  %2560 = vlog2.f32 %v918_v3  ;;  %vm3179_vm2 = vcmp.eq.f32.partialorder %v759_v50, 8.507059e+37 }
  0xff   : > { %v3168_v58 = vadd.f32 1.0, %v2551_v53  ;;  %v2415_v61 = vmul.f32 -1.442695, %v931_v54  ;;  %v762_v9 = vor.u32 1.1754944e-38, %v761_v51  ;;  %vm770_vm3 = vweird.f32 %v3151_v40 }
 0x100   : > { %v2553_v59 = vpop.eup %2552  ;;  %v932_v62 = vadd.f32 3.0, %v3162_v12  ;;  %v1092_v14 = vrot.slane %v1091_v6, 4  ;;  %vm3187_vm4 = vcmp.eq.f32.partialorder %v774_v60, 8.507059e+37  ;;  %v777_v23 = vor.u32 1.1754944e-38, %v776_v0 }
 0x101   : > { %v2555_v17 = vpop.eup %2554  ;;  %v751_v13 = vmul.f32 %v2553_v59, %v3148_v30  ;;  %2562 = vrcp.f32 %v3168_v58  ;;  %v789_v35 = vand.u32 2147483647, %v3168_v58  ;;  %vm756_vm5 = vweird.f32 %v2553_v59 }
 0x102   : > { %v3183_v45 = vadd.f32 1.0, %v2555_v17  ;;  %2564 = vpow2.f32 %v2415_v61  ;;  %v2557_v7 = vpop.eup %2556  ;;  %v2416_v10 = vmul.f32 -1.442695, %v932_v62  ;;  %v791_v46 = vand.u32 2147483648, %v3168_v58  ;;  %vm757_vm7 = vmor %vm755_vm1, %vm756_vm5 }
 0x103   : > { %v752_v8 = vsub.f32 1.0, %v751_v13  ;;  %v2559_v15 = vpop.eup %2558  ;;  %v766_v16 = vmul.f32 %v2557_v7, %v3151_v40  ;;  %vm785_vm6 = vweird.f32 %v3168_v58  ;;  %v1093_v31 = vadd.f32 %v1092_v14, %v1091_v6  ;;  %v3222_v40 = vpop.f32.mrf.mxu3 }
 0x104   : > { %v2561_v21 = vpop.eup %2560  ;;  %2566 = vrcp.f32 %v3183_v45  ;;  %v924_v27 = vmul.f32 0.6931472, %v2559_v15  ;;  %vm771_vm8 = vweird.f32 %v2557_v7  ;;  %vm3198_vm9 = vcmp.eq.f32.partialorder %v789_v35, 8.507059e+37 }
 0x105   : > { %v753_v22 = vmul.f32 %v2553_v59, %v752_v8  ;;  %v767_v26 = vsub.f32 1.0, %v766_v16  ;;  %2568 = vpow2.f32 %v2416_v10  ;;  %v926_v29 = vmul.f32 0.6931472, %v2561_v21  ;;  %vm772_vm10 = vmor %vm770_vm3, %vm771_vm8 }
 0x106   : > { %v3205_v43 = vadd.f32 %v924_v27, %v3096_v47  ;;  %v792_v50 = vor.u32 1.1754944e-38, %v791_v46  ;;  %vm800_vm11 = vweird.f32 %v3183_v45  ;;  %v804_v47 = vand.u32 2147483647, %v3183_v45  ;;  %v3306_v46 = vpop.f32.mrf.mxu2 }
 0x107   : > { %v2563_v49 = vpop.eup %2562  ;;  %v754_v36 = vadd.f32 %v2553_v59, %v753_v22  ;;  %v768_v33 = vmul.f32 %v2557_v7, %v767_v26  ;;  %v3208_v44 = vadd.f32 %v926_v29, %v3104_v56  ;;  %v1094_v62 = vrot.slane %v1093_v31, 2 }
 0x108   : > { %v2565_v2 = vpop.eup %2564  ;;  %v781_v34 = vmul.f32 %v2563_v49, %v3168_v58  ;;  %vm786_vm12 = vweird.f32 %v2563_v49  ;;  %vm3236_vm15 = vcmp.eq.f32.partialorder %v804_v47, 8.507059e+37 }
 0x109   : > { %v758_v39 = vsel %vm757_vm7, %v2553_v59, %v754_v36  ;;  %v3202_v42 = vadd.f32 1.0, %v2565_v2  ;;  %v769_v3 = vadd.f32 %v2557_v7, %v768_v33  ;;  %vm787_vm13 = vmor %vm785_vm6, %vm786_vm12  ;;  %v934_v35 = vadd.f32 3.0, %v3208_v44 }
 0x10a   : > { %v763_v30 = vsel %vm3179_vm2, %v762_v9, %v758_v39  ;;  %v782_v52 = vsub.f32 1.0, %v781_v34  ;;  %v2567_v53 = vpop.eup %2566  ;;  %v933_v9 = vadd.f32 3.0, %v3205_v43  ;;  %v1095_v26 = vadd.f32 %v1094_v62, %v1093_v31 }
 0x10b   : > { %v810_v54 = vmul.f32 %v763_v30, %v3119_v38  ;;  %2570 = vrcp.f32 %v3202_v42  ;;  %v2569_v56 = vpop.eup %2568  ;;  %v773_v6 = vsel %vm772_vm10, %v2557_v7, %v769_v3  ;;  %v796_v59 = vmul.f32 %v2567_v53, %v3183_v45 }
 0x10c   : > { %v783_v51 = vmul.f32 %v2563_v49, %v782_v52  ;;  %v778_v61 = vsel %vm3187_vm4, %v777_v23, %v773_v6  ;;  %v806_v38 = vand.u32 2147483648, %v3183_v45  ;;  %v3225_v4 = vadd.f32 1.0, %v2569_v56 }
 0x10d   : > { %v814_v60 = vmul.f32 0.16666667, %v810_v54  ;;  %v811_v17 = vmul.f32 %v778_v61, %v3123_v25  ;;  %v797_v0 = vsub.f32 1.0, %v796_v59  ;;  %vm801_vm14 = vweird.f32 %v2567_v53  ;;  %v3264_v54 = vpop.f32.mrf.mxu3 }
 0x10e   : > { %v784_v13 = vadd.f32 %v2563_v49, %v783_v51  ;;  %v960_v7 = vand.u32 2147483647, %v3202_v42  ;;  %v962_v8 = vand.u32 2147483648, %v3202_v42  ;;  %2572 = vrcp.f32 %v3225_v4  ;;  %vm802_vm0 = vmor %vm800_vm11, %vm801_vm14 }
 0x10f   : > { %v819_v10 = vsub.f32 %v814_v60, %v3166_v57  ;;  %v798_v15 = vmul.f32 %v2567_v53, %v797_v0  ;;  %v807_v18 = vor.u32 1.1754944e-38, %v806_v38  ;;  %v815_v21 = vmul.f32 0.16666667, %v811_v17 }
 0x110   : > { %v788_v14 = vsel %vm787_vm13, %v2563_v49, %v784_v13  ;;  %vm956_vm1 = vweird.f32 %v3202_v42  ;;  %vm3246_vm2 = vcmp.eq.f32.partialorder %v960_v7, 8.507059e+37  ;;  %v963_v27 = vor.u32 1.1754944e-38, %v962_v8 }
 0x111   : > { %v2571_v25 = vpop.eup %2570  ;;  %v793_v16 = vsel %vm3198_vm9, %v792_v50, %v788_v14  ;;  %v799_v22 = vadd.f32 %v2567_v53, %v798_v15  ;;  %v2417_v49 = vmul.f32 -1.442695, %v933_v9  ;;  %v3250_v36 = vclamps-f32 %v819_v10, 1.0 }
 0x112   : > { %v952_v23 = vmul.f32 %v2571_v25, %v3202_v42  ;;  %v812_v29 = vmul.f32 %v793_v16, %v3131_v5  ;;  %vm971_vm3 = vweird.f32 %v3225_v4  ;;  %v975_v45 = vand.u32 2147483647, %v3225_v4 }
 0x113   : > { %v803_v2 = vsel %vm802_vm0, %v2567_v53, %v799_v22  ;;  %2574 = vpow2.f32 %v2417_v49  ;;  %v2418_v34 = vmul.f32 -1.442695, %v934_v35  ;;  %v820_v30 = vsub.f32 %v815_v21, %v3166_v57  ;;  %v3300_v35 = vpop.f32.mrf.mxu0 }
 0x114   : > { %v953_v33 = vsub.f32 1.0, %v952_v23  ;;  %v808_v31 = vsel %vm3236_vm15, %v807_v18, %v803_v2  ;;  %v2573_v39 = vpop.eup %2572  ;;  %vm957_vm4 = vweird.f32 %v2571_v25  ;;  %v1096_v52 = vrot.slane %v1095_v26, 1  ;;  %v3298_v18 = vpop.f32.mrf.mxu1 }
 0x115   : > { %v967_v5 = vmul.f32 %v2573_v39, %v3225_v4  ;;  %v977_v50 = vand.u32 2147483648, %v3225_v4  ;;  %2576 = vpow2.f32 %v2418_v34  ;;  %v1072_v53 = vsub.f32 %v3112_v11, %v3156_v48  ;;  %vm958_vm5 = vmor %vm956_vm1, %vm957_vm4 }
 0x116   : > { %v954_v3 = vmul.f32 %v2571_v25, %v953_v33  ;;  %v3266_v47 = vmul.f32 0.16666667, %v812_v29  ;;  %v813_v56 = vmul.f32 %v808_v31, %v3137_v1  ;;  %v1097_v51 = vadd.f32 %v1096_v52, %v1095_v26 }
 0x117   : > { %vm2231_vm6 = vcmask 1040384   ;;  %v968_v59 = vsub.f32 1.0, %v967_v5  ;;  %v1077_v60 = vmul.f32 1.442695, %v1068_v63  ;;  %v1085_v61 = vmul.f32 1.442695, %v1072_v53 }
 0x118   : > { %v955_v6 = vadd.f32 %v2571_v25, %v954_v3  ;;  %v1055_v11 = vmax.f32 %v3146_v28, %v1054_v20  ;;  %vm972_vm7 = vweird.f32 %v2573_v39  ;;  %2578 = vlog2.f32 %v1097_v51 }
 0x119   : > { %v1060_v1 = vmax.f32 %v3222_v40, %v3264_v54  ;;  %v2575_v62 = vpop.eup %2574  ;;  %v969_v17 = vmul.f32 %v2573_v39, %v968_v59  ;;  %2580 = vpow2.f32 %v1077_v60  ;;  %vm3282_vm8 = vcmp.eq.f32.partialorder %v975_v45, 8.507059e+37  ;;  %vm973_vm9 = vmor %vm971_vm3, %vm972_vm7 }
 0x11a   : > { %v959_v38 = vsel %vm958_vm5, %v2571_v25, %v955_v6  ;;  %v1056_v13 = vrot.slane %v1055_v11, 2  ;;  %v3286_v28 = vadd.f32 1.0, %v2575_v62  ;;  %2582 = vpow2.f32 %v1085_v61 }
 0x11b   : > { %v964_v42 = vsel %vm3246_vm2, %v963_v27, %v959_v38  ;;  %v2577_v20 = vpop.eup %2576  ;;  %v3288_v0 = vmul.f32 0.16666667, %v813_v56  ;;  %v970_v7 = vadd.f32 %v2573_v39, %v969_v17  ;;  %v1061_v9 = vrot.slane %v1060_v1, 4 }
 0x11c   : > { %v1011_v24 = vmul.f32 %v964_v42, %v3154_v41  ;;  %v1057_v8 = vmax.f32 %v1055_v11, %v1056_v13  ;;  %v2412_v10 = vclamps-f32 %v820_v30, 1.0  ;;  %v978_v41 = vor.u32 1.1754944e-38, %v977_v50 }
 0x11d   : > { %2584 = vrcp.f32 %v3286_v28  ;;  %v821_v15 = vsub.f32 %v3266_v47, %v3166_v57  ;;  %v974_v25 = vsel %vm973_vm9, %v2573_v39, %v970_v7  ;;  %v3296_v16 = vadd.f32 1.0, %v2577_v20 }
 0x11e   : > { %v1015_v14 = vmul.f32 0.16666667, %v1011_v24  ;;  %v1058_v58 = vrot.slane %v1057_v8, 1  ;;  %v2579_v21 = vpop.eup %2578  ;;  %v979_v4 = vsel %vm3282_vm8, %v978_v41, %v974_v25  ;;  %v992_v23 = vand.u32 2147483648, %v3286_v28  ;;  %v3347_v41 = vpop.f32.mrf.mxu1 }
 0x11f   : > { %v1062_v26 = vmax.f32 %v1060_v1, %v1061_v9  ;;  %v2581_v27 = vpop.eup %2580  ;;  %v822_v49 = vsub.f32 %v3288_v0, %v3166_v57  ;;  %v1012_v29 = vmul.f32 %v979_v4, %v3162_v12  ;;  %v990_v2 = vand.u32 2147483647, %v3286_v28 }
 0x120   : > { %v1019_v22 = vsub.f32 %v1015_v14, %v3166_v57  ;;  %2586 = vrcp.f32 %v3296_v16  ;;  %v2583_v33 = vpop.eup %2582  ;;  %v1007_v45 = vand.u32 2147483648, %v3296_v16  ;;  %v1120_v34 = vmul.f32 0.6931472, %v2579_v21  ;;  %v3349_v21 = vpop.f32.mrf.mxu2 }
 0x121   : > { %v1239_v39 = vmax.f32 %v3257_v37, %v3300_v35  ;;  %v1016_v30 = vmul.f32 0.16666667, %v1012_v29  ;;  %vm986_vm10 = vweird.f32 %v3286_v28  ;;  %v1098_v3 = vadd.f32 %v2583_v33, %v2581_v27  ;;  %v3356_v27 = vpop.f32.mrf.mxu3 }
 0x122   : > { %v2419_v31 = vclamps-f32 %v1019_v22, 1.0  ;;  %v3317_v52 = vmax.f32 %v1057_v8, %v1058_v58  ;;  %v1063_v5 = vrot.slane %v1062_v26, 2  ;;  %v993_v53 = vor.u32 1.1754944e-38, %v992_v23 }
 0x123   : > { %v2585_v12 = vpop.eup %2584  ;;  %v1005_v56 = vand.u32 2147483647, %v3296_v16  ;;  %v3325_v6 = vadd.f32 %v1120_v34, %v3125_v55  ;;  %v1020_v51 = vsub.f32 %v1016_v30, %v3166_v57  ;;  %vm3329_vm11 = vcmp.eq.f32.partialorder %v990_v2, 8.507059e+37 }
 0x124   : > { %v3321_v50 = vsel %vm2231_vm6, %v3250_v36, %v2419_v31  ;;  %v982_v59 = vmul.f32 %v2585_v12, %v3286_v28  ;;  %v1008_v61 = vor.u32 1.1754944e-38, %v1007_v45  ;;  %v1099_v11 = vrot.slane %v1098_v3, 4 }
 0x125   : > { %vm1001_vm12 = vweird.f32 %v3296_v16  ;;  %v1131_v36 = vadd.f32 3.0, %v3325_v6  ;;  %v1069_v38 = vsub.f32 %v3116_v32, %v3317_v52  ;;  %v1073_v55 = vsub.f32 %v3139_v19, %v3317_v52 }
 0x126   : > { %v1064_v1 = vmax.f32 %v1062_v26, %v1063_v5  ;;  %v2587_v62 = vpop.eup %2586  ;;  %v2420_v42 = vclamps-f32 %v1020_v51, 1.0  ;;  %v983_v17 = vsub.f32 1.0, %v982_v59  ;;  %v1100_v13 = vadd.f32 %v1099_v11, %v1098_v3 }
 0x127   : > { %v1240_v24 = vrot.slane %v1239_v39, 4  ;;  %vm987_vm13 = vweird.f32 %v2585_v12  ;;  %v997_v63 = vmul.f32 %v2587_v62, %v3296_v16  ;;  %vm3340_vm14 = vcmp.eq.f32.partialorder %v1005_v56, 8.507059e+37 }
 0x128   : > { %v2423_v7 = vmul.f32 -1.442695, %v1131_v36  ;;  %v1079_v8 = vmul.f32 1.442695, %v1069_v38  ;;  %v3345_v32 = vsel %vm2231_vm6, %v2412_v10, %v2420_v42  ;;  %v984_v9 = vmul.f32 %v2585_v12, %v983_v17  ;;  %vm988_vm0 = vmor %vm986_vm10, %vm987_vm13 }
 0x129   : > { %v1101_v19 = vrot.slane %v1100_v13, 2  ;;  %v1087_v14 = vmul.f32 1.442695, %v1073_v55  ;;  %v998_v25 = vsub.f32 1.0, %v997_v63  ;;  %vm1002_vm15 = vweird.f32 %v2587_v62 }
 0x12a   : > { %2588 = vpow2.f32 %v2423_v7  ;;  %v1065_v58 = vrot.slane %v1064_v1, 1  ;;  %v985_v22 = vadd.f32 %v2585_v12, %v984_v9  ;;  %v1241_v23 = vmax.f32 %v1239_v39, %v1240_v24  ;;  %vm1003_vm1 = vmor %vm1001_vm12, %vm1002_vm15  ;;  %v3394_v9 = vpop.f32.mrf.mxu3 }
 0x12b   : > { %v1102_v4 = vadd.f32 %v1101_v19, %v1100_v13  ;;  %2590 = vpow2.f32 %v1079_v8  ;;  %v999_v10 = vmul.f32 %v2587_v62, %v998_v25  ;;  %v1246_v29 = vmax.f32 %v3298_v18, %v3347_v41 }
 0x12c   : > { %2592 = vpow2.f32 %v1087_v14  ;;  %v3354_v26 = vmax.f32 %v1064_v1, %v1065_v58  ;;  %v989_v2 = vsel %vm988_vm0, %v2585_v12, %v985_v22  ;;  %v1242_v31 = vrot.slane %v1241_v23, 2 }
 0x12d   : > { %v1103_v33 = vrot.slane %v1102_v4, 1  ;;  %v1253_v45 = vmax.f32 %v3306_v46, %v3349_v21  ;;  %v994_v34 = vsel %vm3329_vm11, %v993_v53, %v989_v2  ;;  %v1000_v28 = vadd.f32 %v2587_v62, %v999_v10 }
 0x12e   : > { %v1070_v39 = vsub.f32 %v3222_v40, %v3354_v26  ;;  %v1074_v30 = vsub.f32 %v3264_v54, %v3354_v26  ;;  %v1013_v3 = vmul.f32 %v994_v34, %v3205_v43  ;;  %v1243_v12 = vmax.f32 %v1241_v23, %v1242_v31 }
 0x12f   : > { %v1104_v5 = vadd.f32 %v1103_v33, %v1102_v4  ;;  %v1247_v56 = vrot.slane %v1246_v29, 4  ;;  %v1004_v59 = vsel %vm1003_vm1, %v2587_v62, %v1000_v28  ;;  %v1254_v11 = vrot.slane %v1253_v45, 4  ;;  %v3404_v33 = vpop.f32.mrf.mxu1 }
 0x130   : > { %v2589_v51 = vpop.eup %2588  ;;  %v1081_v60 = vmul.f32 1.442695, %v1070_v39  ;;  %v1089_v53 = vmul.f32 1.442695, %v1074_v30  ;;  %v1017_v38 = vmul.f32 0.16666667, %v1013_v3  ;;  %v1009_v40 = vsel %vm3340_vm14, %v1008_v61, %v1004_v59 }
 0x131   : > { %v2591_v36 = vpop.eup %2590  ;;  %v3374_v54 = vadd.f32 1.0, %v2589_v51  ;;  %2594 = vlog2.f32 %v1104_v5  ;;  %v1014_v16 = vmul.f32 %v1009_v40, %v3208_v44  ;;  %v1244_v55 = vrot.slane %v1243_v12, 1  ;;  %v3386_v44 = vpop.f32.mrf.mxu0 }
 0x132   : > { %v2593_v43 = vpop.eup %2592  ;;  %2596 = vpow2.f32 %v1081_v60  ;;  %v1248_v1 = vmax.f32 %v1246_v29, %v1247_v56  ;;  %v2413_v62 = vclamps-f32 %v821_v15, 1.0  ;;  %v2414_v42 = vclamps-f32 %v822_v49, 1.0 }
 0x133   : > { %v1021_v17 = vsub.f32 %v1017_v38, %v3166_v57  ;;  %2598 = vrcp.f32 %v3374_v54  ;;  %v1018_v61 = vmul.f32 0.16666667, %v1014_v16  ;;  %v1162_v13 = vand.u32 2147483648, %v3374_v54 }
 0x134   : > { %v1105_v24 = vadd.f32 %v2593_v43, %v2591_v36  ;;  %2600 = vpow2.f32 %v1089_v53  ;;  %v1160_v20 = vand.u32 2147483647, %v3374_v54  ;;  %v3389_v47 = vmax.f32 %v1243_v12, %v1244_v55 }
 0x135   : > { %v2421_v63 = vclamps-f32 %v1021_v17, 1.0  ;;  %v1249_v15 = vrot.slane %v1248_v1, 2  ;;  %v1022_v0 = vsub.f32 %v1018_v61, %v3166_v57  ;;  %v3392_v49 = vor.u32 1.1754944e-38, %v1162_v13 }
 0x136   : > { %v1106_v7 = vrot.slane %v1105_v24, 4  ;;  %v1255_v8 = vmax.f32 %v1253_v45, %v1254_v11  ;;  %v1267_v25 = vsub.f32 %v3257_v37, %v3389_v47  ;;  %v1271_v58 = vsub.f32 %v3300_v35, %v3389_v47  ;;  %v3422_v11 = vpop.f32.mrf.mxu2 }
 0x137   : > { %v2595_v19 = vpop.eup %2594  ;;  %v3397_v14 = vsel %vm2231_vm6, %v2413_v62, %v2421_v63  ;;  %v1250_v22 = vmax.f32 %v1248_v1, %v1249_v15  ;;  %v2422_v23 = vclamps-f32 %v1022_v0, 1.0  ;;  %vm1156_vm2 = vweird.f32 %v3374_v54 }
 0x138   : > { %v2597_v4 = vpop.eup %2596  ;;  %v1122_v10 = vmul.f32 0.6931472, %v2595_v19  ;;  %v1107_v29 = vadd.f32 %v1106_v7, %v1105_v24  ;;  %v1256_v2 = vrot.slane %v1255_v8, 2  ;;  %v1275_v45 = vmul.f32 1.442695, %v1267_v25 }
 0x139   : > { %v2599_v31 = vpop.eup %2598  ;;  %v1283_v34 = vmul.f32 1.442695, %v1271_v58  ;;  %v1251_v28 = vrot.slane %v1250_v22, 1  ;;  %v1260_v37 = vmax.f32 %v3356_v27, %v3394_v9  ;;  %v3409_v35 = vsel %vm2231_vm6, %v2414_v42, %v2422_v23  ;;  %v3428_v62 = vpop.f32.mrf.mxu0 }
 0x13a   : > { %v2601_v39 = vpop.eup %2600  ;;  %v1152_v30 = vmul.f32 %v2599_v31, %v3374_v54  ;;  %vm1157_vm3 = vweird.f32 %v2599_v31  ;;  %vm3412_vm4 = vcmp.eq.f32.partialorder %v1160_v20, 8.507059e+37  ;;  %v3417_v5 = vadd.f32 %v1122_v10, %v3156_v48  ;;  %v3441_v58 = vpop.f32.mrf.mxu1 }
 0x13b   : > { %v1108_v12 = vrot.slane %v1107_v29, 2  ;;  %v1112_v56 = vadd.f32 %v2601_v39, %v2597_v4  ;;  %2602 = vpow2.f32 %v1275_v45  ;;  %v3419_v51 = vmax.f32 %v1250_v22, %v1251_v28  ;;  %vm1158_vm5 = vmor %vm1156_vm2, %vm1157_vm3 }
 0x13c   : > { %v1153_v59 = vsub.f32 1.0, %v1152_v30  ;;  %v1132_v60 = vadd.f32 3.0, %v3417_v5  ;;  %2604 = vpow2.f32 %v1283_v34  ;;  %v1257_v53 = vmax.f32 %v1255_v8, %v1256_v2 }
 0x13d   : > { %v1109_v36 = vadd.f32 %v1108_v12, %v1107_v29  ;;  %v1113_v38 = vrot.slane %v1112_v56, 4  ;;  %v1268_v40 = vsub.f32 %v3298_v18, %v3419_v51  ;;  %v1272_v48 = vsub.f32 %v3347_v41, %v3419_v51 }
 0x13e   : > { %v1154_v43 = vmul.f32 %v2599_v31, %v1153_v59  ;;  %v2424_v16 = vmul.f32 -1.442695, %v1132_v60  ;;  %v1258_v55 = vrot.slane %v1257_v53, 1  ;;  %v1261_v1 = vrot.slane %v1260_v37, 4  ;;  %v3449_v39 = vpop.f32.mrf.mxu2 }
 0x13f   : > { %v1110_v42 = vrot.slane %v1109_v36, 1  ;;  %v1114_v17 = vadd.f32 %v1113_v38, %v1112_v56  ;;  %v1277_v61 = vmul.f32 1.442695, %v1268_v40  ;;  %v1285_v13 = vmul.f32 1.442695, %v1272_v48 }
 0x140   : > { %v1155_v24 = vadd.f32 %v2599_v31, %v1154_v43  ;;  %2606 = vpow2.f32 %v2424_v16  ;;  %v3430_v63 = vmax.f32 %v1257_v53, %v1258_v55  ;;  %v1262_v20 = vmax.f32 %v1260_v37, %v1261_v1 }
 0x141   : > { %v2603_v15 = vpop.eup %2602  ;;  %v1111_v18 = vadd.f32 %v1110_v42, %v1109_v36  ;;  %v1115_v41 = vrot.slane %v1114_v17, 2  ;;  %2608 = vpow2.f32 %v1277_v61  ;;  %v1439_v0 = vmax.f32 %v3386_v44, %v3428_v62 }
 0x142   : > { %v2605_v7 = vpop.eup %2604  ;;  %v1159_v8 = vsel %vm1158_vm5, %v2599_v31, %v1155_v24  ;;  %2610 = vpow2.f32 %v1285_v13  ;;  %v1269_v19 = vsub.f32 %v3306_v46, %v3430_v63  ;;  %v1273_v25 = vsub.f32 %v3349_v21, %v3430_v63 }
 0x143   : > { %v1164_v54 = vsel %vm3412_vm4, %v3392_v49, %v1159_v8  ;;  %2612 = vlog2.f32 %v1111_v18  ;;  %v1116_v22 = vadd.f32 %v1115_v41, %v1114_v17  ;;  %v1291_v4 = vadd.f32 %v2605_v7, %v2603_v15 }
 0x144   : > { %v1211_v23 = vmul.f32 %v1164_v54, %v3325_v6  ;;  %v1279_v10 = vmul.f32 1.442695, %v1269_v19  ;;  %v1287_v29 = vmul.f32 1.442695, %v1273_v25  ;;  %v1263_v2 = vrot.slane %v1262_v20, 2 }
 0x145   : > { %v1117_v31 = vrot.slane %v1116_v22, 1  ;;  %v1292_v45 = vrot.slane %v1291_v4, 4  ;;  %v1440_v46 = vrot.slane %v1439_v0, 4  ;;  %v1446_v21 = vmax.f32 %v3404_v33, %v3441_v58 }
 0x146   : > { %v2607_v34 = vpop.eup %2606  ;;  %v1215_v28 = vmul.f32 0.16666667, %v1211_v23  ;;  %2614 = vpow2.f32 %v1279_v10  ;;  %v1264_v37 = vmax.f32 %v1262_v20, %v1263_v2  ;;  %vm2236_vm6 = vcmask 1041408  }
 0x147   : > { %v2609_v49 = vpop.eup %2608  ;;  %v3451_v30 = vadd.f32 1.0, %v2607_v34  ;;  %v1118_v3 = vadd.f32 %v1117_v31, %v1116_v22  ;;  %v1293_v6 = vadd.f32 %v1292_v45, %v1291_v4  ;;  %2616 = vpow2.f32 %v1287_v29 }
 0x148   : > { %v2611_v12 = vpop.eup %2610  ;;  %v1219_v56 = vsub.f32 %v1215_v28, %v3166_v57  ;;  %v1265_v59 = vrot.slane %v1264_v37, 1  ;;  %v1441_v60 = vmax.f32 %v1439_v0, %v1440_v46  ;;  %v1447_v36 = vrot.slane %v1446_v21, 4 }
 0x149   : > { %v2613_v53 = vpop.eup %2612  ;;  %2618 = vrcp.f32 %v3451_v30  ;;  %v3457_v38 = vmax.f32 %v3422_v11, %v3449_v39  ;;  %v1294_v43 = vrot.slane %v1293_v6, 2  ;;  %v1175_v16 = vand.u32 2147483647, %v3451_v30 }
 0x14a   : > { %v2427_v40 = vclamps-f32 %v1219_v56, 1.0  ;;  %v1124_v48 = vmul.f32 0.6931472, %v2613_v53  ;;  %2620 = vlog2.f32 %v1118_v3  ;;  %v1177_v55 = vand.u32 2147483648, %v3451_v30 }
 0x14b   : > { %v1298_v1 = vadd.f32 %v2611_v12, %v2609_v49  ;;  %v3461_v42 = vmax.f32 %v1264_v37, %v1265_v59  ;;  %v1295_v24 = vadd.f32 %v1294_v43, %v1293_v6  ;;  %v1442_v20 = vrot.slane %v1441_v60, 2 }
 0x14c   : > { %v2615_v17 = vpop.eup %2614  ;;  %v3465_v61 = vsel %vm2236_vm6, %v3321_v50, %v2427_v40  ;;  %v3468_v13 = vadd.f32 %v1124_v48, %v3317_v52  ;;  %v1448_v7 = vmax.f32 %v1446_v21, %v1447_v36  ;;  %vm1171_vm7 = vweird.f32 %v3451_v30  ;;  %v3483_v40 = vpop.f32.mrf.mxu3 }
 0x14d   : > { %v2617_v15 = vpop.eup %2616  ;;  %v1299_v18 = vrot.slane %v1298_v1, 4  ;;  %v1270_v41 = vsub.f32 %v3356_v27, %v3461_v42  ;;  %v1274_v0 = vsub.f32 %v3394_v9, %v3461_v42  ;;  %v1296_v50 = vrot.slane %v1295_v24, 1 }
 0x14e   : > { %v1133_v8 = vadd.f32 3.0, %v3468_v13  ;;  %v1305_v19 = vadd.f32 %v2617_v15, %v2615_v17  ;;  %v1443_v25 = vmax.f32 %v1441_v60, %v1442_v20  ;;  %v1449_v23 = vrot.slane %v1448_v7, 2 }
 0x14f   : > { %v2619_v52 = vpop.eup %2618  ;;  %v1300_v54 = vadd.f32 %v1299_v18, %v1298_v1  ;;  %v1281_v22 = vmul.f32 1.442695, %v1270_v41  ;;  %v1289_v4 = vmul.f32 1.442695, %v1274_v0  ;;  %v1297_v2 = vadd.f32 %v1296_v50, %v1295_v24 }
 0x150   : > { %v2621_v10 = vpop.eup %2620  ;;  %v1167_v29 = vmul.f32 %v2619_v52, %v3451_v30  ;;  %vm1172_vm8 = vweird.f32 %v2619_v52  ;;  %v2425_v27 = vmul.f32 -1.442695, %v1133_v8  ;;  %v1306_v45 = vrot.slane %v1305_v19, 4 }
 0x151   : > { %v1126_v9 = vmul.f32 0.6931472, %v2621_v10  ;;  %v1301_v31 = vrot.slane %v1300_v54, 2  ;;  %2622 = vpow2.f32 %v1281_v22  ;;  %v1444_v21 = vrot.slane %v1443_v25, 1  ;;  %vm1173_vm9 = vmor %vm1171_vm7, %vm1172_vm8 }
 0x152   : > { %v1168_v46 = vsub.f32 1.0, %v1167_v29  ;;  %2624 = vpow2.f32 %v2425_v27  ;;  %v1450_v34 = vmax.f32 %v1448_v7, %v1449_v23  ;;  %v1307_v49 = vadd.f32 %v1306_v45, %v1305_v19 }
 0x153   : > { %v3478_v28 = vadd.f32 %v1126_v9, %v3354_v26  ;;  %2626 = vlog2.f32 %v1297_v2  ;;  %v1302_v37 = vadd.f32 %v1301_v31, %v1300_v54  ;;  %v3480_v6 = vmax.f32 %v1443_v25, %v1444_v21 }
 0x154   : > { %v1169_v3 = vmul.f32 %v2619_v52, %v1168_v46  ;;  %2628 = vpow2.f32 %v1289_v4  ;;  %v1451_v12 = vrot.slane %v1450_v34, 1  ;;  %v1178_v56 = vor.u32 1.1754944e-38, %v1177_v55 }
 0x155   : > { %v1134_v59 = vadd.f32 3.0, %v3478_v28  ;;  %v1303_v60 = vrot.slane %v1302_v37, 1  ;;  %v1308_v53 = vrot.slane %v1307_v49, 2  ;;  %v1467_v26 = vsub.f32 %v3386_v44, %v3480_v6 }
 0x156   : > { %v1170_v36 = vadd.f32 %v2619_v52, %v1169_v3  ;;  %v1471_v48 = vsub.f32 %v3428_v62, %v3480_v6  ;;  %v1454_v43 = vrot.slane %v3457_v38, 4  ;;  %v3493_v20 = vmax.f32 %v1450_v34, %v1451_v12  ;;  %v3515_v34 = vpop.f32.mrf.mxu3 }
 0x157   : > { %v2623_v1 = vpop.eup %2622  ;;  %v2426_v55 = vmul.f32 -1.442695, %v1134_v59  ;;  %v1304_v17 = vadd.f32 %v1303_v60, %v1302_v37  ;;  %v1309_v24 = vadd.f32 %v1308_v53, %v1307_v49  ;;  %vm1176_vm10 = vcmp.eq.f32.partialorder %v1175_v16, 8.507059e+37 }
 0x158   : > { %v2625_v15 = vpop.eup %2624  ;;  %v1174_v18 = vsel %vm1173_vm9, %v2619_v52, %v1170_v36  ;;  %v1475_v44 = vmul.f32 1.442695, %v1467_v26  ;;  %v1483_v25 = vmul.f32 1.442695, %v1471_v48  ;;  %v1468_v52 = vsub.f32 %v3404_v33, %v3493_v20  ;;  %v3530_v26 = vpop.f32.mrf.mxu0 }
 0x159   : > { %v2627_v41 = vpop.eup %2626  ;;  %v1179_v62 = vsel %vm1176_vm10, %v1178_v56, %v1174_v18  ;;  %v3497_v0 = vadd.f32 1.0, %v2625_v15  ;;  %2630 = vpow2.f32 %v2426_v55  ;;  %v1310_v7 = vrot.slane %v1309_v24, 1 }
 0x15a   : > { %v2629_v8 = vpop.eup %2628  ;;  %v1212_v50 = vmul.f32 %v1179_v62, %v3417_v5  ;;  %v1320_v19 = vmul.f32 0.6931472, %v2627_v41  ;;  %2632 = vlog2.f32 %v1304_v17  ;;  %v1455_v30 = vmax.f32 %v3457_v38, %v1454_v43 }
 0x15b   : > { %2634 = vrcp.f32 %v3497_v0  ;;  %v1311_v22 = vadd.f32 %v1310_v7, %v1309_v24  ;;  %v1312_v4 = vadd.f32 %v2629_v8, %v2623_v1  ;;  %v1190_v23 = vand.u32 2147483647, %v3497_v0 }
 0x15c   : > { %v1216_v16 = vmul.f32 0.16666667, %v1212_v50  ;;  %v3505_v54 = vadd.f32 %v1320_v19, %v3389_v47  ;;  %2636 = vpow2.f32 %v1475_v44  ;;  %v1472_v5 = vsub.f32 %v3441_v58, %v3493_v20 }
 0x15d   : > { %2638 = vlog2.f32 %v1311_v22  ;;  %v1313_v33 = vrot.slane %v1312_v4, 4  ;;  %v1192_v38 = vand.u32 2147483648, %v3497_v0  ;;  %v1477_v47 = vmul.f32 1.442695, %v1468_v52 }
 0x15e   : > { %v1220_v10 = vsub.f32 %v1216_v16, %v3166_v57  ;;  %v1331_v29 = vadd.f32 3.0, %v3505_v54  ;;  %2640 = vpow2.f32 %v1483_v25  ;;  %v1456_v2 = vrot.slane %v1455_v30, 2 }
 0x15f   : > { %v2631_v27 = vpop.eup %2630  ;;  %v1314_v21 = vadd.f32 %v1313_v33, %v1312_v4  ;;  %vm1186_vm11 = vweird.f32 %v3497_v0  ;;  %v1485_v49 = vmul.f32 1.442695, %v1472_v5  ;;  %vm3523_vm12 = vcmp.eq.f32.partialorder %v1190_v23, 8.507059e+37 }
 0x160   : > { %v2633_v9 = vpop.eup %2632  ;;  %v2428_v31 = vclamps-f32 %v1220_v10, 1.0  ;;  %v3513_v45 = vadd.f32 1.0, %v2631_v27  ;;  %v2431_v46 = vmul.f32 -1.442695, %v1331_v29  ;;  %v1193_v60 = vor.u32 1.1754944e-38, %v1192_v38 }
 0x161   : > { %v2635_v58 = vpop.eup %2634  ;;  %v1322_v37 = vmul.f32 0.6931472, %v2633_v9  ;;  %v1457_v53 = vmax.f32 %v1455_v30, %v1456_v2  ;;  %v1460_v36 = vmax.f32 %v3483_v40, %v3515_v34  ;;  %v1315_v1 = vrot.slane %v1314_v21, 2 }
 0x162   : > { %v3520_v3 = vsel %vm2236_vm6, %v3345_v32, %v2428_v31  ;;  %v1182_v12 = vmul.f32 %v2635_v58, %v3497_v0  ;;  %2642 = vrcp.f32 %v3513_v45  ;;  %v2637_v59 = vpop.eup %2636  ;;  %vm1187_vm13 = vweird.f32 %v2635_v58 }
 0x163   : > { %2644 = vpow2.f32 %v2431_v46  ;;  %v2639_v48 = vpop.eup %2638  ;;  %v3533_v43 = vadd.f32 %v1322_v37, %v3419_v51  ;;  %v1205_v17 = vand.u32 2147483647, %v3513_v45  ;;  %v1316_v44 = vadd.f32 %v1315_v1, %v1314_v21  ;;  %vm1188_vm14 = vmor %vm1186_vm11, %vm1187_vm13 }
 0x164   : > { %v1183_v32 = vsub.f32 1.0, %v1182_v12  ;;  %2646 = vpow2.f32 %v1477_v47  ;;  %v2641_v55 = vpop.eup %2640  ;;  %v1324_v24 = vmul.f32 0.6931472, %v2639_v48  ;;  %v1207_v62 = vand.u32 2147483648, %v3513_v45 }
 0x165   : > { %2648 = vpow2.f32 %v1485_v49  ;;  %v1332_v18 = vadd.f32 3.0, %v3533_v43  ;;  %v1491_v41 = vadd.f32 %v2641_v55, %v2637_v59  ;;  %v1458_v51 = vrot.slane %v1457_v53, 1 }
 0x166   : > { %v1184_v15 = vmul.f32 %v2635_v58, %v1183_v32  ;;  %v3539_v7 = vadd.f32 %v1324_v24, %v3430_v63  ;;  %v1461_v8 = vrot.slane %v1460_v36, 4  ;;  %v1317_v52 = vrot.slane %v1316_v44, 1 }
 0x167   : > { %v2432_v25 = vmul.f32 -1.442695, %v1332_v18  ;;  %v1492_v30 = vrot.slane %v1491_v41, 4  ;;  %vm1201_vm15 = vweird.f32 %v3513_v45  ;;  %vm3546_vm0 = vcmp.eq.f32.partialorder %v1205_v17, 8.507059e+37 }
 0x168   : > { %v2643_v50 = vpop.eup %2642  ;;  %v1185_v19 = vadd.f32 %v2635_v58, %v1184_v15  ;;  %v1333_v63 = vadd.f32 3.0, %v3539_v7  ;;  %v1318_v29 = vadd.f32 %v1317_v52, %v1316_v44  ;;  %v1208_v9 = vor.u32 1.1754944e-38, %v1207_v62 }
 0x169   : > { %v2645_v16 = vpop.eup %2644  ;;  %v1197_v22 = vmul.f32 %v2643_v50, %v3513_v45  ;;  %2650 = vpow2.f32 %v2432_v25  ;;  %v1493_v47 = vadd.f32 %v1492_v30, %v1491_v41  ;;  %v3557_v31 = vmax.f32 %v1457_v53, %v1458_v51 }
 0x16a   : > { %v2647_v23 = vpop.eup %2646  ;;  %v1189_v5 = vsel %vm1188_vm14, %v2635_v58, %v1185_v19  ;;  %v3551_v10 = vadd.f32 1.0, %v2645_v16  ;;  %v2433_v38 = vmul.f32 -1.442695, %v1333_v63  ;;  %vm1202_vm1 = vweird.f32 %v2643_v50  ;;  %v3559_v58 = vpop.f32.mrf.mxu0 }
 0x16b   : > { %v2649_v33 = vpop.eup %2648  ;;  %v1194_v0 = vsel %vm3523_vm12, %v1193_v60, %v1189_v5  ;;  %v1198_v27 = vsub.f32 1.0, %v1197_v22  ;;  %v1494_v21 = vrot.slane %v1493_v47, 2  ;;  %v3561_v12 = vmax.f32 %v1460_v36, %v1461_v8  ;;  %vm1203_vm2 = vmor %vm1201_vm15, %vm1202_vm1 }
 0x16c   : > { %v1213_v2 = vmul.f32 %v1194_v0, %v3468_v13  ;;  %2652 = vrcp.f32 %v3551_v10  ;;  %v1498_v49 = vadd.f32 %v2649_v33, %v2647_v23  ;;  %v1360_v59 = vand.u32 2147483647, %v3551_v10 }
 0x16d   : > { %v1199_v46 = vmul.f32 %v2643_v50, %v1198_v27  ;;  %2654 = vpow2.f32 %v2433_v38  ;;  %v1362_v13 = vand.u32 2147483648, %v3551_v10  ;;  %v1495_v60 = vadd.f32 %v1494_v21, %v1493_v47 }
 0x16e   : > { %v1217_v37 = vmul.f32 0.16666667, %v1213_v2  ;;  %2656 = vlog2.f32 %v1318_v29  ;;  %v1499_v32 = vrot.slane %v1498_v49, 4  ;;  %v1469_v1 = vsub.f32 %v3422_v11, %v3557_v31 }
 0x16f   : > { %v1200_v56 = vadd.f32 %v2643_v50, %v1199_v46  ;;  %v2651_v48 = vpop.eup %2650  ;;  %v3572_v36 = vmax.f32 %v3530_v26, %v3559_v58  ;;  %vm1356_vm3 = vweird.f32 %v3551_v10  ;;  %v1473_v24 = vsub.f32 %v3449_v39, %v3557_v31 }
 0x170   : > { %v1221_v53 = vsub.f32 %v1217_v37, %v3166_v57  ;;  %v3575_v17 = vadd.f32 1.0, %v2651_v48  ;;  %v1496_v44 = vrot.slane %v1495_v60, 1  ;;  %v1500_v41 = vadd.f32 %v1499_v32, %v1498_v49 }
 0x171   : > { %v1204_v55 = vsel %vm1203_vm2, %v2643_v50, %v1200_v56  ;;  %vm3583_vm4 = vcmp.eq.f32.partialorder %v1360_v59, 8.507059e+37  ;;  %v1363_v50 = vor.u32 1.1754944e-38, %v1362_v13  ;;  %v1479_v52 = vmul.f32 1.442695, %v1469_v1 }
 0x172   : > { %v2653_v15 = vpop.eup %2652  ;;  %v2429_v18 = vclamps-f32 %v1221_v53, 1.0  ;;  %v1209_v45 = vsel %vm3546_vm0, %v1208_v9, %v1204_v55  ;;  %2658 = vrcp.f32 %v3575_v17  ;;  %v1377_v25 = vand.u32 2147483648, %v3575_v17 }
 0x173   : > { %v2655_v11 = vpop.eup %2654  ;;  %v1214_v62 = vmul.f32 %v1209_v45, %v3478_v28  ;;  %v1352_v51 = vmul.f32 %v2653_v15, %v3551_v10  ;;  %v1463_v30 = vrot.slane %v3561_v12, 2  ;;  %v1375_v63 = vand.u32 2147483647, %v3575_v17 }
 0x174   : > { %v2657_v39 = vpop.eup %2656  ;;  %v3590_v19 = vsel %vm2236_vm6, %v3397_v14, %v2429_v18  ;;  %v3594_v22 = vadd.f32 1.0, %v2655_v11  ;;  %v1497_v23 = vadd.f32 %v1496_v44, %v1495_v60  ;;  %v1501_v5 = vrot.slane %v1500_v41, 2 }
 0x175   : > { %v1218_v28 = vmul.f32 0.16666667, %v1214_v62  ;;  %v1353_v16 = vsub.f32 1.0, %v1352_v51  ;;  %v1326_v4 = vmul.f32 0.6931472, %v2657_v39  ;;  %vm1357_vm5 = vweird.f32 %v2653_v15 }
 0x176   : > { %v1487_v29 = vmul.f32 1.442695, %v1473_v24  ;;  %2660 = vrcp.f32 %v3594_v22  ;;  %vm1371_vm7 = vweird.f32 %v3575_v17  ;;  %v1378_v14 = vor.u32 1.1754944e-38, %v1377_v25  ;;  %vm1358_vm8 = vmor %vm1356_vm3, %vm1357_vm5 }
 0x177   : > { %v1222_v33 = vsub.f32 %v1218_v28, %v3166_v57  ;;  %v1354_v0 = vmul.f32 %v2653_v15, %v1353_v16  ;;  %v3601_v27 = vadd.f32 %v1326_v4, %v3461_v42  ;;  %2662 = vlog2.f32 %v1497_v23 }
 0x178   : > { %v2659_v38 = vpop.eup %2658  ;;  %v1390_v9 = vand.u32 2147483647, %v3594_v22  ;;  %v1502_v46 = vadd.f32 %v1501_v5, %v1500_v41  ;;  %vm2241_vm9 = vcmask 1042432   ;;  %vm3607_vm11 = vcmp.eq.f32.partialorder %v1375_v63, 8.507059e+37 }
 0x179   : > { %v2430_v47 = vclamps-f32 %v1222_v33, 1.0  ;;  %v1355_v2 = vadd.f32 %v2653_v15, %v1354_v0  ;;  %v1367_v21 = vmul.f32 %v2659_v38, %v3575_v17  ;;  %vm1372_vm10 = vweird.f32 %v2659_v38  ;;  %v3646_v33 = vpop.f32.mrf.mxu1 }
 0x17a   : > { %v1392_v42 = vand.u32 2147483648, %v3594_v22  ;;  %2664 = vpow2.f32 %v1479_v52  ;;  %v1334_v59 = vadd.f32 3.0, %v3601_v27  ;;  %v1503_v10 = vrot.slane %v1502_v46, 1  ;;  %vm1373_vm13 = vmor %vm1371_vm7, %vm1372_vm10 }
 0x17b   : > { %v3614_v49 = vsel %vm2236_vm6, %v3409_v35, %v2430_v47  ;;  %v1359_v56 = vsel %vm1358_vm8, %v2653_v15, %v1355_v2  ;;  %v1368_v60 = vsub.f32 1.0, %v1367_v21  ;;  %vm1386_vm12 = vweird.f32 %v3594_v22 }
 0x17c   : > { %v1364_v13 = vsel %vm3583_vm4, %v1363_v50, %v1359_v56  ;;  %2666 = vpow2.f32 %v1487_v29  ;;  %v1464_v48 = vmax.f32 %v3561_v12, %v1463_v30  ;;  %v2661_v53 = vpop.eup %2660  ;;  %v2434_v1 = vmul.f32 -1.442695, %v1334_v59 }
 0x17d   : > { %v1411_v32 = vmul.f32 %v1364_v13, %v3505_v54  ;;  %v1504_v55 = vadd.f32 %v1503_v10, %v1502_v46  ;;  %v1640_v35 = vrot.slane %v3572_v36, 4  ;;  %v2663_v24 = vpop.eup %2662  ;;  %v1369_v15 = vmul.f32 %v2659_v38, %v1368_v60 }
 0x17e   : > { %v1382_v18 = vmul.f32 %v2661_v53, %v3594_v22  ;;  %vm3624_vm6 = vcmp.eq.f32.partialorder %v1390_v9, 8.507059e+37  ;;  %v1465_v44 = vrot.slane %v1464_v48, 1  ;;  %2668 = vpow2.f32 %v2434_v1 }
 0x17f   : > { %v1415_v41 = vmul.f32 0.16666667, %v1411_v32  ;;  %v1520_v11 = vmul.f32 0.6931472, %v2663_v24  ;;  %v1641_v12 = vmax.f32 %v3572_v36, %v1640_v35  ;;  %v1370_v54 = vadd.f32 %v2659_v38, %v1369_v15 }
 0x180   : > { %v2665_v62 = vpop.eup %2664  ;;  %v1383_v51 = vsub.f32 1.0, %v1382_v18  ;;  %2670 = vlog2.f32 %v1504_v55  ;;  %v3629_v8 = vmax.f32 %v1464_v48, %v1465_v44  ;;  %vm1387_vm14 = vweird.f32 %v2661_v53 }
 0x181   : > { %v1419_v50 = vsub.f32 %v1415_v41, %v3166_v57  ;;  %v1393_v39 = vor.u32 1.1754944e-38, %v1392_v42  ;;  %v3636_v25 = vadd.f32 %v1520_v11, %v3480_v6  ;;  %v1374_v30 = vsel %vm1373_vm13, %v2659_v38, %v1370_v54  ;;  %vm1388_vm15 = vmor %vm1386_vm12, %vm1387_vm14  ;;  %v3672_v44 = vpop.f32.mrf.mxu1 }
 0x182   : > { %v2667_v52 = vpop.eup %2666  ;;  %v1384_v36 = vmul.f32 %v2661_v53, %v1383_v51  ;;  %v1470_v28 = vsub.f32 %v3483_v40, %v3629_v8  ;;  %v1474_v16 = vsub.f32 %v3515_v34, %v3629_v8  ;;  %v1379_v63 = vsel %vm3607_vm11, %v1378_v14, %v1374_v30 }
 0x183   : > { %v2435_v4 = vclamps-f32 %v1419_v50, 1.0  ;;  %v1531_v17 = vadd.f32 3.0, %v3636_v25  ;;  %v1505_v23 = vadd.f32 %v2667_v52, %v2665_v62  ;;  %v1412_v5 = vmul.f32 %v1379_v63, %v3533_v43 }
 0x184   : > { %v1385_v6 = vadd.f32 %v2661_v53, %v1384_v36  ;;  %v1481_v29 = vmul.f32 1.442695, %v1470_v28  ;;  %v1642_v0 = vrot.slane %v1641_v12, 2  ;;  %v2669_v38 = vpop.eup %2668  ;;  %v1489_v47 = vmul.f32 1.442695, %v1474_v16  ;;  %v3683_v16 = vpop.f32.mrf.mxu0 }
 0x185   : > { %v3650_v40 = vsel %vm2241_vm9, %v3465_v61, %v2435_v4  ;;  %v2439_v34 = vmul.f32 -1.442695, %v1531_v17  ;;  %v1506_v14 = vrot.slane %v1505_v23, 4  ;;  %v1416_v9 = vmul.f32 0.16666667, %v1412_v5 }
 0x186   : > { %v2671_v2 = vpop.eup %2670  ;;  %v1389_v43 = vsel %vm1388_vm15, %v2661_v53, %v1385_v6  ;;  %v1350_v46 = vadd.f32 1.0, %v2669_v38  ;;  %2672 = vpow2.f32 %v1481_v29  ;;  %v1643_v13 = vmax.f32 %v1641_v12, %v1642_v0 }
 0x187   : > { %v1394_v21 = vsel %vm3624_vm6, %v1393_v39, %v1389_v43  ;;  %2674 = vpow2.f32 %v2439_v34  ;;  %v1522_v37 = vmul.f32 0.6931472, %v2671_v2  ;;  %v1420_v61 = vsub.f32 %v1416_v9, %v3166_v57 }
 0x188   : > { %v1413_v42 = vmul.f32 %v1394_v21, %v3539_v7  ;;  %2676 = vrcp.f32 %v1350_v46  ;;  %v1507_v56 = vadd.f32 %v1506_v14, %v1505_v23  ;;  %v1644_v45 = vrot.slane %v1643_v13, 1 }
 0x189   : > { %v3660_v22 = vadd.f32 %v1522_v37, %v3493_v20  ;;  %v2436_v59 = vclamps-f32 %v1420_v61, 1.0  ;;  %2678 = vpow2.f32 %v1489_v47  ;;  %v3668_v20 = vpop.f32.mrf.mxu2  ;;  %v1646_v50 = vmax.f32 %v3646_v33, %v3672_v44  ;;  %v3692_v47 = vpop.f32.mrf.mxu3 }
 0x18a   : > { %v1417_v10 = vmul.f32 0.16666667, %v1413_v42  ;;  %v1508_v48 = vrot.slane %v1507_v56, 2  ;;  %v1405_v39 = vand.u32 2147483647, %v1350_v46  ;;  %v1407_v52 = vand.u32 2147483648, %v1350_v46 }
 0x18b   : > { %v1532_v60 = vadd.f32 3.0, %v3660_v22  ;;  %v3665_v32 = vsel %vm2241_vm9, %v3520_v3, %v2436_v59  ;;  %v3681_v30 = vmax.f32 %v1643_v13, %v1644_v45  ;;  %vm1401_vm1 = vweird.f32 %v1350_v46 }
 0x18c   : > { %v2673_v53 = vpop.eup %2672  ;;  %v1421_v1 = vsub.f32 %v1417_v10, %v3166_v57  ;;  %v1509_v35 = vadd.f32 %v1508_v48, %v1507_v56  ;;  %v1647_v17 = vrot.slane %v1646_v50, 4  ;;  %v1408_v5 = vor.u32 1.1754944e-38, %v1407_v52 }
 0x18d   : > { %v2675_v7 = vpop.eup %2674  ;;  %v2440_v55 = vmul.f32 -1.442695, %v1532_v60  ;;  %v1667_v29 = vsub.f32 %v3530_v26, %v3681_v30  ;;  %v1671_v0 = vsub.f32 %v3559_v58, %v3681_v30  ;;  %vm1406_vm3 = vcmp.eq.f32.partialorder %v1405_v39, 8.507059e+37 }
 0x18e   : > { %v2677_v24 = vpop.eup %2676  ;;  %v2437_v15 = vclamps-f32 %v1421_v1, 1.0  ;;  %v3670_v18 = vadd.f32 1.0, %v2675_v7  ;;  %v1510_v11 = vrot.slane %v1509_v35, 1  ;;  %v1648_v61 = vmax.f32 %v1646_v50, %v1647_v17 }
 0x18f   : > { %v1397_v41 = vmul.f32 %v2677_v24, %v1350_v46  ;;  %2680 = vpow2.f32 %v2440_v55  ;;  %v2679_v12 = vpop.eup %2678  ;;  %vm1402_vm0 = vweird.f32 %v2677_v24  ;;  %v1675_v56 = vmul.f32 1.442695, %v1667_v29 }
 0x190   : > { %v3676_v3 = vsel %vm2241_vm9, %v3590_v19, %v2437_v15  ;;  %2682 = vrcp.f32 %v3670_v18  ;;  %v1511_v54 = vadd.f32 %v1510_v11, %v1509_v35  ;;  %v1512_v51 = vadd.f32 %v2679_v12, %v2673_v53  ;;  %vm1403_vm2 = vmor %vm1401_vm1, %vm1402_vm0  ;;  %v3714_v11 = vpop.f32.mrf.mxu1 }
 0x191   : > { %v1398_v62 = vsub.f32 1.0, %v1397_v41  ;;  %v3694_v2 = vpop.f32.mrf.mxu2  ;;  %v1560_v43 = vand.u32 2147483647, %v3670_v18  ;;  %v1562_v46 = vand.u32 2147483648, %v3670_v18  ;;  %v1683_v59 = vmul.f32 1.442695, %v1671_v0 }
 0x192   : > { %2684 = vlog2.f32 %v1511_v54  ;;  %v1513_v28 = vrot.slane %v1512_v51, 4  ;;  %v1653_v10 = vmax.f32 %v3668_v20, %v3694_v2  ;;  %vm1556_vm5 = vweird.f32 %v3670_v18 }
 0x193   : > { %v1399_v36 = vmul.f32 %v2677_v24, %v1398_v62  ;;  %vm3703_vm7 = vcmp.eq.f32.partialorder %v1560_v43, 8.507059e+37  ;;  %v1649_v35 = vrot.slane %v1648_v61, 2  ;;  %v1563_v45 = vor.u32 1.1754944e-38, %v1562_v46 }
 0x194   : > { %v1514_v63 = vadd.f32 %v1513_v28, %v1512_v51 }
 0x195   : > { %v2681_v19 = vpop.eup %2680  ;;  %v1400_v4 = vadd.f32 %v2677_v24, %v1399_v36  ;;  %v1650_v28 = vmax.f32 %v1648_v61, %v1649_v35 }
 0x196   : > { %v2683_v23 = vpop.eup %2682  ;;  %v3685_v6 = vadd.f32 1.0, %v2681_v19  ;;  %v1515_v14 = vrot.slane %v1514_v63, 2  ;;  %v3726_v19 = vpop.f32.mrf.mxu3 }
 0x197   : > { %v1404_v38 = vsel %vm1403_vm2, %v2677_v24, %v1400_v4  ;;  %v1552_v34 = vmul.f32 %v2683_v23, %v3670_v18  ;;  %vm1557_vm4 = vweird.f32 %v2683_v23  ;;  %v3711_v24 = vpop.f32.mrf.mxu0  ;;  %v1654_v18 = vrot.slane %v1653_v10, 4 }
 0x198   : > { %v1409_v9 = vsel %vm1406_vm3, %v1408_v5, %v1404_v38  ;;  %2686 = vrcp.f32 %v3685_v6  ;;  %v2685_v26 = vpop.eup %2684  ;;  %v1516_v37 = vadd.f32 %v1515_v14, %v1514_v63  ;;  %vm1558_vm8 = vmor %vm1556_vm5, %vm1557_vm4  ;;  %v1839_v50 = vmax.f32 %v3683_v16, %v3711_v24 }
 0x199   : > { %v1414_v21 = vmul.f32 %v1409_v9, %v3601_v27  ;;  %v1553_v58 = vsub.f32 1.0, %v1552_v34  ;;  %v1524_v42 = vmul.f32 0.6931472, %v2685_v26  ;;  %2688 = vpow2.f32 %v1675_v56  ;;  %v3730_v0 = vpop.f32.mrf.mxu2 }
 0x19a   : > { %v1517_v48 = vrot.slane %v1516_v37, 1  ;;  %2690 = vpow2.f32 %v1683_v59  ;;  %v1575_v4 = vand.u32 2147483647, %v3685_v6  ;;  %v1577_v63 = vand.u32 2147483648, %v3685_v6 }
 0x19b   : > { %v1418_v13 = vmul.f32 0.16666667, %v1414_v21  ;;  %v1554_v60 = vmul.f32 %v2683_v23, %v1553_v58  ;;  %v3708_v27 = vadd.f32 %v1524_v42, %v3557_v31  ;;  %v1655_v17 = vmax.f32 %v1653_v10, %v1654_v18  ;;  %v3736_v10 = vpop.f32.mrf.mxu1 }
 0x19c   : > { %v1518_v55 = vadd.f32 %v1517_v48, %v1516_v37  ;;  %vm1571_vm11 = vweird.f32 %v3685_v6  ;;  %vm1576_vm6 = vcmp.eq.f32.partialorder %v1575_v4, 8.507059e+37  ;;  %v1578_v9 = vor.u32 1.1754944e-38, %v1577_v63 }
 0x19d   : > { %v1422_v1 = vsub.f32 %v1418_v13, %v3166_v57  ;;  %v1555_v7 = vadd.f32 %v2683_v23, %v1554_v60  ;;  %v1533_v41 = vadd.f32 3.0, %v3708_v27  ;;  %v1651_v43 = vrot.slane %v1650_v28, 1 }
 0x19e   : > { %v2687_v15 = vpop.eup %2686  ;;  %2692 = vlog2.f32 %v1518_v55  ;;  %v1656_v46 = vrot.slane %v1655_v17, 2  ;;  %v1660_v59 = vmax.f32 %v3692_v47, %v3726_v19  ;;  %v3748_v55 = vpop.f32.mrf.mxu3 }
 0x19f   : > { %v2438_v12 = vclamps-f32 %v1422_v1, 1.0  ;;  %v1559_v62 = vsel %vm1558_vm8, %v2683_v23, %v1555_v7  ;;  %v1567_v31 = vmul.f32 %v2687_v15, %v3685_v6  ;;  %v2441_v51 = vmul.f32 -1.442695, %v1533_v41  ;;  %v2689_v29 = vpop.eup %2688 }
 0x1a0   : > { %v1564_v54 = vsel %vm3703_vm7, %v1563_v45, %v1559_v62  ;;  %vm1572_vm10 = vweird.f32 %v2687_v15  ;;  %v2691_v38 = vpop.eup %2690  ;;  %v3746_v53 = vmax.f32 %v1650_v28, %v1651_v43  ;;  %v1657_v1 = vmax.f32 %v1655_v17, %v1656_v46 }
 0x1a1   : > { %v3723_v39 = vsel %vm2241_vm9, %v3614_v49, %v2438_v12  ;;  %v1611_v52 = vmul.f32 %v1564_v54, %v3636_v25  ;;  %v1568_v36 = vsub.f32 1.0, %v1567_v31  ;;  %2694 = vpow2.f32 %v2441_v51  ;;  %vm1573_vm12 = vmor %vm1571_vm11, %vm1572_vm10  ;;  %v3754_v12 = vpop.f32.mrf.mxu2 }
 0x1a2   : > { %v1840_v49 = vrot.slane %v1839_v50, 4  ;;  %vm2246_vm9 = vcmask 1043456   ;;  %v1691_v56 = vadd.f32 %v2691_v38, %v2689_v29  ;;  %v1661_v41 = vrot.slane %v1660_v59, 4 }
 0x1a3   : > { %v1615_v23 = vmul.f32 0.16666667, %v1611_v52  ;;  %v1569_v5 = vmul.f32 %v2687_v15, %v1568_v36  ;;  %v1668_v31 = vsub.f32 %v3646_v33, %v3746_v53  ;;  %v1672_v4 = vsub.f32 %v3672_v44, %v3746_v53 }
 0x1a4   : > { %v2693_v14 = vpop.eup %2692  ;;  %v1841_v37 = vmax.f32 %v1839_v50, %v1840_v49  ;;  %v1692_v45 = vrot.slane %v1691_v56, 4  ;;  %v1662_v52 = vmax.f32 %v1660_v59, %v1661_v41  ;;  %v1853_v17 = vmax.f32 %v3730_v0, %v3754_v12 }
 0x1a5   : > { %v1619_v25 = vsub.f32 %v1615_v23, %v3166_v57  ;;  %v1570_v34 = vadd.f32 %v2687_v15, %v1569_v5  ;;  %v1526_v58 = vmul.f32 0.6931472, %v2693_v14  ;;  %v1677_v29 = vmul.f32 1.442695, %v1668_v31 }
 0x1a6   : > { %v1842_v35 = vrot.slane %v1841_v37, 2  ;;  %v1693_v50 = vadd.f32 %v1692_v45, %v1691_v56  ;;  %v1663_v14 = vrot.slane %v1662_v52, 2  ;;  %v1854_v43 = vrot.slane %v1853_v17, 4  ;;  %v3772_v46 = vpop.f32.mrf.mxu3 }
 0x1a7   : > { %v2443_v26 = vclamps-f32 %v1619_v25, 1.0  ;;  %v1574_v21 = vsel %vm1573_vm12, %v2687_v15, %v1570_v34  ;;  %v2695_v61 = vpop.eup %2694  ;;  %v3744_v48 = vadd.f32 %v1526_v58, %v3629_v8  ;;  %v1846_v15 = vmax.f32 %v3714_v11, %v3736_v10 }
 0x1a8   : > { %v1579_v42 = vsel %vm1576_vm6, %v1578_v9, %v1574_v21  ;;  %v1549_v60 = vadd.f32 1.0, %v2695_v61  ;;  %v1658_v8 = vrot.slane %v1657_v1, 1  ;;  %v1843_v54 = vmax.f32 %v1841_v37, %v1842_v35 }
 0x1a9   : > { %v3740_v6 = vsel %vm2246_vm9, %v3650_v40, %v2443_v26  ;;  %v1612_v13 = vmul.f32 %v1579_v42, %v3660_v22  ;;  %v1534_v40 = vadd.f32 3.0, %v3744_v48  ;;  %v1847_v51 = vrot.slane %v1846_v15, 4 }
 0x1aa   : > { %2696 = vrcp.f32 %v1549_v60  ;;  %v1844_v63 = vrot.slane %v1843_v54, 1  ;;  %v3766_v5 = vmax.f32 %v1657_v1, %v1658_v8  ;;  %v1592_v25 = vand.u32 2147483648, %v1549_v60 }
 0x1ab   : > { %v1616_v7 = vmul.f32 0.16666667, %v1612_v13  ;;  %v2442_v18 = vmul.f32 -1.442695, %v1534_v40  ;;  %v1848_v33 = vmax.f32 %v1846_v15, %v1847_v51  ;;  %v1694_v34 = vrot.slane %v1693_v50, 2  ;;  %v3785_v15 = vpop.f32.mrf.mxu0 }
 0x1ac   : > { %v3768_v49 = vmax.f32 %v1843_v54, %v1844_v63  ;;  %v1590_v58 = vand.u32 2147483647, %v1549_v60  ;;  %v1669_v37 = vsub.f32 %v3668_v20, %v3766_v5  ;;  %vm1586_vm14 = vweird.f32 %v1549_v60 }
 0x1ad   : > { %v1620_v22 = vsub.f32 %v1616_v7, %v3166_v57  ;;  %2698 = vpow2.f32 %v2442_v18  ;;  %v1849_v44 = vrot.slane %v1848_v33, 2  ;;  %v1673_v42 = vsub.f32 %v3694_v2, %v3766_v5 }
 0x1ae   : > { %v1867_v9 = vsub.f32 %v3683_v16, %v3768_v49  ;;  %2700 = vpow2.f32 %v1677_v29  ;;  %v1593_v16 = vor.u32 1.1754944e-38, %v1592_v25  ;;  %v1871_v59 = vsub.f32 %v3711_v24, %v3768_v49 }
 0x1af   : > { %v2444_v62 = vclamps-f32 %v1620_v22, 1.0  ;;  %v1860_v13 = vmax.f32 %v3748_v55, %v3772_v46  ;;  %v1850_v20 = vmax.f32 %v1848_v33, %v1849_v44  ;;  %vm1591_vm0 = vcmp.eq.f32.partialorder %v1590_v58, 8.507059e+37 }
 0x1b0   : > { %v2697_v36 = vpop.eup %2696  ;;  %v1875_v1 = vmul.f32 1.442695, %v1867_v9  ;;  %v1679_v35 = vmul.f32 1.442695, %v1669_v37  ;;  %v1687_v45 = vmul.f32 1.442695, %v1673_v42  ;;  %v1664_v24 = vmax.f32 %v1662_v52, %v1663_v14 }
 0x1b1   : > { %v3760_v28 = vsel %vm2246_vm9, %v3665_v32, %v2444_v62  ;;  %v1582_v23 = vmul.f32 %v2697_v36, %v1549_v60  ;;  %v1685_v32 = vmul.f32 1.442695, %v1672_v4  ;;  %vm1587_vm13 = vweird.f32 %v2697_v36 }
 0x1b2   : > { %vm1588_vm15 = vmor %vm1586_vm14, %vm1587_vm13  ;;  %v1855_v60 = vmax.f32 %v1853_v17, %v1854_v43  ;;  %v1861_v41 = vrot.slane %v1860_v13, 4  ;;  %v1883_v18 = vmul.f32 1.442695, %v1871_v59  ;;  %v1851_v8 = vrot.slane %v1850_v20, 1 }
 0x1b3   : > { %v1583_v38 = vsub.f32 1.0, %v1582_v23  ;;  %v2699_v26 = vpop.eup %2698  ;;  %v1695_v54 = vadd.f32 %v1694_v34, %v1693_v50  ;;  %v1665_v17 = vrot.slane %v1664_v24, 1  ;;  %vm2251_vm14 = vcmask 1044480  }
 0x1b4   : > { %v3776_v61 = vadd.f32 1.0, %v2699_v26  ;;  %v2701_v22 = vpop.eup %2700  ;;  %v1856_v62 = vrot.slane %v1855_v60, 2  ;;  %v1862_v52 = vmax.f32 %v1860_v13, %v1861_v41 }
 0x1b5   : > { %v1584_v21 = vmul.f32 %v2697_v36, %v1583_v38  ;;  %v1696_v25 = vrot.slane %v1695_v54, 1  ;;  %v3804_v58 = vmax.f32 %v1664_v24, %v1665_v17 }
 0x1b6   : > { %2702 = vrcp.f32 %v3776_v61  ;;  %v1857_v50 = vmax.f32 %v1855_v60, %v1856_v62  ;;  %v1605_v14 = vand.u32 2147483647, %v3776_v61  ;;  %vm1601_vm2 = vweird.f32 %v3776_v61 }
 0x1b7   : > { %v1585_v56 = vadd.f32 %v2697_v36, %v1584_v21  ;;  %2704 = vpow2.f32 %v1685_v32  ;;  %v1607_v32 = vand.u32 2147483648, %v3776_v61  ;;  %v3802_v21 = vpop.f32.mrf.mxu0  ;;  %v1697_v13 = vadd.f32 %v1696_v25, %v1695_v54 }
 0x1b8   : > { %2706 = vpow2.f32 %v1875_v1  ;;  %v2039_v60 = vmax.f32 %v3785_v15, %v3802_v21  ;;  %vm1606_vm4 = vcmp.eq.f32.partialorder %v1605_v14, 8.507059e+37  ;;  %v3823_v14 = vpop.f32.mrf.mxu1 }
 0x1b9   : > { %v1589_v7 = vsel %vm1588_vm15, %v2697_v36, %v1585_v56  ;;  %2708 = vpow2.f32 %v1679_v35  ;;  %v3788_v36 = vmax.f32 %v1850_v20, %v1851_v8  ;;  %v1858_v56 = vrot.slane %v1857_v50, 1 }
 0x1ba   : > { %v1594_v2 = vsel %vm1591_vm0, %v1593_v16, %v1589_v7  ;;  %2710 = vpow2.f32 %v1883_v18  ;;  %v2040_v8 = vrot.slane %v2039_v60, 4 }
 0x1bb   : > { %v1613_v40 = vmul.f32 %v1594_v2, %v3708_v27  ;;  %2712 = vpow2.f32 %v1687_v45  ;;  %v1868_v23 = vsub.f32 %v3714_v11, %v3788_v36  ;;  %v1872_v33 = vsub.f32 %v3736_v10, %v3788_v36 }
 0x1bc   : > { %v2703_v51 = vpop.eup %2702  ;;  %v1863_v11 = vrot.slane %v1862_v52, 2  ;;  %v3809_v24 = vmax.f32 %v1857_v50, %v1858_v56  ;;  %v2041_v50 = vmax.f32 %v2039_v60, %v2040_v8 }
 0x1bd   : > { %v1617_v31 = vmul.f32 0.16666667, %v1613_v40  ;;  %v2705_v4 = vpop.eup %2704  ;;  %v1597_v27 = vmul.f32 %v2703_v51, %v3776_v61  ;;  %vm1602_vm1 = vweird.f32 %v2703_v51  ;;  %v1877_v37 = vmul.f32 1.442695, %v1868_v23 }
 0x1be   : > { %v2707_v34 = vpop.eup %2706  ;;  %v1698_v9 = vadd.f32 %v2705_v4, %v2701_v22  ;;  %v1885_v42 = vmul.f32 1.442695, %v1872_v33  ;;  %vm1603_vm3 = vmor %vm1601_vm2, %vm1602_vm1  ;;  %v1864_v2 = vmax.f32 %v1862_v52, %v1863_v11  ;;  %v1670_v22 = vsub.f32 %v3692_v47, %v3804_v58 }
 0x1bf   : > { %v1621_v63 = vsub.f32 %v1617_v31, %v3166_v57  ;;  %v1598_v38 = vsub.f32 1.0, %v1597_v27  ;;  %v2709_v44 = vpop.eup %2708  ;;  %2714 = vpow2.f32 %v1877_v37  ;;  %v1674_v31 = vsub.f32 %v3726_v19, %v3804_v58 }
 0x1c0   : > { %v2711_v10 = vpop.eup %2710  ;;  %v1699_v20 = vrot.slane %v1698_v9, 4  ;;  %2716 = vpow2.f32 %v1885_v42  ;;  %v1865_v54 = vrot.slane %v1864_v2, 1  ;;  %v1869_v27 = vsub.f32 %v3730_v0, %v3809_v24 }
 0x1c1   : > { %v2445_v29 = vclamps-f32 %v1621_v63, 1.0  ;;  %v1599_v26 = vmul.f32 %v2703_v51, %v1598_v38  ;;  %v2713_v16 = vpop.eup %2712  ;;  %v1891_v1 = vadd.f32 %v2711_v10, %v2707_v34  ;;  %2718 = vlog2.f32 %v1697_v13 }
 0x1c2   : > { %v1705_v45 = vadd.f32 %v2713_v16, %v2709_v44  ;;  %v1700_v41 = vadd.f32 %v1699_v20, %v1698_v9  ;;  %v1873_v52 = vsub.f32 %v3754_v12, %v3809_v24  ;;  %v1681_v23 = vmul.f32 1.442695, %v1670_v22 }
 0x1c3   : > { %v3800_v43 = vsel %vm2246_vm9, %v3676_v3, %v2445_v29  ;;  %v1600_v59 = vadd.f32 %v2703_v51, %v1599_v26  ;;  %v1608_v3 = vor.u32 1.1754944e-38, %v1607_v32  ;;  %v1892_v35 = vrot.slane %v1891_v1, 4 }
 0x1c4   : > { %v1706_v4 = vrot.slane %v1705_v45, 4  ;;  %v1701_v47 = vrot.slane %v1700_v41, 2  ;;  %v1689_v19 = vmul.f32 1.442695, %v1674_v31  ;;  %v3821_v34 = vmax.f32 %v1864_v2, %v1865_v54 }
 0x1c5   : > { %v1604_v7 = vsel %vm1603_vm3, %v2703_v51, %v1600_v59  ;;  %v1893_v18 = vadd.f32 %v1892_v35, %v1891_v1  ;;  %v2715_v51 = vpop.eup %2714  ;;  %v1879_v0 = vmul.f32 1.442695, %v1869_v27  ;;  %v1887_v26 = vmul.f32 1.442695, %v1873_v52 }
 0x1c6   : > { %v1609_v40 = vsel %vm1606_vm4, %v1608_v3, %v1604_v7  ;;  %v2717_v17 = vpop.eup %2716  ;;  %v1707_v32 = vadd.f32 %v1706_v4, %v1705_v45  ;;  %v1702_v11 = vadd.f32 %v1701_v47, %v1700_v41  ;;  %2720 = vpow2.f32 %v1681_v23  ;;  %v3836_v45 = vpop.f32.mrf.mxu1 }
 0x1c7   : > { %v1614_v61 = vmul.f32 %v1609_v40, %v3744_v48  ;;  %v1894_v63 = vrot.slane %v1893_v18, 2  ;;  %v2719_v29 = vpop.eup %2718  ;;  %v1898_v25 = vadd.f32 %v2717_v17, %v2715_v51  ;;  %v2042_v10 = vrot.slane %v2041_v50, 2 }
 0x1c8   : > { %v1720_v37 = vmul.f32 0.6931472, %v2719_v29  ;;  %2722 = vpow2.f32 %v1689_v19  ;;  %v1870_v42 = vsub.f32 %v3748_v55, %v3821_v34  ;;  %v1874_v16 = vsub.f32 %v3772_v46, %v3821_v34 }
 0x1c9   : > { %v1618_v62 = vmul.f32 0.16666667, %v1614_v61  ;;  %v1895_v33 = vadd.f32 %v1894_v63, %v1893_v18  ;;  %v1899_v44 = vrot.slane %v1898_v25, 4  ;;  %2724 = vpow2.f32 %v1879_v0 }
 0x1ca   : > { %v1708_v59 = vrot.slane %v1707_v32, 2  ;;  %2726 = vpow2.f32 %v1887_v26  ;;  %v2043_v3 = vmax.f32 %v2041_v50, %v2042_v10  ;;  %v3834_v20 = vadd.f32 %v1720_v37, %v3681_v30  ;;  %v3839_v30 = vpop.f32.mrf.mxu2 }
 0x1cb   : > { %v1622_v48 = vsub.f32 %v1618_v62, %v3166_v57  ;;  %v1896_v12 = vrot.slane %v1895_v33, 1  ;;  %v1900_v56 = vadd.f32 %v1899_v44, %v1898_v25  ;;  %v1881_v60 = vmul.f32 1.442695, %v1870_v42 }
 0x1cc   : > { %v2721_v7 = vpop.eup %2720  ;;  %v1889_v35 = vmul.f32 1.442695, %v1874_v16  ;;  %v2044_v2 = vrot.slane %v2043_v3, 1  ;;  %v1709_v55 = vadd.f32 %v1708_v59, %v1707_v32  ;;  %v1731_v18 = vadd.f32 3.0, %v3834_v20 }
 0x1cd   : > { %v2446_v38 = vclamps-f32 %v1622_v48, 1.0  ;;  %v1897_v13 = vadd.f32 %v1896_v12, %v1895_v33  ;;  %v1901_v1 = vrot.slane %v1900_v56, 2  ;;  %v2046_v31 = vmax.f32 %v3823_v14, %v3836_v45 }
 0x1ce   : > { %v2723_v40 = vpop.eup %2722  ;;  %v3841_v62 = vmax.f32 %v2043_v3, %v2044_v2  ;;  %v1710_v54 = vrot.slane %v1709_v55, 1  ;;  %v2447_v48 = vmul.f32 -1.442695, %v1731_v18 }
 0x1cf   : > { %v3827_v9 = vsel %vm2246_vm9, %v3723_v39, %v2446_v38  ;;  %v1703_v39 = vrot.slane %v1702_v11, 1  ;;  %2728 = vlog2.f32 %v1897_v13  ;;  %v2725_v61 = vpop.eup %2724  ;;  %v1902_v41 = vadd.f32 %v1901_v1, %v1900_v56 }
 0x1d0   : > { %v2727_v22 = vpop.eup %2726  ;;  %2730 = vpow2.f32 %v1881_v60  ;;  %v1712_v8 = vadd.f32 %v2723_v40, %v2721_v7  ;;  %v2067_v27 = vsub.f32 %v3785_v15, %v3841_v62  ;;  %v2047_v17 = vrot.slane %v2046_v31, 4 }
 0x1d1   : > { %v1704_v46 = vadd.f32 %v1703_v39, %v1702_v11  ;;  %2732 = vpow2.f32 %v1889_v35  ;;  %v1903_v51 = vrot.slane %v1902_v41, 1  ;;  %v1905_v4 = vadd.f32 %v2727_v22, %v2725_v61 }
 0x1d2   : > { %v1713_v52 = vrot.slane %v1712_v8, 4  ;;  %v1711_v23 = vadd.f32 %v1710_v54, %v1709_v55  ;;  %v2071_v19 = vsub.f32 %v3802_v21, %v3841_v62  ;;  %v2075_v25 = vmul.f32 1.442695, %v2067_v27  ;;  %v3852_v11 = vpop.f32.mrf.mxu2 }
 0x1d3   : > { %2734 = vlog2.f32 %v1704_v46  ;;  %v1904_v29 = vadd.f32 %v1903_v51, %v1902_v41  ;;  %v1906_v38 = vrot.slane %v1905_v4, 4  ;;  %v2048_v12 = vmax.f32 %v2046_v31, %v2047_v17 }
 0x1d4   : > { %2736 = vpow2.f32 %v2447_v48  ;;  %v1714_v0 = vadd.f32 %v1713_v52, %v1712_v8  ;;  %v2083_v37 = vmul.f32 1.442695, %v2071_v19  ;;  %v2053_v16 = vmax.f32 %v3839_v30, %v3852_v11 }
 0x1d5   : > { %v2729_v63 = vpop.eup %2728  ;;  %2738 = vlog2.f32 %v1711_v23  ;;  %v1907_v26 = vadd.f32 %v1906_v38, %v1905_v4  ;;  %v2049_v56 = vrot.slane %v2048_v12, 2 }
 0x1d6   : > { %v2731_v47 = vpop.eup %2730  ;;  %v1920_v50 = vmul.f32 0.6931472, %v2729_v63  ;;  %2740 = vlog2.f32 %v1904_v29  ;;  %v1715_v42 = vrot.slane %v1714_v0, 2  ;;  %v2054_v55 = vrot.slane %v2053_v16, 4 }
 0x1d7   : > { %v2733_v33 = vpop.eup %2732  ;;  %2742 = vpow2.f32 %v2075_v25  ;;  %v1908_v39 = vrot.slane %v1907_v26, 2  ;;  %v2050_v60 = vmax.f32 %v2048_v12, %v2049_v56 }
 0x1d8   : > { %v1912_v44 = vadd.f32 %v2733_v33, %v2731_v47  ;;  %v3850_v15 = vadd.f32 %v1920_v50, %v3768_v49  ;;  %2744 = vpow2.f32 %v2083_v37  ;;  %v3857_v49 = vpop.f32.mrf.mxu3  ;;  %v1716_v35 = vadd.f32 %v1715_v42, %v1714_v0 }
 0x1d9   : > { %v2735_v32 = vpop.eup %2734  ;;  %v1909_v41 = vadd.f32 %v1908_v39, %v1907_v26  ;;  %v2051_v8 = vrot.slane %v2050_v60, 1  ;;  %v2055_v27 = vmax.f32 %v2053_v16, %v2054_v55 }
 0x1da   : > { %v1722_v10 = vmul.f32 0.6931472, %v2735_v32  ;;  %v1913_v21 = vrot.slane %v1912_v44, 4  ;;  %v2737_v59 = vpop.eup %2736  ;;  %v1931_v13 = vadd.f32 3.0, %v3850_v15  ;;  %v1717_v54 = vrot.slane %v1716_v35, 1 }
 0x1db   : > { %v2739_v1 = vpop.eup %2738  ;;  %v3863_v31 = vadd.f32 1.0, %v2737_v59  ;;  %v3865_v63 = vmax.f32 %v2050_v60, %v2051_v8  ;;  %v1910_v52 = vrot.slane %v1909_v41, 1  ;;  %v2056_v32 = vrot.slane %v2055_v27, 2 }
 0x1dc   : > { %v3860_v3 = vadd.f32 %v1722_v10, %v3746_v53  ;;  %v2741_v7 = vpop.eup %2740  ;;  %v1914_v40 = vadd.f32 %v1913_v21, %v1912_v44  ;;  %v1724_v61 = vmul.f32 0.6931472, %v2739_v1  ;;  %v2455_v46 = vmul.f32 -1.442695, %v1931_v13 }
 0x1dd   : > { %v2743_v2 = vpop.eup %2742  ;;  %v1922_v51 = vmul.f32 0.6931472, %v2741_v7  ;;  %v2068_v23 = vsub.f32 %v3823_v14, %v3865_v63  ;;  %v2072_v33 = vsub.f32 %v3836_v45, %v3865_v63  ;;  %v1718_v50 = vadd.f32 %v1717_v54, %v1716_v35 }
 0x1de   : > { %v2745_v22 = vpop.eup %2744  ;;  %v1732_v18 = vadd.f32 3.0, %v3860_v3  ;;  %v1915_v53 = vrot.slane %v1914_v40, 2  ;;  %v3868_v48 = vadd.f32 %v1724_v61, %v3766_v5  ;;  %2746 = vpow2.f32 %v2455_v46 }
 0x1df   : > { %v2091_v4 = vadd.f32 %v2745_v22, %v2743_v2  ;;  %2748 = vrcp.f32 %v3863_v31  ;;  %v3876_v29 = vadd.f32 %v1922_v51, %v3788_v36  ;;  %v2077_v25 = vmul.f32 1.442695, %v2068_v23 }
 0x1e0   : > { %v2448_v47 = vmul.f32 -1.442695, %v1732_v18  ;;  %v3878_v38 = vpop.f32.mrf.mxu3  ;;  %v1916_v5 = vadd.f32 %v1915_v53, %v1914_v40  ;;  %v1733_v0 = vadd.f32 3.0, %v3868_v48  ;;  %v1911_v12 = vadd.f32 %v1910_v52, %v1909_v41 }
 0x1e1   : > { %v2092_v17 = vrot.slane %v2091_v4, 4  ;;  %v2085_v14 = vmul.f32 1.442695, %v2072_v33  ;;  %v2060_v45 = vmax.f32 %v3857_v49, %v3878_v38  ;;  %v1932_v26 = vadd.f32 3.0, %v3876_v29 }
 0x1e2   : > { %2750 = vpow2.f32 %v2448_v47  ;;  %v1917_v10 = vrot.slane %v1916_v5, 1  ;;  %v2057_v37 = vmax.f32 %v2055_v27, %v2056_v32  ;;  %v2449_v56 = vmul.f32 -1.442695, %v1733_v0 }
 0x1e3   : > { %v2093_v19 = vadd.f32 %v2092_v17, %v2091_v4  ;;  %2752 = vlog2.f32 %v1718_v50  ;;  %v2061_v13 = vrot.slane %v2060_v45, 4  ;;  %v2456_v39 = vmul.f32 -1.442695, %v1932_v26 }
 0x1e4   : > { %v2747_v44 = vpop.eup %2746  ;;  %2754 = vpow2.f32 %v2077_v25  ;;  %v2058_v59 = vrot.slane %v2057_v37, 1  ;;  %v1918_v7 = vadd.f32 %v1917_v10, %v1916_v5  ;;  %v1760_v32 = vand.u32 2147483647, %v3863_v31 }
 0x1e5   : > { %v2094_v36 = vrot.slane %v2093_v19, 2  ;;  %v3884_v42 = vpop.eup %2748  ;;  %2756 = vlog2.f32 %v1911_v12  ;;  %v3886_v16 = vadd.f32 1.0, %v2747_v44  ;;  %v2062_v2 = vmax.f32 %v2060_v45, %v2061_v13 }
 0x1e6   : > { %2758 = vpow2.f32 %v2085_v14  ;;  %v3888_v35 = vmax.f32 %v2057_v37, %v2058_v59  ;;  %v1752_v55 = vmul.f32 %v3884_v42, %v3863_v31  ;;  %vm1757_vm5 = vweird.f32 %v3884_v42 }
 0x1e7   : > { %v2095_v21 = vadd.f32 %v2094_v36, %v2093_v19  ;;  %2760 = vpow2.f32 %v2449_v56  ;;  %v2063_v54 = vrot.slane %v2062_v2, 2  ;;  %vm1756_vm7 = vweird.f32 %v3863_v31 }
 0x1e8   : > { %v2751_v60 = vpop.eup %2750  ;;  %2762 = vrcp.f32 %v3886_v16  ;;  %v2069_v22 = vsub.f32 %v3839_v30, %v3888_v35  ;;  %v2073_v8 = vsub.f32 %v3852_v11, %v3888_v35  ;;  %v1753_v51 = vsub.f32 1.0, %v1752_v55  ;;  %vm3932_vm8 = vmor %vm1756_vm7, %vm1757_vm5 }
 0x1e9   : > { %v2096_v1 = vrot.slane %v2095_v21, 1  ;;  %v2753_v40 = vpop.eup %2752  ;;  %2764 = vpow2.f32 %v2456_v39  ;;  %v2064_v27 = vmax.f32 %v2062_v2, %v2063_v54  ;;  %v3897_v17 = vadd.f32 1.0, %v2751_v60 }
 0x1ea   : > { %v2755_v61 = vpop.eup %2754  ;;  %2766 = vlog2.f32 %v1918_v7  ;;  %v2079_v53 = vmul.f32 1.442695, %v2069_v22  ;;  %v1726_v47 = vmul.f32 0.6931472, %v2753_v40  ;;  %v2087_v30 = vmul.f32 1.442695, %v2073_v8 }
 0x1eb   : > { %v2757_v46 = vpop.eup %2756  ;;  %v2097_v41 = vadd.f32 %v2096_v1, %v2095_v21  ;;  %v2065_v5 = vrot.slane %v2064_v27, 1  ;;  %v1754_v25 = vmul.f32 %v3884_v42, %v1753_v51  ;;  %v1762_v39 = vand.u32 2147483648, %v3863_v31 }
 0x1ec   : > { %v2759_v18 = vpop.eup %2758  ;;  %v1924_v23 = vmul.f32 0.6931472, %v2757_v46  ;;  %v3906_v12 = vadd.f32 %v1726_v47, %v3804_v58  ;;  %vm3943_vm10 = vcmp.eq.f32.partialorder %v1760_v32, 8.507059e+37  ;;  %vm1956_vm11 = vweird.f32 %v3886_v16 }
 0x1ed   : > { %2768 = vlog2.f32 %v2097_v41  ;;  %v2098_v4 = vadd.f32 %v2759_v18, %v2755_v61  ;;  %v2761_v52 = vpop.eup %2760  ;;  %v3913_v36 = vmax.f32 %v2064_v27, %v2065_v5  ;;  %v1755_v10 = vadd.f32 %v3884_v42, %v1754_v25 }
 0x1ee   : > { %v3899_v50 = vpop.eup %2762  ;;  %2770 = vpow2.f32 %v2079_v53  ;;  %v3909_v14 = vadd.f32 %v1924_v23, %v3809_v24  ;;  %v3916_v37 = vadd.f32 1.0, %v2761_v52  ;;  %v1763_v54 = vor.u32 1.1754944e-38, %v1762_v39 }
 0x1ef   : > { %v2099_v33 = vrot.slane %v2098_v4, 4  ;;  %v2765_v19 = vpop.eup %2764  ;;  %2772 = vrcp.f32 %v3897_v17  ;;  %v1952_v44 = vmul.f32 %v3899_v50, %v3886_v16  ;;  %v2070_v24 = vsub.f32 %v3857_v49, %v3913_v36 }
 0x1f0   : > { %v2767_v11 = vpop.eup %2766  ;;  %2774 = vpow2.f32 %v2087_v30  ;;  %v3918_v56 = vadd.f32 1.0, %v2765_v19  ;;  %v2074_v13 = vsub.f32 %v3878_v38, %v3913_v36  ;;  %v1933_v1 = vadd.f32 3.0, %v3909_v14 }
 0x1f1   : > { %v2100_v45 = vadd.f32 %v2099_v33, %v2098_v4  ;;  %v1926_v58 = vmul.f32 0.6931472, %v2767_v11  ;;  %v1953_v49 = vsub.f32 1.0, %v1952_v44  ;;  %v2081_v38 = vmul.f32 1.442695, %v2070_v24 }
 0x1f2   : > { %v1759_v31 = vsel %vm3932_vm8, %v3884_v42, %v1755_v10  ;;  %2776 = vrcp.f32 %v3916_v37  ;;  %v2089_v46 = vmul.f32 1.442695, %v2074_v13  ;;  %v2457_v51 = vmul.f32 -1.442695, %v1933_v1 }
 0x1f3   : > { %v2769_v0 = vpop.eup %2768  ;;  %v2101_v21 = vrot.slane %v2100_v45, 2  ;;  %2778 = vrcp.f32 %v3918_v56  ;;  %v3950_v22 = vadd.f32 %v1926_v58, %v3821_v34  ;;  %v1954_v53 = vmul.f32 %v3899_v50, %v1953_v49 }
 0x1f4   : > { %v2120_v26 = vmul.f32 0.6931472, %v2769_v0  ;;  %v2771_v7 = vpop.eup %2770  ;;  %2780 = vpow2.f32 %v2081_v38  ;;  %v1764_v52 = vsel %vm3943_vm10, %v1763_v54, %v1759_v31  ;;  %vm1957_vm9 = vweird.f32 %v3899_v50 }
 0x1f5   : > { %v2102_v60 = vadd.f32 %v2101_v21, %v2100_v45  ;;  %v3938_v55 = vpop.eup %2772  ;;  %v1934_v34 = vadd.f32 3.0, %v3950_v22  ;;  %v1811_v19 = vmul.f32 %v1764_v52, %v3834_v20  ;;  %v1955_v25 = vadd.f32 %v3899_v50, %v1954_v53  ;;  %vm3968_vm12 = vmor %vm1956_vm11, %vm1957_vm9 }
 0x1f6   : > { %v3921_v59 = vadd.f32 %v2120_v26, %v3841_v62  ;;  %v1734_v62 = vadd.f32 3.0, %v3906_v12  ;;  %v2775_v41 = vpop.eup %2774  ;;  %v1767_v47 = vmul.f32 %v3938_v55, %v3897_v17  ;;  %v1960_v0 = vand.u32 2147483647, %v3886_v16 }
 0x1f7   : > { %v2103_v8 = vrot.slane %v2102_v60, 1  ;;  %v2105_v4 = vadd.f32 %v2775_v41, %v2771_v7  ;;  %v1962_v45 = vand.u32 2147483648, %v3886_v16  ;;  %v2458_v10 = vmul.f32 -1.442695, %v1934_v34 }
 0x1f8   : > { %v2131_v40 = vadd.f32 3.0, %v3921_v59  ;;  %v2450_v42 = vmul.f32 -1.442695, %v1734_v62  ;;  %v3958_v33 = vpop.eup %2776  ;;  %v1768_v32 = vsub.f32 1.0, %v1767_v47  ;;  %v1815_v39 = vmul.f32 0.16666667, %v1811_v19 }
 0x1f9   : > { %v2104_v27 = vadd.f32 %v2103_v8, %v2102_v60  ;;  %v2106_v23 = vrot.slane %v2105_v4, 4  ;;  %v3960_v5 = vpop.eup %2778  ;;  %vm1771_vm6 = vweird.f32 %v3897_v17  ;;  %v1959_v1 = vsel %vm3968_vm12, %v3899_v50, %v1955_v25 }
 0x1fa   : > { %v2463_v18 = vmul.f32 -1.442695, %v2131_v40  ;;  %v2781_v11 = vpop.eup %2780  ;;  %v1769_v16 = vmul.f32 %v3938_v55, %v1768_v32  ;;  %vm1961_vm13 = vcmp.eq.f32.partialorder %v1960_v0, 8.507059e+37  ;;  %v1963_v2 = vor.u32 1.1754944e-38, %v1962_v45 }
 0x1fb   : > { %v2107_v30 = vadd.f32 %v2106_v23, %v2105_v4  ;;  %v1775_v31 = vand.u32 2147483647, %v3897_v17  ;;  %v1777_v61 = vand.u32 2147483648, %v3897_v17  ;;  %v1967_v50 = vmul.f32 %v3960_v5, %v3918_v56 }
 0x1fc   : > { %2782 = vpow2.f32 %v2463_v18  ;;  %v1770_v4 = vadd.f32 %v3938_v55, %v1769_v16  ;;  %vm1772_vm15 = vweird.f32 %v3938_v55  ;;  %v1782_v53 = vmul.f32 %v3958_v33, %v3916_v37 }
 0x1fd   : > { %2784 = vpow2.f32 %v2089_v46  ;;  %v2108_v44 = vrot.slane %v2107_v30, 2  ;;  %v1964_v46 = vsel %vm1961_vm13, %v1963_v2, %v1959_v1  ;;  %vm3997_vm0 = vcmp.eq.f32.partialorder %v1775_v31, 8.507059e+37  ;;  %vm4004_vm1 = vmor %vm1771_vm6, %vm1772_vm15 }
 0x1fe   : > { %2786 = vlog2.f32 %v2104_v27  ;;  %v1778_v23 = vor.u32 1.1754944e-38, %v1777_v61  ;;  %v2011_v34 = vmul.f32 %v1964_v46, %v3850_v15  ;;  %v1790_v15 = vand.u32 2147483647, %v3916_v37 }
 0x1ff   : > { %2788 = vpow2.f32 %v2457_v51  ;;  %v2109_v24 = vadd.f32 %v2108_v44, %v2107_v30  ;;  %v1819_v51 = vsub.f32 %v1815_v39, %v3166_v57  ;;  %v1968_v30 = vsub.f32 1.0, %v1967_v50 }
 0x200   : > { %2790 = vpow2.f32 %v2450_v42  ;;  %v1774_v44 = vsel %vm4004_vm1, %v3938_v55, %v1770_v4  ;;  %v1783_v17 = vsub.f32 1.0, %v1782_v53  ;;  %vm1786_vm3 = vweird.f32 %v3916_v37 }
 0x201   : > { %v2110_v40 = vrot.slane %v2109_v24, 1  ;;  %v2451_v45 = vclamps-f32 %v1819_v51, 1.0  ;;  %v1969_v58 = vmul.f32 %v3960_v5, %v1968_v30  ;;  %v1779_v16 = vsel %vm3997_vm0, %v1778_v23, %v1774_v44 }
 0x202   : > { %v2783_v26 = vpop.eup %2782  ;;  %v1792_v2 = vand.u32 2147483648, %v3916_v37  ;;  %vm1972_vm5 = vweird.f32 %v3960_v5  ;;  %vm1787_vm10 = vweird.f32 %v3958_v33  ;;  %vm4059_vm9 = vcmp.eq.f32.partialorder %v1790_v15, 8.507059e+37 }
 0x203   : > { %v2785_v21 = vpop.eup %2784  ;;  %v3972_v20 = vadd.f32 1.0, %v2783_v26  ;;  %v2111_v8 = vadd.f32 %v2110_v40, %v2109_v24  ;;  %v1784_v40 = vmul.f32 %v3958_v33, %v1783_v17  ;;  %vm1971_vm11 = vweird.f32 %v3918_v56  ;;  %vm4087_vm13 = vmor %vm1786_vm3, %vm1787_vm10 }
 0x204   : > { %v2787_v13 = vpop.eup %2786  ;;  %v2112_v60 = vadd.f32 %v2785_v21, %v2781_v11  ;;  %v2015_v21 = vmul.f32 0.16666667, %v2011_v34  ;;  %v1975_v23 = vand.u32 2147483647, %v3918_v56  ;;  %vm2256_vm12 = vcmask 1045504   ;;  %vm4073_vm6 = vmor %vm1971_vm11, %vm1972_vm5 }
 0x205   : > { %v2789_v7 = vpop.eup %2788  ;;  %2792 = vrcp.f32 %v3972_v20  ;;  %v2122_v49 = vmul.f32 0.6931472, %v2787_v13  ;;  %v2162_v13 = vand.u32 2147483648, %v3972_v20  ;;  %v2160_v1 = vand.u32 2147483647, %v3972_v20 }
 0x206   : > { %v2791_v62 = vpop.eup %2790  ;;  %2794 = vpow2.f32 %v2458_v10  ;;  %v2113_v38 = vrot.slane %v2112_v60, 4  ;;  %v3984_v41 = vadd.f32 1.0, %v2789_v7  ;;  %v4026_v7 = vsel %vm2251_vm14, %v3740_v6, %v2451_v45 }
 0x207   : > { %v3987_v18 = vadd.f32 %v2122_v49, %v3865_v63  ;;  %v3992_v42 = vadd.f32 1.0, %v2791_v62  ;;  %2796 = vlog2.f32 %v2111_v8  ;;  %vm2156_vm4 = vweird.f32 %v3972_v20 }
 0x208   : > { %v2114_v54 = vadd.f32 %v2113_v38, %v2112_v60  ;;  %2798 = vrcp.f32 %v3984_v41  ;;  %v2163_v31 = vor.u32 1.1754944e-38, %v2162_v13  ;;  %v2019_v50 = vsub.f32 %v2015_v21, %v3166_v57 }
 0x209   : > { %v2132_v27 = vadd.f32 3.0, %v3987_v18  ;;  %2800 = vrcp.f32 %v3992_v42  ;;  %v1970_v8 = vadd.f32 %v3960_v5, %v1969_v58  ;;  %vm2161_vm8 = vcmp.eq.f32.partialorder %v2160_v1, 8.507059e+37 }
 0x20a   : > { %v2115_v52 = vrot.slane %v2114_v54, 2  ;;  %v1785_v63 = vadd.f32 %v3958_v33, %v1784_v40  ;;  %vm1976_vm15 = vcmp.eq.f32.partialorder %v1975_v23, 8.507059e+37  ;;  %vm2261_vm0 = vcmask 1046528  }
 0x20b   : > { %v2793_v47 = vpop.eup %2792  ;;  %v2464_v32 = vmul.f32 -1.442695, %v2132_v27  ;;  %v1805_v1 = vand.u32 2147483647, %v3992_v42  ;;  %vm1801_vm1 = vweird.f32 %v3992_v42 }
 0x20c   : > { %v2795_v19 = vpop.eup %2794  ;;  %v2152_v11 = vmul.f32 %v2793_v47, %v3972_v20  ;;  %v2116_v0 = vadd.f32 %v2115_v52, %v2114_v54  ;;  %vm2157_vm2 = vweird.f32 %v2793_v47  ;;  %v1977_v52 = vand.u32 2147483648, %v3918_v56 }
 0x20d   : > { %2802 = vpow2.f32 %v2464_v32  ;;  %v4020_v24 = vadd.f32 1.0, %v2795_v19  ;;  %v2797_v55 = vpop.eup %2796  ;;  %vm2158_vm7 = vmor %vm2156_vm4, %vm2157_vm2  ;;  %v1974_v56 = vsel %vm4073_vm6, %v3960_v5, %v1970_v8  ;;  %v1789_v5 = vsel %vm4087_vm13, %v3958_v33, %v1785_v63 }
 0x20e   : > { %v2153_v26 = vsub.f32 1.0, %v2152_v11  ;;  %v2117_v10 = vrot.slane %v2116_v0, 1  ;;  %v2124_v62 = vmul.f32 0.6931472, %v2797_v55  ;;  %v4033_v49 = vpop.eup %2798  ;;  %v2459_v11 = vclamps-f32 %v2019_v50, 1.0 }
 0x20f   : > { %v4037_v6 = vpop.eup %2800  ;;  %v1982_v20 = vmul.f32 %v4033_v49, %v3984_v41  ;;  %v1978_v15 = vor.u32 1.1754944e-38, %v1977_v52  ;;  %v1793_v55 = vor.u32 1.1754944e-38, %v1792_v2  ;;  %vm1987_vm2 = vweird.f32 %v4033_v49 }
 0x210   : > { %v2154_v39 = vmul.f32 %v2793_v47, %v2153_v26  ;;  %v2118_v60 = vadd.f32 %v2117_v10, %v2116_v0  ;;  %v4043_v61 = vadd.f32 %v2124_v62, %v3888_v35  ;;  %v1812_v35 = vmul.f32 %v1779_v16, %v3860_v3 }
 0x211   : > { %v1797_v34 = vmul.f32 %v4037_v6, %v3992_v42  ;;  %v1983_v32 = vsub.f32 1.0, %v1982_v20  ;;  %v1979_v21 = vsel %vm1976_vm15, %v1978_v15, %v1974_v56  ;;  %v2257_v33 = vsel %vm2256_vm12, %v4026_v7, %v2459_v11 }
 0x212   : > { %v2155_v38 = vadd.f32 %v2793_v47, %v2154_v39  ;;  %2804 = vlog2.f32 %v2118_v60  ;;  %v2133_v53 = vadd.f32 3.0, %v4043_v61  ;;  %v1816_v45 = vmul.f32 0.16666667, %v1812_v35 }
 0x213   : > { %2806 = vrcp.f32 %v4020_v24  ;;  %v2803_v46 = vpop.eup %2802  ;;  %v1798_v10 = vsub.f32 1.0, %v1797_v34  ;;  %v1807_v60 = vand.u32 2147483648, %v3992_v42  ;;  %v1794_v2 = vsel %vm4059_vm9, %v1793_v55, %v1789_v5 }
 0x214   : > { %v2159_v54 = vsel %vm2158_vm7, %v2793_v47, %v2155_v38  ;;  %v4054_v4 = vadd.f32 1.0, %v2803_v46  ;;  %v2465_v19 = vmul.f32 -1.442695, %v2133_v53  ;;  %v1820_v40 = vsub.f32 %v1816_v45, %v3166_v57 }
 0x215   : > { %v2164_v51 = vsel %vm2161_vm8, %v2163_v31, %v2159_v54  ;;  %v2012_v7 = vmul.f32 %v1979_v21, %v3876_v29  ;;  %v1799_v46 = vmul.f32 %v4037_v6, %v1798_v10  ;;  %v1992_v53 = vand.u32 2147483648, %v3984_v41 }
 0x216   : > { %v2211_v47 = vmul.f32 %v2164_v51, %v3921_v59  ;;  %2808 = vrcp.f32 %v4054_v4  ;;  %v2177_v20 = vand.u32 2147483648, %v4054_v4  ;;  %v2175_v29 = vand.u32 2147483647, %v4054_v4 }
 0x217   : > { %2810 = vpow2.f32 %v2465_v19  ;;  %v2016_v27 = vmul.f32 0.16666667, %v2012_v7  ;;  %vm1986_vm4 = vweird.f32 %v3984_v41  ;;  %v1990_v52 = vand.u32 2147483647, %v3984_v41 }
 0x218   : > { %v2805_v3 = vpop.eup %2804  ;;  %v2215_v59 = vmul.f32 0.16666667, %v2211_v47  ;;  %v2452_v47 = vclamps-f32 %v1820_v40, 1.0  ;;  %vm4132_vm5 = vmor %vm1986_vm4, %vm1987_vm2  ;;  %vm2171_vm7 = vweird.f32 %v4054_v4  ;;  %v1800_v34 = vadd.f32 %v4037_v6, %v1799_v46 }
 0x219   : > { %v4077_v25 = vpop.eup %2806  ;;  %v2126_v0 = vmul.f32 0.6931472, %v2805_v3  ;;  %vm1802_vm8 = vweird.f32 %v4037_v6  ;;  %v2178_v30 = vor.u32 1.1754944e-38, %v2177_v20  ;;  %v1993_v19 = vor.u32 1.1754944e-38, %v1992_v53 }
 0x21a   : > { %v2219_v17 = vsub.f32 %v2215_v59, %v3166_v57  ;;  %v1997_v37 = vmul.f32 %v4077_v25, %v4020_v24  ;;  %v1813_v59 = vmul.f32 %v1794_v2, %v3868_v48  ;;  %vm2176_vm9 = vcmp.eq.f32.partialorder %v2175_v29, 8.507059e+37  ;;  %vm4148_vm13 = vmor %vm1801_vm1, %vm1802_vm8 }
 0x21b   : > { %v4096_v26 = vadd.f32 %v2126_v0, %v3913_v36  ;;  %v1984_v36 = vmul.f32 %v4033_v49, %v1983_v32  ;;  %v2020_v32 = vsub.f32 %v2016_v27, %v3166_v57  ;;  %vm1991_vm11 = vcmp.eq.f32.partialorder %v1990_v52, 8.507059e+37 }
 0x21c   : > { %v2467_v58 = vclamps-f32 %v2219_v17, 1.0  ;;  %v2809_v13 = vpop.eup %2808  ;;  %v1998_v50 = vsub.f32 1.0, %v1997_v37  ;;  %vm2002_vm6 = vweird.f32 %v4077_v25  ;;  %v1804_v17 = vsel %vm4148_vm13, %v4037_v6, %v1800_v34 }
 0x21d   : > { %v2134_v39 = vadd.f32 3.0, %v4096_v26  ;;  %v2167_v62 = vmul.f32 %v2809_v13, %v4054_v4  ;;  %v2811_v31 = vpop.eup %2810  ;;  %v1985_v54 = vadd.f32 %v4033_v49, %v1984_v36  ;;  %vm2172_vm3 = vweird.f32 %v2809_v13 }
 0x21e   : > { %v2262_v16 = vsel %vm2261_vm0, %v2257_v33, %v2467_v58  ;;  %v4123_v51 = vadd.f32 1.0, %v2811_v31  ;;  %v1999_v23 = vmul.f32 %v4077_v25, %v1998_v50  ;;  %vm2173_vm10 = vmor %vm2171_vm7, %vm2172_vm3  ;;  %vm4159_vm15 = vcmp.eq.f32.partialorder %v1805_v1, 8.507059e+37 }
 0x21f   : > { %2266 = vst [vmem:[%s4103_s19] sm:$0xff] %v2262_v16  ;;  %v2466_v38 = vmul.f32 -1.442695, %v2134_v39  ;;  %v2168_v8 = vsub.f32 1.0, %v2167_v62  ;;  %v1989_v41 = vsel %vm4132_vm5, %v4033_v49, %v1985_v54  ;;  %v2005_v42 = vand.u32 2147483647, %v4020_v24 }
 0x220   : > { %v1994_v49 = vsel %vm1991_vm11, %v1993_v19, %v1989_v41  ;;  %v2000_v45 = vadd.f32 %v4077_v25, %v1999_v23  ;;  %v2007_v10 = vand.u32 2147483648, %v4020_v24  ;;  %vm2001_vm1 = vweird.f32 %v4020_v24 }
 0x221   : > { %2812 = vpow2.f32 %v2466_v38  ;;  %v2169_v35 = vmul.f32 %v2809_v13, %v2168_v8  ;;  %v2253_v37 = vsel %vm2251_vm14, %v3760_v28, %v2452_v47  ;;  %v1808_v58 = vor.u32 1.1754944e-38, %v1807_v60  ;;  %vm4173_vm2 = vmor %vm2001_vm1, %vm2002_vm6 }
 0x222   : > { %2814 = vrcp.f32 %v4123_v51  ;;  %v2460_v6 = vclamps-f32 %v2020_v32, 1.0  ;;  %v1817_v33 = vmul.f32 0.16666667, %v1813_v59  ;;  %v2004_v24 = vsel %vm4173_vm2, %v4077_v25, %v2000_v45 }
 0x223   : > { %v2170_v3 = vadd.f32 %v2809_v13, %v2169_v35  ;;  %v1809_v28 = vsel %vm4159_vm15, %v1808_v58, %v1804_v17  ;;  %vm2006_vm3 = vcmp.eq.f32.partialorder %v2005_v42, 8.507059e+37  ;;  %v2192_v1 = vand.u32 2147483648, %v4123_v51 }
 0x224   : > { %v2190_v62 = vand.u32 2147483647, %v4123_v51  ;;  %v2258_v40 = vsel %vm2256_vm12, %v2253_v37, %v2460_v6  ;;  %vm2186_vm5 = vweird.f32 %v4123_v51  ;;  %v1814_v46 = vmul.f32 %v1809_v28, %v3906_v12 }
 0x225   : > { %v2174_v11 = vsel %vm2173_vm10, %v2809_v13, %v2170_v3  ;;  %v2013_v13 = vmul.f32 %v1994_v49, %v3909_v14  ;;  %v2008_v14 = vor.u32 1.1754944e-38, %v2007_v10  ;;  %v2193_v50 = vor.u32 1.1754944e-38, %v2192_v1 }
 0x226   : > { %v2179_v4 = vsel %vm2176_vm9, %v2178_v30, %v2174_v11  ;;  %v1821_v54 = vsub.f32 %v1817_v33, %v3166_v57  ;;  %vm2191_vm8 = vcmp.eq.f32.partialorder %v2190_v62, 8.507059e+37  ;;  %v1818_v12 = vmul.f32 0.16666667, %v1814_v46 }
 0x227   : > { %v2813_v56 = vpop.eup %2812  ;;  %v2212_v48 = vmul.f32 %v2179_v4, %v3987_v18  ;;  %v2017_v2 = vmul.f32 0.16666667, %v2013_v13  ;;  %v2009_v25 = vsel %vm2006_vm3, %v2008_v14, %v2004_v24 }
 0x228   : > { %v4154_v44 = vadd.f32 1.0, %v2813_v56  ;;  %v2815_v15 = vpop.eup %2814  ;;  %v2014_v20 = vmul.f32 %v2009_v25, %v3950_v22  ;;  %v2453_v23 = vclamps-f32 %v1821_v54, 1.0 }
 0x229   : > { %v2216_v21 = vmul.f32 0.16666667, %v2212_v48  ;;  %v2182_v18 = vmul.f32 %v2815_v15, %v4123_v51  ;;  %vm2187_vm4 = vweird.f32 %v2815_v15  ;;  %v2021_v35 = vsub.f32 %v2017_v2, %v3166_v57 }
 0x22a   : > { %2816 = vrcp.f32 %v4154_v44  ;;  %vm2188_vm7 = vmor %vm2186_vm5, %vm2187_vm4  ;;  %v2207_v51 = vand.u32 2147483648, %v4154_v44  ;;  %v2205_v63 = vand.u32 2147483647, %v4154_v44  ;;  %v2018_v3 = vmul.f32 0.16666667, %v2014_v20 }
 0x22b   : > { %v2220_v36 = vsub.f32 %v2216_v21, %v3166_v57  ;;  %v2183_v39 = vsub.f32 1.0, %v2182_v18  ;;  %v2461_v41 = vclamps-f32 %v2021_v35, 1.0  ;;  %vm2201_vm9 = vweird.f32 %v4154_v44 }
 0x22c   : > { %v2208_v59 = vor.u32 1.1754944e-38, %v2207_v51  ;;  %vm2206_vm6 = vcmp.eq.f32.partialorder %v2205_v63, 8.507059e+37  ;;  %v2254_v11 = vsel %vm2251_vm14, %v3800_v43, %v2453_v23  ;;  %v2022_v56 = vsub.f32 %v2018_v3, %v3166_v57 }
 0x22d   : > { %v2468_v60 = vclamps-f32 %v2220_v36, 1.0  ;;  %v2184_v16 = vmul.f32 %v2815_v15, %v2183_v39  ;;  %v2259_v0 = vsel %vm2256_vm12, %v2254_v11, %v2461_v41 }
 0x22f   : > { %v2263_v38 = vsel %vm2261_vm0, %v2258_v40, %v2468_v60  ;;  %v2185_v31 = vadd.f32 %v2815_v15, %v2184_v16 }
 0x230   : > { %v2817_v7 = vpop.eup %2816  ;;  %2267 = vst [vmem:[%s4103_s19 + $0x8] sm:$0xff] %v2263_v38 }
 0x231   : > { %v2197_v8 = vmul.f32 %v2817_v7, %v4154_v44  ;;  %v2189_v53 = vsel %vm2188_vm7, %v2815_v15, %v2185_v31  ;;  %vm2202_vm10 = vweird.f32 %v2817_v7  ;;  %v2462_v15 = vclamps-f32 %v2022_v56, 1.0 }
 0x232   : > { %v2194_v29 = vsel %vm2191_vm8, %v2193_v50, %v2189_v53  ;;  %vm2203_vm11 = vmor %vm2201_vm9, %vm2202_vm10 }
 0x233   : > { %v2198_v27 = vsub.f32 1.0, %v2197_v8  ;;  %v2213_v52 = vmul.f32 %v2194_v29, %v4043_v61  ;;  %v1822_v61 = vsub.f32 %v1818_v12, %v3166_v57 }
 0x235   : > { %v2199_v47 = vmul.f32 %v2817_v7, %v2198_v27  ;;  %v2217_v34 = vmul.f32 0.16666667, %v2213_v52  ;;  %v2454_v48 = vclamps-f32 %v1822_v61, 1.0 }
 0x237   : > { %v2200_v22 = vadd.f32 %v2817_v7, %v2199_v47  ;;  %v2221_v30 = vsub.f32 %v2217_v34, %v3166_v57  ;;  %v2255_v43 = vsel %vm2251_vm14, %v3827_v9, %v2454_v48 }
 0x238   : > { %v2260_v42 = vsel %vm2256_vm12, %v2255_v43, %v2462_v15 }
 0x239   : > { %v2204_v19 = vsel %vm2203_vm11, %v2817_v7, %v2200_v22  ;;  %v2469_v32 = vclamps-f32 %v2221_v30, 1.0 }
 0x23a   : > { %v2209_v4 = vsel %vm2206_vm6, %v2208_v59, %v2204_v19 }
 0x23b   : > { %v2214_v49 = vmul.f32 %v2209_v4, %v4096_v26  ;;  %v2264_v45 = vsel %vm2261_vm0, %v2259_v0, %v2469_v32 }
 0x23c   : > { %2268 = vst [vmem:[%s4103_s19 + $0x10] sm:$0xff] %v2264_v45 }
 0x23d   : > { %v2218_v44 = vmul.f32 0.16666667, %v2214_v49 }
 0x23f   : > { %v2222_v17 = vsub.f32 %v2218_v44, %v3166_v57 }
 0x241   : > { %v2470_v5 = vclamps-f32 %v2222_v17, 1.0 }
 0x243   : > { %v2265_v10 = vsel %vm2261_vm0, %v2260_v42, %v2470_v5 }
 0x244   : > { %2269 = vst [vmem:[%s4103_s19 + $0x18] sm:$0xff] %v2265_v10 }
 0x245 PF: > { %p11_p9 = scmp.ge.s32.totalorder %s2882_s17, 4   ;;  %s4281_s14 = smov %s2836_s15 }
 0x246   : > { %s4282_s15 = smov %s2891_s20  ;;  %s4283_s16 = smov %s2882_s17 }
 0x247   :  { %13 = sbr.rel (!%p11_p9) target bundleno = 4 (0x4), region = 90 }

</bundles_post_ra>
